<compile_context>
chip_gen: v5e
topology: v5e:2x2
jax: 0.10.0
libtpu: 0.0.40
codegen_flags: <defaults>
</compile_context>

<pallas_src>
import math
import functools

import jax
import jax.numpy as jnp
from jax.experimental import pallas as pl
from jax.experimental.pallas import tpu as pltpu

LANE = 128          # TPU lane width
_NEG_INF = -1e30    # softmax mask value for padded columns


# --------------------------------- helpers ---------------------------------

def _channel_offsets(channel_num):
    offs = [0]
    for c in channel_num[:-1]:
        offs.append(offs[-1] + c)
    return offs


def _round_up(x, m):
    return ((x + m - 1) // m) * m


# --------------------------------- weight packing ---------------------------------

def pack_params(params, channel_num, num_heads, kv_size):
    """Pack all per-head / per-scale weights into two lane-aligned bf16 slabs.

    W_big : (KVp, H*3*KVp)  per head h at column base h*3*KVp:
              [0:KVp)           blockdiag(Wq_1..Wq_4)[h] * 1/sqrt(KV)   (zero-padded)
              [KVp:2*KVp)       Wk[h]                                   (zero-padded)
              [2*KVp:3*KVp)     Wv[h]                                   (zero-padded)
    W_out : (KVp, KVp)      block-diagonal Wout_i; padded rows/cols stay zero so
                            padded ctx rows never leak into the output.
    """
    H, KV = num_heads, kv_size
    KVp = _round_up(KV, LANE)
    offs = _channel_offsets(channel_num)
    scale = 1.0 / math.sqrt(KV)
    head_stride = 3 * KVp

    w_big = jnp.zeros((KVp, H * head_stride), jnp.float32)
    for h in range(H):
        wq_blk = jnp.zeros((KVp, KVp), jnp.float32)
        for off, c, wq in zip(offs, channel_num, params["wq_t"]):
            wq_blk = wq_blk.at[off:off + c, off:off + c].set(wq[h] * scale)
        base = h * head_stride
        w_big = w_big.at[:, base:base + KVp].set(wq_blk)
        w_big = w_big.at[:KV, base + KVp:base + KVp + KV].set(params["wk_t"][h])
        w_big = w_big.at[:KV, base + 2 * KVp:base + 2 * KVp + KV].set(params["wv_t"][h])

    w_out = jnp.zeros((KVp, KVp), jnp.float32)
    for off, c, wo in zip(offs, channel_num, params["wout_t"]):
        w_out = w_out.at[off:off + c, off:off + c].set(wo)

    # bf16 MXU operands (f32 accumulation inside the kernel).
    return w_big.astype(jnp.bfloat16), w_out.astype(jnp.bfloat16), offs


# ----------------------------------- fused kernel -----------------------------------

def _fused_attention_kernel(emb_ref, wbig_ref, wout_ref, o_ref, *,
                            num_heads, kv_size, kv_pad, batch_block, n_tokens,
                            channel_offsets, channel_num):
    H, KV, KVp = num_heads, kv_size, kv_pad
    Bt, N = batch_block, n_tokens
    head_stride = 3 * KVp

    # Q/K/V for ALL batch-block rows, heads and scales in one MXU matmul.
    emb = emb_ref[...].reshape(Bt * N, KVp)                            # bf16
    qkv = jnp.dot(emb, wbig_ref[...], preferred_element_type=jnp.float32)
    qkv = qkv.astype(jnp.bfloat16)                                     # bf16 MXU operands

    w_out = wout_ref[...]                                              # bf16 (KVp, KVp)

    # Hoisted constants (JAX does not CSE broadcast_in_dim inside loops).
    col_valid = jax.lax.broadcasted_iota(jnp.int32, (1, KVp), 1) < KV  # softmax mask
    row_idx = jax.lax.broadcasted_iota(jnp.int32, (KVp, 1), 0)         # rsig row-select
    inv_cnt = [1.0 / (c * KV) for c in channel_num]
    inv_h = 1.0 / H

    for b in range(Bt):                                                # static unroll, tiny
        qkv_b = qkv[b * N:(b + 1) * N, :]                              # (N, H*3*KVp)
        acc = jnp.zeros((KVp, N), jnp.float32)

        for h in range(H):                                             # static unroll, H small
            base = h * head_stride
            q = qkv_b[:, base:base + KVp]                              # (N, KVp), 1/sqrt(KV) pre-folded
            k = qkv_b[:, base + KVp:base + 2 * KVp]                    # (N, KVp)
            v = qkv_b[:, base + 2 * KVp:base + 3 * KVp]                # (N, KVp)

            # scores[c, j] = sum_n q[n, c] * k[n, j]   (Q^T K; lhs dim-0 contraction is the
            # MXU's native trans_a feed, no XLU transpose).  Padded rows/cols are exactly 0.
            scores = jax.lax.dot_general(
                q, k, (((0,), (0,)), ((), ())),
                preferred_element_type=jnp.float32)                    # (KVp, KVp) f32

            # Per-scale InstanceNorm stats: two lane reductions + tiny sublane sums.
            # Padded columns are zero so sums over KVp columns equal sums over KV columns.
            # TODO(synk): one-pass variance (s2/n - mu^2) can cancel if |mu| >> sigma at
            #             realistic score scales; switch to a shifted two-pass if needed.
            rs1 = jnp.sum(scores, axis=-1, keepdims=True)              # (KVp, 1)
            rs2 = jnp.sum(scores * scores, axis=-1, keepdims=True)     # (KVp, 1)

            rsigs = []
            for off, c, inv_n in zip(channel_offsets, channel_num, inv_cnt):
                s1 = jnp.sum(rs1[off:off + c, :])
                s2 = jnp.sum(rs2[off:off + c, :])
                mu = s1 * inv_n
                var = s2 * inv_n - mu * mu
                rsigs.append(jax.lax.rsqrt(var + 1e-5))

            # Mean subtraction dropped: it is a per-row constant shift and softmax is
            # shift-invariant -> scores * rsig_col is numerically equivalent.
            rsig_col = jnp.broadcast_to(rsigs[-1], (KVp, 1))
            for i in range(len(channel_num) - 2, -1, -1):
                rsig_col = jnp.where(row_idx < channel_offsets[i + 1], rsigs[i], rsig_col)
            norm = scores * rsig_col                                   # (KVp, KVp) f32

            # softmax over the KV axis; padded columns masked to -inf-ish.
            masked = jnp.where(col_valid, norm, _NEG_INF)
            m = jnp.max(masked, axis=-1, keepdims=True)
            e = jnp.exp(masked - m)
            denom = jnp.sum(e, axis=-1, keepdims=True)
            probs = (e * pl.reciprocal(denom, approx=True)).astype(jnp.bfloat16)

            # ctx[c, n] = sum_j probs[c, j] * v[n, j]   (probs @ V^T; native trans_b feed)
            ctx = jax.lax.dot_general(
                probs, v, (((1,), (1,)), ((), ())),
                preferred_element_type=jnp.float32)                    # (KVp, N) f32
            acc = acc + ctx

        mean_ctx = (acc * inv_h).astype(jnp.bfloat16)                  # (KVp, N)

        # O[n, j] = sum_c mean_ctx[c, n] * W_out[c, j]  -> lane-dense (N, KVp) store.
        o_ref[b] = jax.lax.dot_general(
            mean_ctx, w_out, (((0,), (0,)), ((), ())),
            preferred_element_type=jnp.float32).astype(o_ref.dtype)


# ----------------------------------- full module -----------------------------------

def attention_org_forward(embs, emb_all, params, *, num_heads, kv_size, batch_block=1):
    """Pallas forward pass. embs = (emb1..emb4); returns (O1, O2, O3, O4, None)."""
    B, N, KV = emb_all.shape
    assert KV == kv_size
    assert B % batch_block == 0
    channel_num = [int(e.shape[-1]) for e in embs]
    KVp = _round_up(KV, LANE)
    Bt = batch_block

    w_big, w_out, offs = pack_params(params, channel_num, num_heads, kv_size)

    # Host-side: pad the activation stream to a lane-dense 128 multiple + bf16 cast
    # (halves DMA bytes; all matmuls accumulate in f32 inside the kernel).
    emb_pad = jnp.pad(emb_all, ((0, 0), (0, 0), (0, KVp - KV))).astype(jnp.bfloat16)

    kernel = functools.partial(
        _fused_attention_kernel,
        num_heads=num_heads, kv_size=KV, kv_pad=KVp,
        batch_block=Bt, n_tokens=N,
        channel_offsets=tuple(offs), channel_num=tuple(channel_num))

    grid_spec = pltpu.PrefetchScalarGridSpec(
        num_scalar_prefetch=0,
        grid=(B // Bt,),
        in_specs=[
            pl.BlockSpec((Bt, N, KVp), lambda i: (i, 0, 0)),
            # Weights stay VMEM-resident (constant index map -> fetched once).
            # TODO(synk): at realistic UCTransNet sizes (KV~960) add
            #   pipeline_mode=pl.Buffered(1) on these two specs and/or raise
            #   vmem_limit_bytes so the weight slabs fit v7x's 64 MiB VMEM.
            pl.BlockSpec(w_big.shape, lambda i: (0, 0)),
            pl.BlockSpec(w_out.shape, lambda i: (0, 0)),
        ],
        out_specs=pl.BlockSpec((Bt, N, KVp), lambda i: (i, 0, 0)),
    )

    o_padded = pl.pallas_call(
        kernel,
        out_shape=jax.ShapeDtypeStruct((B, N, KVp), jnp.float32),
        grid_spec=grid_spec,
        compiler_params=pltpu.CompilerParams(
            dimension_semantics=("parallel",)),          # v7x: 2 TCs split the batch grid
    )(emb_pad, w_big, w_out)

    outs = [o_padded[:, :, off:off + c] for off, c in zip(offs, channel_num)]
    return (*outs, None)  # vis=False -> weights=None


def attention_org_reference(embs, emb_all, params, *, num_heads, kv_size):
    """Pure-JAX f32 reference for verification."""
    K = jnp.einsum('bnk,hkj->bhnj', emb_all, params["wk_t"])
    V = jnp.einsum('bnk,hkj->bhnj', emb_all, params["wv_t"])
    outs = []
    for emb, wq_t, wout_t in zip(embs, params["wq_t"], params["wout_t"]):
        Q = jnp.einsum('bnc,hcd->bhnd', emb, wq_t)                     # (B,H,N,C)
        scores = jnp.einsum('bhnc,bhnk->bhck', Q, K) / math.sqrt(kv_size)
        mu = scores.mean(axis=(2, 3), keepdims=True)
        var = ((scores - mu) ** 2).mean(axis=(2, 3), keepdims=True)
        norm = (scores - mu) / jnp.sqrt(var + 1e-5)
        probs = jax.nn.softmax(norm, axis=-1)
        ctx = jnp.einsum('bhck,bhnk->bhcn', probs, V)                  # (B,H,C,N)
        mean_ctx = jnp.transpose(ctx.mean(axis=1), (0, 2, 1))          # (B,N,C)
        outs.append(jnp.dot(mean_ctx, wout_t))
    return outs


if __name__ == "__main__":
    # Small config consistent with the module: 4 scales + concatenated KV stream.
    B, N = 2, 16
    channel_num = [8, 16, 24, 32]
    KV_size = sum(channel_num)          # 80
    num_heads = 4

    key = jax.random.PRNGKey(0)
    keys = jax.random.split(key, 16)
    ki = iter(keys)

    embs = [jax.random.normal(next(ki), (B, N, c), jnp.float32) for c in channel_num]
    emb_all = jnp.concatenate(embs, axis=-1)                           # (B, N, KV)

    def winit(k, shape):
        return 0.05 * jax.random.normal(k, shape, jnp.float32)

    params = {
        # per-head query weights, pre-transposed to (H, C_in, C_out)
        "wq_t": [winit(next(ki), (num_heads, c, c)) for c in channel_num],
        "wk_t": winit(next(ki), (num_heads, KV_size, KV_size)),
        "wv_t": winit(next(ki), (num_heads, KV_size, KV_size)),
        # output projections (C, C), pre-transposed
        "wout_t": [winit(next(ki), (c, c)) for c in channel_num],
    }

    refs = attention_org_reference(embs, emb_all, params,
                                   num_heads=num_heads, kv_size=KV_size)

    # Exercise both batch tilings:
    #   batch_block=1 -> grid=(B,) parallel over B (v7x 2-TC sharding)
    #   batch_block=B -> single grid step (v5e/v6e: no per-step overhead, fuller MXU rows)
    for bt in (1, B):
        O1, O2, O3, O4, weights = attention_org_forward(
            embs, emb_all, params, num_heads=num_heads, kv_size=KV_size, batch_block=bt)
        outs = [jax.block_until_ready(o) for o in (O1, O2, O3, O4)]
        for o, r in zip(outs, refs):
            assert o.shape == r.shape, (o.shape, r.shape)
            err = float(jnp.max(jnp.abs(o - r)))
            # bf16 MXU operands -> relaxed tolerance vs. the f32 reference.
            assert err < 2e-2, f"batch_block={bt}: max abs error too large: {err}"

    print("KERNEL_OK")
</pallas_src>

<mosaic_0001>
module attributes {stable_mosaic.version = 11 : i64} {
  func.func @_fused_attention_kernel(%arg0: i32, %arg1: memref<1x16x128xbf16, #tpu.memory_space<vmem>>, %arg2: memref<128x1536xbf16, #tpu.memory_space<vmem>>, %arg3: memref<128x128xbf16, #tpu.memory_space<vmem>>, %arg4: memref<1x16x128xf32, #tpu.memory_space<vmem>>) attributes {dimension_semantics = [#tpu.dimension_semantics<parallel>], iteration_bounds = array<i64: 2>, scalar_prefetch = 0 : i64, scratch_operands = 0 : i64, tpu.core_type = #tpu.core_type<tc>, window_params = [{transform_indices = @transform_0, window_bounds = array<i64: 1, 16, 128>}, {pipeline_mode = #tpu.pipeline_mode<synchronous>, transform_indices = @transform_1, window_bounds = array<i64: 128, 1536>}, {pipeline_mode = #tpu.pipeline_mode<synchronous>, transform_indices = @transform_2, window_bounds = array<i64: 128, 128>}, {transform_indices = @transform_3, window_bounds = array<i64: 1, 16, 128>}]} {
    %c0 = arith.constant 0 : index
    %c0_0 = arith.constant 0 : index
    %c0_1 = arith.constant 0 : index
    %0 = vector.load %arg1[%c0, %c0_0, %c0_1] : memref<1x16x128xbf16, #tpu.memory_space<vmem>>, vector<1x16x128xbf16>
    %1 = vector.shape_cast %0 : vector<1x16x128xbf16> to vector<16x128xbf16>
    %c0_2 = arith.constant 0 : index
    %c0_3 = arith.constant 0 : index
    %2 = vector.load %arg2[%c0_2, %c0_3] : memref<128x1536xbf16, #tpu.memory_space<vmem>>, vector<128x1536xbf16>
    %cst = arith.constant dense<0.000000e+00> : vector<16x1536xf32>
    %3 = tpu.matmul %1, %2, %cst {dimension_numbers = #tpu.dot_dimension_numbers<[1], [0], [0], [1], [0, 0, 1, 1], [], []>} : vector<16x128xbf16>, vector<128x1536xbf16>, vector<16x1536xf32> -> vector<16x1536xf32>
    %4 = arith.truncf %3 : vector<16x1536xf32> to vector<16x1536xbf16>
    %c0_4 = arith.constant 0 : index
    %c0_5 = arith.constant 0 : index
    %5 = vector.load %arg3[%c0_4, %c0_5] : memref<128x128xbf16, #tpu.memory_space<vmem>>, vector<128x128xbf16>
    %6 = tpu.iota {dimensions = array<i32: 1>} : vector<1x128xi32>
    %c80_i32 = arith.constant 80 : i32
    %7 = vector.broadcast %c80_i32 : i32 to vector<1x128xi32>
    %8 = arith.cmpi slt, %6, %7 : vector<1x128xi32>
    %9 = tpu.iota {dimensions = array<i32: 0>} : vector<128x1xi32>
    %cst_6 = arith.constant 0.000000e+00 : f32
    %10 = vector.broadcast %cst_6 : f32 to vector<128x16xf32>
    %11 = vector.extract_strided_slice %4 {offsets = [0, 0], sizes = [16, 128], strides = [1, 1]} : vector<16x1536xbf16> to vector<16x128xbf16>
    %12 = vector.extract_strided_slice %4 {offsets = [0, 128], sizes = [16, 128], strides = [1, 1]} : vector<16x1536xbf16> to vector<16x128xbf16>
    %13 = vector.extract_strided_slice %4 {offsets = [0, 256], sizes = [16, 128], strides = [1, 1]} : vector<16x1536xbf16> to vector<16x128xbf16>
    %cst_7 = arith.constant dense<0.000000e+00> : vector<128x128xf32>
    %14 = tpu.matmul %11, %12, %cst_7 {dimension_numbers = #tpu.dot_dimension_numbers<[0], [0], [1], [1], [0, 1, 1, 1], [], []>} : vector<16x128xbf16>, vector<16x128xbf16>, vector<128x128xf32> -> vector<128x128xf32>
    %cst_8 = arith.constant dense<0.000000e+00> : vector<128xf32>
    %15 = vector.multi_reduction <add>, %14, %cst_8 [1] : vector<128x128xf32> to vector<128xf32>
    %16 = vector.shape_cast %15 : vector<128xf32> to vector<128x1xf32>
    %17 = arith.mulf %14, %14 : vector<128x128xf32>
    %cst_9 = arith.constant dense<0.000000e+00> : vector<128xf32>
    %18 = vector.multi_reduction <add>, %17, %cst_9 [1] : vector<128x128xf32> to vector<128xf32>
    %19 = vector.shape_cast %18 : vector<128xf32> to vector<128x1xf32>
    %20 = vector.extract_strided_slice %16 {offsets = [0, 0], sizes = [8, 1], strides = [1, 1]} : vector<128x1xf32> to vector<8x1xf32>
    %21 = vector.shape_cast %20 : vector<8x1xf32> to vector<1x8x1xf32>
    %cst_10 = arith.constant dense<0.000000e+00> : vector<1xf32>
    %22 = vector.multi_reduction <add>, %21, %cst_10 [1, 2] : vector<1x8x1xf32> to vector<1xf32>
    %23 = vector.shape_cast %22 : vector<1xf32> to vector<1x1x1xf32>
    %24 = vector.extract %23[0, 0, 0] : f32 from vector<1x1x1xf32>
    %25 = vector.extract_strided_slice %19 {offsets = [0, 0], sizes = [8, 1], strides = [1, 1]} : vector<128x1xf32> to vector<8x1xf32>
    %26 = vector.shape_cast %25 : vector<8x1xf32> to vector<1x8x1xf32>
    %cst_11 = arith.constant dense<0.000000e+00> : vector<1xf32>
    %27 = vector.multi_reduction <add>, %26, %cst_11 [1, 2] : vector<1x8x1xf32> to vector<1xf32>
    %28 = vector.shape_cast %27 : vector<1xf32> to vector<1x1x1xf32>
    %29 = vector.extract %28[0, 0, 0] : f32 from vector<1x1x1xf32>
    %cst_12 = arith.constant 1.562500e-03 : f32
    %30 = arith.mulf %24, %cst_12 : f32
    %cst_13 = arith.constant 1.562500e-03 : f32
    %31 = arith.mulf %29, %cst_13 : f32
    %32 = arith.mulf %30, %30 : f32
    %33 = arith.subf %31, %32 : f32
    %cst_14 = arith.constant 9.99999974E-6 : f32
    %34 = arith.addf %33, %cst_14 : f32
    %35 = math.rsqrt %34 : f32
    %36 = vector.extract_strided_slice %16 {offsets = [8, 0], sizes = [16, 1], strides = [1, 1]} : vector<128x1xf32> to vector<16x1xf32>
    %37 = vector.shape_cast %36 : vector<16x1xf32> to vector<1x16x1xf32>
    %cst_15 = arith.constant dense<0.000000e+00> : vector<1xf32>
    %38 = vector.multi_reduction <add>, %37, %cst_15 [1, 2] : vector<1x16x1xf32> to vector<1xf32>
    %39 = vector.shape_cast %38 : vector<1xf32> to vector<1x1x1xf32>
    %40 = vector.extract %39[0, 0, 0] : f32 from vector<1x1x1xf32>
    %41 = vector.extract_strided_slice %19 {offsets = [8, 0], sizes = [16, 1], strides = [1, 1]} : vector<128x1xf32> to vector<16x1xf32>
    %42 = vector.shape_cast %41 : vector<16x1xf32> to vector<1x16x1xf32>
    %cst_16 = arith.constant dense<0.000000e+00> : vector<1xf32>
    %43 = vector.multi_reduction <add>, %42, %cst_16 [1, 2] : vector<1x16x1xf32> to vector<1xf32>
    %44 = vector.shape_cast %43 : vector<1xf32> to vector<1x1x1xf32>
    %45 = vector.extract %44[0, 0, 0] : f32 from vector<1x1x1xf32>
    %cst_17 = arith.constant 7.812500e-04 : f32
    %46 = arith.mulf %40, %cst_17 : f32
    %cst_18 = arith.constant 7.812500e-04 : f32
    %47 = arith.mulf %45, %cst_18 : f32
    %48 = arith.mulf %46, %46 : f32
    %49 = arith.subf %47, %48 : f32
    %cst_19 = arith.constant 9.99999974E-6 : f32
    %50 = arith.addf %49, %cst_19 : f32
    %51 = math.rsqrt %50 : f32
    %52 = vector.extract_strided_slice %16 {offsets = [24, 0], sizes = [24, 1], strides = [1, 1]} : vector<128x1xf32> to vector<24x1xf32>
    %53 = vector.shape_cast %52 : vector<24x1xf32> to vector<1x24x1xf32>
    %cst_20 = arith.constant dense<0.000000e+00> : vector<1xf32>
    %54 = vector.multi_reduction <add>, %53, %cst_20 [1, 2] : vector<1x24x1xf32> to vector<1xf32>
    %55 = vector.shape_cast %54 : vector<1xf32> to vector<1x1x1xf32>
    %56 = vector.extract %55[0, 0, 0] : f32 from vector<1x1x1xf32>
    %57 = vector.extract_strided_slice %19 {offsets = [24, 0], sizes = [24, 1], strides = [1, 1]} : vector<128x1xf32> to vector<24x1xf32>
    %58 = vector.shape_cast %57 : vector<24x1xf32> to vector<1x24x1xf32>
    %cst_21 = arith.constant dense<0.000000e+00> : vector<1xf32>
    %59 = vector.multi_reduction <add>, %58, %cst_21 [1, 2] : vector<1x24x1xf32> to vector<1xf32>
    %60 = vector.shape_cast %59 : vector<1xf32> to vector<1x1x1xf32>
    %61 = vector.extract %60[0, 0, 0] : f32 from vector<1x1x1xf32>
    %cst_22 = arith.constant 5.2083336E-4 : f32
    %62 = arith.mulf %56, %cst_22 : f32
    %cst_23 = arith.constant 5.2083336E-4 : f32
    %63 = arith.mulf %61, %cst_23 : f32
    %64 = arith.mulf %62, %62 : f32
    %65 = arith.subf %63, %64 : f32
    %cst_24 = arith.constant 9.99999974E-6 : f32
    %66 = arith.addf %65, %cst_24 : f32
    %67 = math.rsqrt %66 : f32
    %68 = vector.extract_strided_slice %16 {offsets = [48, 0], sizes = [32, 1], strides = [1, 1]} : vector<128x1xf32> to vector<32x1xf32>
    %69 = vector.shape_cast %68 : vector<32x1xf32> to vector<1x32x1xf32>
    %cst_25 = arith.constant dense<0.000000e+00> : vector<1xf32>
    %70 = vector.multi_reduction <add>, %69, %cst_25 [1, 2] : vector<1x32x1xf32> to vector<1xf32>
    %71 = vector.shape_cast %70 : vector<1xf32> to vector<1x1x1xf32>
    %72 = vector.extract %71[0, 0, 0] : f32 from vector<1x1x1xf32>
    %73 = vector.extract_strided_slice %19 {offsets = [48, 0], sizes = [32, 1], strides = [1, 1]} : vector<128x1xf32> to vector<32x1xf32>
    %74 = vector.shape_cast %73 : vector<32x1xf32> to vector<1x32x1xf32>
    %cst_26 = arith.constant dense<0.000000e+00> : vector<1xf32>
    %75 = vector.multi_reduction <add>, %74, %cst_26 [1, 2] : vector<1x32x1xf32> to vector<1xf32>
    %76 = vector.shape_cast %75 : vector<1xf32> to vector<1x1x1xf32>
    %77 = vector.extract %76[0, 0, 0] : f32 from vector<1x1x1xf32>
    %cst_27 = arith.constant 3.906250e-04 : f32
    %78 = arith.mulf %72, %cst_27 : f32
    %cst_28 = arith.constant 3.906250e-04 : f32
    %79 = arith.mulf %77, %cst_28 : f32
    %80 = arith.mulf %78, %78 : f32
    %81 = arith.subf %79, %80 : f32
    %cst_29 = arith.constant 9.99999974E-6 : f32
    %82 = arith.addf %81, %cst_29 : f32
    %83 = math.rsqrt %82 : f32
    %84 = vector.broadcast %83 : f32 to vector<128x1xf32>
    %c48_i32 = arith.constant 48 : i32
    %85 = vector.broadcast %c48_i32 : i32 to vector<128x1xi32>
    %86 = arith.cmpi slt, %9, %85 : vector<128x1xi32>
    %87 = vector.broadcast %67 : f32 to vector<128x1xf32>
    %88 = arith.select %86, %87, %84 : vector<128x1xi1>, vector<128x1xf32>
    %c24_i32 = arith.constant 24 : i32
    %89 = vector.broadcast %c24_i32 : i32 to vector<128x1xi32>
    %90 = arith.cmpi slt, %9, %89 : vector<128x1xi32>
    %91 = vector.broadcast %51 : f32 to vector<128x1xf32>
    %92 = arith.select %90, %91, %88 : vector<128x1xi1>, vector<128x1xf32>
    %c8_i32 = arith.constant 8 : i32
    %93 = vector.broadcast %c8_i32 : i32 to vector<128x1xi32>
    %94 = arith.cmpi slt, %9, %93 : vector<128x1xi32>
    %95 = vector.broadcast %35 : f32 to vector<128x1xf32>
    %96 = arith.select %94, %95, %92 : vector<128x1xi1>, vector<128x1xf32>
    %97 = vector.broadcast %96 : vector<128x1xf32> to vector<128x128xf32>
    %98 = arith.mulf %14, %97 : vector<128x128xf32>
    %cst_30 = arith.constant -1.000000e+30 : f32
    %99 = vector.shape_cast %8 : vector<1x128xi1> to vector<1x128xi1>
    %100 = vector.broadcast %99 : vector<1x128xi1> to vector<128x128xi1>
    %101 = vector.broadcast %cst_30 : f32 to vector<128x128xf32>
    %102 = arith.select %100, %98, %101 : vector<128x128xi1>, vector<128x128xf32>
    %cst_31 = arith.constant dense<0xFF800000> : vector<128xf32>
    %103 = vector.multi_reduction <maximumf>, %102, %cst_31 [1] : vector<128x128xf32> to vector<128xf32>
    %104 = vector.shape_cast %103 : vector<128xf32> to vector<128x1xf32>
    %105 = vector.broadcast %104 : vector<128x1xf32> to vector<128x128xf32>
    %106 = arith.subf %102, %105 : vector<128x128xf32>
    %107 = math.exp %106 : vector<128x128xf32>
    %cst_32 = arith.constant dense<0.000000e+00> : vector<128xf32>
    %108 = vector.multi_reduction <add>, %107, %cst_32 [1] : vector<128x128xf32> to vector<128xf32>
    %109 = vector.shape_cast %108 : vector<128xf32> to vector<128x1xf32>
    %110 = tpu.reciprocal %109 {approx = true} : vector<128x1xf32> -> vector<128x1xf32>
    %111 = vector.broadcast %110 : vector<128x1xf32> to vector<128x128xf32>
    %112 = arith.mulf %107, %111 : vector<128x128xf32>
    %113 = arith.truncf %112 : vector<128x128xf32> to vector<128x128xbf16>
    %cst_33 = arith.constant dense<0.000000e+00> : vector<128x16xf32>
    %114 = tpu.matmul %113, %13, %cst_33 {dimension_numbers = #tpu.dot_dimension_numbers<[1], [1], [0], [0], [0, 0, 1, 0], [], []>} : vector<128x128xbf16>, vector<16x128xbf16>, vector<128x16xf32> -> vector<128x16xf32>
    %115 = arith.addf %10, %114 : vector<128x16xf32>
    %116 = vector.extract_strided_slice %4 {offsets = [0, 384], sizes = [16, 128], strides = [1, 1]} : vector<16x1536xbf16> to vector<16x128xbf16>
    %117 = vector.extract_strided_slice %4 {offsets = [0, 512], sizes = [16, 128], strides = [1, 1]} : vector<16x1536xbf16> to vector<16x128xbf16>
    %118 = vector.extract_strided_slice %4 {offsets = [0, 640], sizes = [16, 128], strides = [1, 1]} : vector<16x1536xbf16> to vector<16x128xbf16>
    %cst_34 = arith.constant dense<0.000000e+00> : vector<128x128xf32>
    %119 = tpu.matmul %116, %117, %cst_34 {dimension_numbers = #tpu.dot_dimension_numbers<[0], [0], [1], [1], [0, 1, 1, 1], [], []>} : vector<16x128xbf16>, vector<16x128xbf16>, vector<128x128xf32> -> vector<128x128xf32>
    %cst_35 = arith.constant dense<0.000000e+00> : vector<128xf32>
    %120 = vector.multi_reduction <add>, %119, %cst_35 [1] : vector<128x128xf32> to vector<128xf32>
    %121 = vector.shape_cast %120 : vector<128xf32> to vector<128x1xf32>
    %122 = arith.mulf %119, %119 : vector<128x128xf32>
    %cst_36 = arith.constant dense<0.000000e+00> : vector<128xf32>
    %123 = vector.multi_reduction <add>, %122, %cst_36 [1] : vector<128x128xf32> to vector<128xf32>
    %124 = vector.shape_cast %123 : vector<128xf32> to vector<128x1xf32>
    %125 = vector.extract_strided_slice %121 {offsets = [0, 0], sizes = [8, 1], strides = [1, 1]} : vector<128x1xf32> to vector<8x1xf32>
    %126 = vector.shape_cast %125 : vector<8x1xf32> to vector<1x8x1xf32>
    %cst_37 = arith.constant dense<0.000000e+00> : vector<1xf32>
    %127 = vector.multi_reduction <add>, %126, %cst_37 [1, 2] : vector<1x8x1xf32> to vector<1xf32>
    %128 = vector.shape_cast %127 : vector<1xf32> to vector<1x1x1xf32>
    %129 = vector.extract %128[0, 0, 0] : f32 from vector<1x1x1xf32>
    %130 = vector.extract_strided_slice %124 {offsets = [0, 0], sizes = [8, 1], strides = [1, 1]} : vector<128x1xf32> to vector<8x1xf32>
    %131 = vector.shape_cast %130 : vector<8x1xf32> to vector<1x8x1xf32>
    %cst_38 = arith.constant dense<0.000000e+00> : vector<1xf32>
    %132 = vector.multi_reduction <add>, %131, %cst_38 [1, 2] : vector<1x8x1xf32> to vector<1xf32>
    %133 = vector.shape_cast %132 : vector<1xf32> to vector<1x1x1xf32>
    %134 = vector.extract %133[0, 0, 0] : f32 from vector<1x1x1xf32>
    %cst_39 = arith.constant 1.562500e-03 : f32
    %135 = arith.mulf %129, %cst_39 : f32
    %cst_40 = arith.constant 1.562500e-03 : f32
    %136 = arith.mulf %134, %cst_40 : f32
    %137 = arith.mulf %135, %135 : f32
    %138 = arith.subf %136, %137 : f32
    %cst_41 = arith.constant 9.99999974E-6 : f32
    %139 = arith.addf %138, %cst_41 : f32
    %140 = math.rsqrt %139 : f32
    %141 = vector.extract_strided_slice %121 {offsets = [8, 0], sizes = [16, 1], strides = [1, 1]} : vector<128x1xf32> to vector<16x1xf32>
    %142 = vector.shape_cast %141 : vector<16x1xf32> to vector<1x16x1xf32>
    %cst_42 = arith.constant dense<0.000000e+00> : vector<1xf32>
    %143 = vector.multi_reduction <add>, %142, %cst_42 [1, 2] : vector<1x16x1xf32> to vector<1xf32>
    %144 = vector.shape_cast %143 : vector<1xf32> to vector<1x1x1xf32>
    %145 = vector.extract %144[0, 0, 0] : f32 from vector<1x1x1xf32>
    %146 = vector.extract_strided_slice %124 {offsets = [8, 0], sizes = [16, 1], strides = [1, 1]} : vector<128x1xf32> to vector<16x1xf32>
    %147 = vector.shape_cast %146 : vector<16x1xf32> to vector<1x16x1xf32>
    %cst_43 = arith.constant dense<0.000000e+00> : vector<1xf32>
    %148 = vector.multi_reduction <add>, %147, %cst_43 [1, 2] : vector<1x16x1xf32> to vector<1xf32>
    %149 = vector.shape_cast %148 : vector<1xf32> to vector<1x1x1xf32>
    %150 = vector.extract %149[0, 0, 0] : f32 from vector<1x1x1xf32>
    %cst_44 = arith.constant 7.812500e-04 : f32
    %151 = arith.mulf %145, %cst_44 : f32
    %cst_45 = arith.constant 7.812500e-04 : f32
    %152 = arith.mulf %150, %cst_45 : f32
    %153 = arith.mulf %151, %151 : f32
    %154 = arith.subf %152, %153 : f32
    %cst_46 = arith.constant 9.99999974E-6 : f32
    %155 = arith.addf %154, %cst_46 : f32
    %156 = math.rsqrt %155 : f32
    %157 = vector.extract_strided_slice %121 {offsets = [24, 0], sizes = [24, 1], strides = [1, 1]} : vector<128x1xf32> to vector<24x1xf32>
    %158 = vector.shape_cast %157 : vector<24x1xf32> to vector<1x24x1xf32>
    %cst_47 = arith.constant dense<0.000000e+00> : vector<1xf32>
    %159 = vector.multi_reduction <add>, %158, %cst_47 [1, 2] : vector<1x24x1xf32> to vector<1xf32>
    %160 = vector.shape_cast %159 : vector<1xf32> to vector<1x1x1xf32>
    %161 = vector.extract %160[0, 0, 0] : f32 from vector<1x1x1xf32>
    %162 = vector.extract_strided_slice %124 {offsets = [24, 0], sizes = [24, 1], strides = [1, 1]} : vector<128x1xf32> to vector<24x1xf32>
    %163 = vector.shape_cast %162 : vector<24x1xf32> to vector<1x24x1xf32>
    %cst_48 = arith.constant dense<0.000000e+00> : vector<1xf32>
    %164 = vector.multi_reduction <add>, %163, %cst_48 [1, 2] : vector<1x24x1xf32> to vector<1xf32>
    %165 = vector.shape_cast %164 : vector<1xf32> to vector<1x1x1xf32>
    %166 = vector.extract %165[0, 0, 0] : f32 from vector<1x1x1xf32>
    %cst_49 = arith.constant 5.2083336E-4 : f32
    %167 = arith.mulf %161, %cst_49 : f32
    %cst_50 = arith.constant 5.2083336E-4 : f32
    %168 = arith.mulf %166, %cst_50 : f32
    %169 = arith.mulf %167, %167 : f32
    %170 = arith.subf %168, %169 : f32
    %cst_51 = arith.constant 9.99999974E-6 : f32
    %171 = arith.addf %170, %cst_51 : f32
    %172 = math.rsqrt %171 : f32
    %173 = vector.extract_strided_slice %121 {offsets = [48, 0], sizes = [32, 1], strides = [1, 1]} : vector<128x1xf32> to vector<32x1xf32>
    %174 = vector.shape_cast %173 : vector<32x1xf32> to vector<1x32x1xf32>
    %cst_52 = arith.constant dense<0.000000e+00> : vector<1xf32>
    %175 = vector.multi_reduction <add>, %174, %cst_52 [1, 2] : vector<1x32x1xf32> to vector<1xf32>
    %176 = vector.shape_cast %175 : vector<1xf32> to vector<1x1x1xf32>
    %177 = vector.extract %176[0, 0, 0] : f32 from vector<1x1x1xf32>
    %178 = vector.extract_strided_slice %124 {offsets = [48, 0], sizes = [32, 1], strides = [1, 1]} : vector<128x1xf32> to vector<32x1xf32>
    %179 = vector.shape_cast %178 : vector<32x1xf32> to vector<1x32x1xf32>
    %cst_53 = arith.constant dense<0.000000e+00> : vector<1xf32>
    %180 = vector.multi_reduction <add>, %179, %cst_53 [1, 2] : vector<1x32x1xf32> to vector<1xf32>
    %181 = vector.shape_cast %180 : vector<1xf32> to vector<1x1x1xf32>
    %182 = vector.extract %181[0, 0, 0] : f32 from vector<1x1x1xf32>
    %cst_54 = arith.constant 3.906250e-04 : f32
    %183 = arith.mulf %177, %cst_54 : f32
    %cst_55 = arith.constant 3.906250e-04 : f32
    %184 = arith.mulf %182, %cst_55 : f32
    %185 = arith.mulf %183, %183 : f32
    %186 = arith.subf %184, %185 : f32
    %cst_56 = arith.constant 9.99999974E-6 : f32
    %187 = arith.addf %186, %cst_56 : f32
    %188 = math.rsqrt %187 : f32
    %189 = vector.broadcast %188 : f32 to vector<128x1xf32>
    %c48_i32_57 = arith.constant 48 : i32
    %190 = vector.broadcast %c48_i32_57 : i32 to vector<128x1xi32>
    %191 = arith.cmpi slt, %9, %190 : vector<128x1xi32>
    %192 = vector.broadcast %172 : f32 to vector<128x1xf32>
    %193 = arith.select %191, %192, %189 : vector<128x1xi1>, vector<128x1xf32>
    %c24_i32_58 = arith.constant 24 : i32
    %194 = vector.broadcast %c24_i32_58 : i32 to vector<128x1xi32>
    %195 = arith.cmpi slt, %9, %194 : vector<128x1xi32>
    %196 = vector.broadcast %156 : f32 to vector<128x1xf32>
    %197 = arith.select %195, %196, %193 : vector<128x1xi1>, vector<128x1xf32>
    %c8_i32_59 = arith.constant 8 : i32
    %198 = vector.broadcast %c8_i32_59 : i32 to vector<128x1xi32>
    %199 = arith.cmpi slt, %9, %198 : vector<128x1xi32>
    %200 = vector.broadcast %140 : f32 to vector<128x1xf32>
    %201 = arith.select %199, %200, %197 : vector<128x1xi1>, vector<128x1xf32>
    %202 = vector.broadcast %201 : vector<128x1xf32> to vector<128x128xf32>
    %203 = arith.mulf %119, %202 : vector<128x128xf32>
    %cst_60 = arith.constant -1.000000e+30 : f32
    %204 = vector.shape_cast %8 : vector<1x128xi1> to vector<1x128xi1>
    %205 = vector.broadcast %204 : vector<1x128xi1> to vector<128x128xi1>
    %206 = vector.broadcast %cst_60 : f32 to vector<128x128xf32>
    %207 = arith.select %205, %203, %206 : vector<128x128xi1>, vector<128x128xf32>
    %cst_61 = arith.constant dense<0xFF800000> : vector<128xf32>
    %208 = vector.multi_reduction <maximumf>, %207, %cst_61 [1] : vector<128x128xf32> to vector<128xf32>
    %209 = vector.shape_cast %208 : vector<128xf32> to vector<128x1xf32>
    %210 = vector.broadcast %209 : vector<128x1xf32> to vector<128x128xf32>
    %211 = arith.subf %207, %210 : vector<128x128xf32>
    %212 = math.exp %211 : vector<128x128xf32>
    %cst_62 = arith.constant dense<0.000000e+00> : vector<128xf32>
    %213 = vector.multi_reduction <add>, %212, %cst_62 [1] : vector<128x128xf32> to vector<128xf32>
    %214 = vector.shape_cast %213 : vector<128xf32> to vector<128x1xf32>
    %215 = tpu.reciprocal %214 {approx = true} : vector<128x1xf32> -> vector<128x1xf32>
    %216 = vector.broadcast %215 : vector<128x1xf32> to vector<128x128xf32>
    %217 = arith.mulf %212, %216 : vector<128x128xf32>
    %218 = arith.truncf %217 : vector<128x128xf32> to vector<128x128xbf16>
    %cst_63 = arith.constant dense<0.000000e+00> : vector<128x16xf32>
    %219 = tpu.matmul %218, %118, %cst_63 {dimension_numbers = #tpu.dot_dimension_numbers<[1], [1], [0], [0], [0, 0, 1, 0], [], []>} : vector<128x128xbf16>, vector<16x128xbf16>, vector<128x16xf32> -> vector<128x16xf32>
    %220 = arith.addf %115, %219 : vector<128x16xf32>
    %221 = vector.extract_strided_slice %4 {offsets = [0, 768], sizes = [16, 128], strides = [1, 1]} : vector<16x1536xbf16> to vector<16x128xbf16>
    %222 = vector.extract_strided_slice %4 {offsets = [0, 896], sizes = [16, 128], strides = [1, 1]} : vector<16x1536xbf16> to vector<16x128xbf16>
    %223 = vector.extract_strided_slice %4 {offsets = [0, 1024], sizes = [16, 128], strides = [1, 1]} : vector<16x1536xbf16> to vector<16x128xbf16>
    %cst_64 = arith.constant dense<0.000000e+00> : vector<128x128xf32>
    %224 = tpu.matmul %221, %222, %cst_64 {dimension_numbers = #tpu.dot_dimension_numbers<[0], [0], [1], [1], [0, 1, 1, 1], [], []>} : vector<16x128xbf16>, vector<16x128xbf16>, vector<128x128xf32> -> vector<128x128xf32>
    %cst_65 = arith.constant dense<0.000000e+00> : vector<128xf32>
    %225 = vector.multi_reduction <add>, %224, %cst_65 [1] : vector<128x128xf32> to vector<128xf32>
    %226 = vector.shape_cast %225 : vector<128xf32> to vector<128x1xf32>
    %227 = arith.mulf %224, %224 : vector<128x128xf32>
    %cst_66 = arith.constant dense<0.000000e+00> : vector<128xf32>
    %228 = vector.multi_reduction <add>, %227, %cst_66 [1] : vector<128x128xf32> to vector<128xf32>
    %229 = vector.shape_cast %228 : vector<128xf32> to vector<128x1xf32>
    %230 = vector.extract_strided_slice %226 {offsets = [0, 0], sizes = [8, 1], strides = [1, 1]} : vector<128x1xf32> to vector<8x1xf32>
    %231 = vector.shape_cast %230 : vector<8x1xf32> to vector<1x8x1xf32>
    %cst_67 = arith.constant dense<0.000000e+00> : vector<1xf32>
    %232 = vector.multi_reduction <add>, %231, %cst_67 [1, 2] : vector<1x8x1xf32> to vector<1xf32>
    %233 = vector.shape_cast %232 : vector<1xf32> to vector<1x1x1xf32>
    %234 = vector.extract %233[0, 0, 0] : f32 from vector<1x1x1xf32>
    %235 = vector.extract_strided_slice %229 {offsets = [0, 0], sizes = [8, 1], strides = [1, 1]} : vector<128x1xf32> to vector<8x1xf32>
    %236 = vector.shape_cast %235 : vector<8x1xf32> to vector<1x8x1xf32>
    %cst_68 = arith.constant dense<0.000000e+00> : vector<1xf32>
    %237 = vector.multi_reduction <add>, %236, %cst_68 [1, 2] : vector<1x8x1xf32> to vector<1xf32>
    %238 = vector.shape_cast %237 : vector<1xf32> to vector<1x1x1xf32>
    %239 = vector.extract %238[0, 0, 0] : f32 from vector<1x1x1xf32>
    %cst_69 = arith.constant 1.562500e-03 : f32
    %240 = arith.mulf %234, %cst_69 : f32
    %cst_70 = arith.constant 1.562500e-03 : f32
    %241 = arith.mulf %239, %cst_70 : f32
    %242 = arith.mulf %240, %240 : f32
    %243 = arith.subf %241, %242 : f32
    %cst_71 = arith.constant 9.99999974E-6 : f32
    %244 = arith.addf %243, %cst_71 : f32
    %245 = math.rsqrt %244 : f32
    %246 = vector.extract_strided_slice %226 {offsets = [8, 0], sizes = [16, 1], strides = [1, 1]} : vector<128x1xf32> to vector<16x1xf32>
    %247 = vector.shape_cast %246 : vector<16x1xf32> to vector<1x16x1xf32>
    %cst_72 = arith.constant dense<0.000000e+00> : vector<1xf32>
    %248 = vector.multi_reduction <add>, %247, %cst_72 [1, 2] : vector<1x16x1xf32> to vector<1xf32>
    %249 = vector.shape_cast %248 : vector<1xf32> to vector<1x1x1xf32>
    %250 = vector.extract %249[0, 0, 0] : f32 from vector<1x1x1xf32>
    %251 = vector.extract_strided_slice %229 {offsets = [8, 0], sizes = [16, 1], strides = [1, 1]} : vector<128x1xf32> to vector<16x1xf32>
    %252 = vector.shape_cast %251 : vector<16x1xf32> to vector<1x16x1xf32>
    %cst_73 = arith.constant dense<0.000000e+00> : vector<1xf32>
    %253 = vector.multi_reduction <add>, %252, %cst_73 [1, 2] : vector<1x16x1xf32> to vector<1xf32>
    %254 = vector.shape_cast %253 : vector<1xf32> to vector<1x1x1xf32>
    %255 = vector.extract %254[0, 0, 0] : f32 from vector<1x1x1xf32>
    %cst_74 = arith.constant 7.812500e-04 : f32
    %256 = arith.mulf %250, %cst_74 : f32
    %cst_75 = arith.constant 7.812500e-04 : f32
    %257 = arith.mulf %255, %cst_75 : f32
    %258 = arith.mulf %256, %256 : f32
    %259 = arith.subf %257, %258 : f32
    %cst_76 = arith.constant 9.99999974E-6 : f32
    %260 = arith.addf %259, %cst_76 : f32
    %261 = math.rsqrt %260 : f32
    %262 = vector.extract_strided_slice %226 {offsets = [24, 0], sizes = [24, 1], strides = [1, 1]} : vector<128x1xf32> to vector<24x1xf32>
    %263 = vector.shape_cast %262 : vector<24x1xf32> to vector<1x24x1xf32>
    %cst_77 = arith.constant dense<0.000000e+00> : vector<1xf32>
    %264 = vector.multi_reduction <add>, %263, %cst_77 [1, 2] : vector<1x24x1xf32> to vector<1xf32>
    %265 = vector.shape_cast %264 : vector<1xf32> to vector<1x1x1xf32>
    %266 = vector.extract %265[0, 0, 0] : f32 from vector<1x1x1xf32>
    %267 = vector.extract_strided_slice %229 {offsets = [24, 0], sizes = [24, 1], strides = [1, 1]} : vector<128x1xf32> to vector<24x1xf32>
    %268 = vector.shape_cast %267 : vector<24x1xf32> to vector<1x24x1xf32>
    %cst_78 = arith.constant dense<0.000000e+00> : vector<1xf32>
    %269 = vector.multi_reduction <add>, %268, %cst_78 [1, 2] : vector<1x24x1xf32> to vector<1xf32>
    %270 = vector.shape_cast %269 : vector<1xf32> to vector<1x1x1xf32>
    %271 = vector.extract %270[0, 0, 0] : f32 from vector<1x1x1xf32>
    %cst_79 = arith.constant 5.2083336E-4 : f32
    %272 = arith.mulf %266, %cst_79 : f32
    %cst_80 = arith.constant 5.2083336E-4 : f32
    %273 = arith.mulf %271, %cst_80 : f32
    %274 = arith.mulf %272, %272 : f32
    %275 = arith.subf %273, %274 : f32
    %cst_81 = arith.constant 9.99999974E-6 : f32
    %276 = arith.addf %275, %cst_81 : f32
    %277 = math.rsqrt %276 : f32
    %278 = vector.extract_strided_slice %226 {offsets = [48, 0], sizes = [32, 1], strides = [1, 1]} : vector<128x1xf32> to vector<32x1xf32>
    %279 = vector.shape_cast %278 : vector<32x1xf32> to vector<1x32x1xf32>
    %cst_82 = arith.constant dense<0.000000e+00> : vector<1xf32>
    %280 = vector.multi_reduction <add>, %279, %cst_82 [1, 2] : vector<1x32x1xf32> to vector<1xf32>
    %281 = vector.shape_cast %280 : vector<1xf32> to vector<1x1x1xf32>
    %282 = vector.extract %281[0, 0, 0] : f32 from vector<1x1x1xf32>
    %283 = vector.extract_strided_slice %229 {offsets = [48, 0], sizes = [32, 1], strides = [1, 1]} : vector<128x1xf32> to vector<32x1xf32>
    %284 = vector.shape_cast %283 : vector<32x1xf32> to vector<1x32x1xf32>
    %cst_83 = arith.constant dense<0.000000e+00> : vector<1xf32>
    %285 = vector.multi_reduction <add>, %284, %cst_83 [1, 2] : vector<1x32x1xf32> to vector<1xf32>
    %286 = vector.shape_cast %285 : vector<1xf32> to vector<1x1x1xf32>
    %287 = vector.extract %286[0, 0, 0] : f32 from vector<1x1x1xf32>
    %cst_84 = arith.constant 3.906250e-04 : f32
    %288 = arith.mulf %282, %cst_84 : f32
    %cst_85 = arith.constant 3.906250e-04 : f32
    %289 = arith.mulf %287, %cst_85 : f32
    %290 = arith.mulf %288, %288 : f32
    %291 = arith.subf %289, %290 : f32
    %cst_86 = arith.constant 9.99999974E-6 : f32
    %292 = arith.addf %291, %cst_86 : f32
    %293 = math.rsqrt %292 : f32
    %294 = vector.broadcast %293 : f32 to vector<128x1xf32>
    %c48_i32_87 = arith.constant 48 : i32
    %295 = vector.broadcast %c48_i32_87 : i32 to vector<128x1xi32>
    %296 = arith.cmpi slt, %9, %295 : vector<128x1xi32>
    %297 = vector.broadcast %277 : f32 to vector<128x1xf32>
    %298 = arith.select %296, %297, %294 : vector<128x1xi1>, vector<128x1xf32>
    %c24_i32_88 = arith.constant 24 : i32
    %299 = vector.broadcast %c24_i32_88 : i32 to vector<128x1xi32>
    %300 = arith.cmpi slt, %9, %299 : vector<128x1xi32>
    %301 = vector.broadcast %261 : f32 to vector<128x1xf32>
    %302 = arith.select %300, %301, %298 : vector<128x1xi1>, vector<128x1xf32>
    %c8_i32_89 = arith.constant 8 : i32
    %303 = vector.broadcast %c8_i32_89 : i32 to vector<128x1xi32>
    %304 = arith.cmpi slt, %9, %303 : vector<128x1xi32>
    %305 = vector.broadcast %245 : f32 to vector<128x1xf32>
    %306 = arith.select %304, %305, %302 : vector<128x1xi1>, vector<128x1xf32>
    %307 = vector.broadcast %306 : vector<128x1xf32> to vector<128x128xf32>
    %308 = arith.mulf %224, %307 : vector<128x128xf32>
    %cst_90 = arith.constant -1.000000e+30 : f32
    %309 = vector.shape_cast %8 : vector<1x128xi1> to vector<1x128xi1>
    %310 = vector.broadcast %309 : vector<1x128xi1> to vector<128x128xi1>
    %311 = vector.broadcast %cst_90 : f32 to vector<128x128xf32>
    %312 = arith.select %310, %308, %311 : vector<128x128xi1>, vector<128x128xf32>
    %cst_91 = arith.constant dense<0xFF800000> : vector<128xf32>
    %313 = vector.multi_reduction <maximumf>, %312, %cst_91 [1] : vector<128x128xf32> to vector<128xf32>
    %314 = vector.shape_cast %313 : vector<128xf32> to vector<128x1xf32>
    %315 = vector.broadcast %314 : vector<128x1xf32> to vector<128x128xf32>
    %316 = arith.subf %312, %315 : vector<128x128xf32>
    %317 = math.exp %316 : vector<128x128xf32>
    %cst_92 = arith.constant dense<0.000000e+00> : vector<128xf32>
    %318 = vector.multi_reduction <add>, %317, %cst_92 [1] : vector<128x128xf32> to vector<128xf32>
    %319 = vector.shape_cast %318 : vector<128xf32> to vector<128x1xf32>
    %320 = tpu.reciprocal %319 {approx = true} : vector<128x1xf32> -> vector<128x1xf32>
    %321 = vector.broadcast %320 : vector<128x1xf32> to vector<128x128xf32>
    %322 = arith.mulf %317, %321 : vector<128x128xf32>
    %323 = arith.truncf %322 : vector<128x128xf32> to vector<128x128xbf16>
    %cst_93 = arith.constant dense<0.000000e+00> : vector<128x16xf32>
    %324 = tpu.matmul %323, %223, %cst_93 {dimension_numbers = #tpu.dot_dimension_numbers<[1], [1], [0], [0], [0, 0, 1, 0], [], []>} : vector<128x128xbf16>, vector<16x128xbf16>, vector<128x16xf32> -> vector<128x16xf32>
    %325 = arith.addf %220, %324 : vector<128x16xf32>
    %326 = vector.extract_strided_slice %4 {offsets = [0, 1152], sizes = [16, 128], strides = [1, 1]} : vector<16x1536xbf16> to vector<16x128xbf16>
    %327 = vector.extract_strided_slice %4 {offsets = [0, 1280], sizes = [16, 128], strides = [1, 1]} : vector<16x1536xbf16> to vector<16x128xbf16>
    %328 = vector.extract_strided_slice %4 {offsets = [0, 1408], sizes = [16, 128], strides = [1, 1]} : vector<16x1536xbf16> to vector<16x128xbf16>
    %cst_94 = arith.constant dense<0.000000e+00> : vector<128x128xf32>
    %329 = tpu.matmul %326, %327, %cst_94 {dimension_numbers = #tpu.dot_dimension_numbers<[0], [0], [1], [1], [0, 1, 1, 1], [], []>} : vector<16x128xbf16>, vector<16x128xbf16>, vector<128x128xf32> -> vector<128x128xf32>
    %cst_95 = arith.constant dense<0.000000e+00> : vector<128xf32>
    %330 = vector.multi_reduction <add>, %329, %cst_95 [1] : vector<128x128xf32> to vector<128xf32>
    %331 = vector.shape_cast %330 : vector<128xf32> to vector<128x1xf32>
    %332 = arith.mulf %329, %329 : vector<128x128xf32>
    %cst_96 = arith.constant dense<0.000000e+00> : vector<128xf32>
    %333 = vector.multi_reduction <add>, %332, %cst_96 [1] : vector<128x128xf32> to vector<128xf32>
    %334 = vector.shape_cast %333 : vector<128xf32> to vector<128x1xf32>
    %335 = vector.extract_strided_slice %331 {offsets = [0, 0], sizes = [8, 1], strides = [1, 1]} : vector<128x1xf32> to vector<8x1xf32>
    %336 = vector.shape_cast %335 : vector<8x1xf32> to vector<1x8x1xf32>
    %cst_97 = arith.constant dense<0.000000e+00> : vector<1xf32>
    %337 = vector.multi_reduction <add>, %336, %cst_97 [1, 2] : vector<1x8x1xf32> to vector<1xf32>
    %338 = vector.shape_cast %337 : vector<1xf32> to vector<1x1x1xf32>
    %339 = vector.extract %338[0, 0, 0] : f32 from vector<1x1x1xf32>
    %340 = vector.extract_strided_slice %334 {offsets = [0, 0], sizes = [8, 1], strides = [1, 1]} : vector<128x1xf32> to vector<8x1xf32>
    %341 = vector.shape_cast %340 : vector<8x1xf32> to vector<1x8x1xf32>
    %cst_98 = arith.constant dense<0.000000e+00> : vector<1xf32>
    %342 = vector.multi_reduction <add>, %341, %cst_98 [1, 2] : vector<1x8x1xf32> to vector<1xf32>
    %343 = vector.shape_cast %342 : vector<1xf32> to vector<1x1x1xf32>
    %344 = vector.extract %343[0, 0, 0] : f32 from vector<1x1x1xf32>
    %cst_99 = arith.constant 1.562500e-03 : f32
    %345 = arith.mulf %339, %cst_99 : f32
    %cst_100 = arith.constant 1.562500e-03 : f32
    %346 = arith.mulf %344, %cst_100 : f32
    %347 = arith.mulf %345, %345 : f32
    %348 = arith.subf %346, %347 : f32
    %cst_101 = arith.constant 9.99999974E-6 : f32
    %349 = arith.addf %348, %cst_101 : f32
    %350 = math.rsqrt %349 : f32
    %351 = vector.extract_strided_slice %331 {offsets = [8, 0], sizes = [16, 1], strides = [1, 1]} : vector<128x1xf32> to vector<16x1xf32>
    %352 = vector.shape_cast %351 : vector<16x1xf32> to vector<1x16x1xf32>
    %cst_102 = arith.constant dense<0.000000e+00> : vector<1xf32>
    %353 = vector.multi_reduction <add>, %352, %cst_102 [1, 2] : vector<1x16x1xf32> to vector<1xf32>
    %354 = vector.shape_cast %353 : vector<1xf32> to vector<1x1x1xf32>
    %355 = vector.extract %354[0, 0, 0] : f32 from vector<1x1x1xf32>
    %356 = vector.extract_strided_slice %334 {offsets = [8, 0], sizes = [16, 1], strides = [1, 1]} : vector<128x1xf32> to vector<16x1xf32>
    %357 = vector.shape_cast %356 : vector<16x1xf32> to vector<1x16x1xf32>
    %cst_103 = arith.constant dense<0.000000e+00> : vector<1xf32>
    %358 = vector.multi_reduction <add>, %357, %cst_103 [1, 2] : vector<1x16x1xf32> to vector<1xf32>
    %359 = vector.shape_cast %358 : vector<1xf32> to vector<1x1x1xf32>
    %360 = vector.extract %359[0, 0, 0] : f32 from vector<1x1x1xf32>
    %cst_104 = arith.constant 7.812500e-04 : f32
    %361 = arith.mulf %355, %cst_104 : f32
    %cst_105 = arith.constant 7.812500e-04 : f32
    %362 = arith.mulf %360, %cst_105 : f32
    %363 = arith.mulf %361, %361 : f32
    %364 = arith.subf %362, %363 : f32
    %cst_106 = arith.constant 9.99999974E-6 : f32
    %365 = arith.addf %364, %cst_106 : f32
    %366 = math.rsqrt %365 : f32
    %367 = vector.extract_strided_slice %331 {offsets = [24, 0], sizes = [24, 1], strides = [1, 1]} : vector<128x1xf32> to vector<24x1xf32>
    %368 = vector.shape_cast %367 : vector<24x1xf32> to vector<1x24x1xf32>
    %cst_107 = arith.constant dense<0.000000e+00> : vector<1xf32>
    %369 = vector.multi_reduction <add>, %368, %cst_107 [1, 2] : vector<1x24x1xf32> to vector<1xf32>
    %370 = vector.shape_cast %369 : vector<1xf32> to vector<1x1x1xf32>
    %371 = vector.extract %370[0, 0, 0] : f32 from vector<1x1x1xf32>
    %372 = vector.extract_strided_slice %334 {offsets = [24, 0], sizes = [24, 1], strides = [1, 1]} : vector<128x1xf32> to vector<24x1xf32>
    %373 = vector.shape_cast %372 : vector<24x1xf32> to vector<1x24x1xf32>
    %cst_108 = arith.constant dense<0.000000e+00> : vector<1xf32>
    %374 = vector.multi_reduction <add>, %373, %cst_108 [1, 2] : vector<1x24x1xf32> to vector<1xf32>
    %375 = vector.shape_cast %374 : vector<1xf32> to vector<1x1x1xf32>
    %376 = vector.extract %375[0, 0, 0] : f32 from vector<1x1x1xf32>
    %cst_109 = arith.constant 5.2083336E-4 : f32
    %377 = arith.mulf %371, %cst_109 : f32
    %cst_110 = arith.constant 5.2083336E-4 : f32
    %378 = arith.mulf %376, %cst_110 : f32
    %379 = arith.mulf %377, %377 : f32
    %380 = arith.subf %378, %379 : f32
    %cst_111 = arith.constant 9.99999974E-6 : f32
    %381 = arith.addf %380, %cst_111 : f32
    %382 = math.rsqrt %381 : f32
    %383 = vector.extract_strided_slice %331 {offsets = [48, 0], sizes = [32, 1], strides = [1, 1]} : vector<128x1xf32> to vector<32x1xf32>
    %384 = vector.shape_cast %383 : vector<32x1xf32> to vector<1x32x1xf32>
    %cst_112 = arith.constant dense<0.000000e+00> : vector<1xf32>
    %385 = vector.multi_reduction <add>, %384, %cst_112 [1, 2] : vector<1x32x1xf32> to vector<1xf32>
    %386 = vector.shape_cast %385 : vector<1xf32> to vector<1x1x1xf32>
    %387 = vector.extract %386[0, 0, 0] : f32 from vector<1x1x1xf32>
    %388 = vector.extract_strided_slice %334 {offsets = [48, 0], sizes = [32, 1], strides = [1, 1]} : vector<128x1xf32> to vector<32x1xf32>
    %389 = vector.shape_cast %388 : vector<32x1xf32> to vector<1x32x1xf32>
    %cst_113 = arith.constant dense<0.000000e+00> : vector<1xf32>
    %390 = vector.multi_reduction <add>, %389, %cst_113 [1, 2] : vector<1x32x1xf32> to vector<1xf32>
    %391 = vector.shape_cast %390 : vector<1xf32> to vector<1x1x1xf32>
    %392 = vector.extract %391[0, 0, 0] : f32 from vector<1x1x1xf32>
    %cst_114 = arith.constant 3.906250e-04 : f32
    %393 = arith.mulf %387, %cst_114 : f32
    %cst_115 = arith.constant 3.906250e-04 : f32
    %394 = arith.mulf %392, %cst_115 : f32
    %395 = arith.mulf %393, %393 : f32
    %396 = arith.subf %394, %395 : f32
    %cst_116 = arith.constant 9.99999974E-6 : f32
    %397 = arith.addf %396, %cst_116 : f32
    %398 = math.rsqrt %397 : f32
    %399 = vector.broadcast %398 : f32 to vector<128x1xf32>
    %c48_i32_117 = arith.constant 48 : i32
    %400 = vector.broadcast %c48_i32_117 : i32 to vector<128x1xi32>
    %401 = arith.cmpi slt, %9, %400 : vector<128x1xi32>
    %402 = vector.broadcast %382 : f32 to vector<128x1xf32>
    %403 = arith.select %401, %402, %399 : vector<128x1xi1>, vector<128x1xf32>
    %c24_i32_118 = arith.constant 24 : i32
    %404 = vector.broadcast %c24_i32_118 : i32 to vector<128x1xi32>
    %405 = arith.cmpi slt, %9, %404 : vector<128x1xi32>
    %406 = vector.broadcast %366 : f32 to vector<128x1xf32>
    %407 = arith.select %405, %406, %403 : vector<128x1xi1>, vector<128x1xf32>
    %c8_i32_119 = arith.constant 8 : i32
    %408 = vector.broadcast %c8_i32_119 : i32 to vector<128x1xi32>
    %409 = arith.cmpi slt, %9, %408 : vector<128x1xi32>
    %410 = vector.broadcast %350 : f32 to vector<128x1xf32>
    %411 = arith.select %409, %410, %407 : vector<128x1xi1>, vector<128x1xf32>
    %412 = vector.broadcast %411 : vector<128x1xf32> to vector<128x128xf32>
    %413 = arith.mulf %329, %412 : vector<128x128xf32>
    %cst_120 = arith.constant -1.000000e+30 : f32
    %414 = vector.shape_cast %8 : vector<1x128xi1> to vector<1x128xi1>
    %415 = vector.broadcast %414 : vector<1x128xi1> to vector<128x128xi1>
    %416 = vector.broadcast %cst_120 : f32 to vector<128x128xf32>
    %417 = arith.select %415, %413, %416 : vector<128x128xi1>, vector<128x128xf32>
    %cst_121 = arith.constant dense<0xFF800000> : vector<128xf32>
    %418 = vector.multi_reduction <maximumf>, %417, %cst_121 [1] : vector<128x128xf32> to vector<128xf32>
    %419 = vector.shape_cast %418 : vector<128xf32> to vector<128x1xf32>
    %420 = vector.broadcast %419 : vector<128x1xf32> to vector<128x128xf32>
    %421 = arith.subf %417, %420 : vector<128x128xf32>
    %422 = math.exp %421 : vector<128x128xf32>
    %cst_122 = arith.constant dense<0.000000e+00> : vector<128xf32>
    %423 = vector.multi_reduction <add>, %422, %cst_122 [1] : vector<128x128xf32> to vector<128xf32>
    %424 = vector.shape_cast %423 : vector<128xf32> to vector<128x1xf32>
    %425 = tpu.reciprocal %424 {approx = true} : vector<128x1xf32> -> vector<128x1xf32>
    %426 = vector.broadcast %425 : vector<128x1xf32> to vector<128x128xf32>
    %427 = arith.mulf %422, %426 : vector<128x128xf32>
    %428 = arith.truncf %427 : vector<128x128xf32> to vector<128x128xbf16>
    %cst_123 = arith.constant dense<0.000000e+00> : vector<128x16xf32>
    %429 = tpu.matmul %428, %328, %cst_123 {dimension_numbers = #tpu.dot_dimension_numbers<[1], [1], [0], [0], [0, 0, 1, 0], [], []>} : vector<128x128xbf16>, vector<16x128xbf16>, vector<128x16xf32> -> vector<128x16xf32>
    %430 = arith.addf %325, %429 : vector<128x16xf32>
    %cst_124 = arith.constant 2.500000e-01 : f32
    %431 = vector.broadcast %cst_124 : f32 to vector<128x16xf32>
    %432 = arith.mulf %430, %431 : vector<128x16xf32>
    %433 = arith.truncf %432 : vector<128x16xf32> to vector<128x16xbf16>
    %cst_125 = arith.constant dense<0.000000e+00> : vector<16x128xf32>
    %434 = tpu.matmul %433, %5, %cst_125 {dimension_numbers = #tpu.dot_dimension_numbers<[0], [0], [1], [1], [0, 1, 1, 1], [], []>} : vector<128x16xbf16>, vector<128x128xbf16>, vector<16x128xf32> -> vector<16x128xf32>
    %c0_126 = arith.constant 0 : index
    %c0_127 = arith.constant 0 : index
    %c0_128 = arith.constant 0 : index
    %435 = vector.load %arg4[%c0_126, %c0_127, %c0_128] : memref<1x16x128xf32, #tpu.memory_space<vmem>>, vector<1x16x128xf32>
    %436 = vector.shape_cast %435 : vector<1x16x128xf32> to vector<16x128xf32>
    %437 = vector.shape_cast %434 : vector<16x128xf32> to vector<1x16x128xf32>
    tpu.vector_store %arg4[%c0_126, %c0_127, %c0_128], %437 {strides = array<i32>} : memref<1x16x128xf32, #tpu.memory_space<vmem>>, vector<1x16x128xf32>,
    return
  }
  func.func @transform_0(%arg0: i32) -> (i32, i32, i32) {
    %c0_i32 = arith.constant 0 : i32
    %c0_i32_0 = arith.constant 0 : i32
    %c0_i32_1 = arith.constant 0 : i32
    return %arg0, %c0_i32, %c0_i32_0 : i32, i32, i32
  }
  func.func @transform_1(%arg0: i32) -> (i32, i32) {
    %c0_i32 = arith.constant 0 : i32
    %c0_i32_0 = arith.constant 0 : i32
    %c0_i32_1 = arith.constant 0 : i32
    return %c0_i32, %c0_i32_0 : i32, i32
  }
  func.func @transform_2(%arg0: i32) -> (i32, i32) {
    %c0_i32 = arith.constant 0 : i32
    %c0_i32_0 = arith.constant 0 : i32
    %c0_i32_1 = arith.constant 0 : i32
    return %c0_i32, %c0_i32_0 : i32, i32
  }
  func.func @transform_3(%arg0: i32) -> (i32, i32, i32) {
    %c0_i32 = arith.constant 0 : i32
    %c0_i32_0 = arith.constant 0 : i32
    %c0_i32_1 = arith.constant 0 : i32
    return %arg0, %c0_i32, %c0_i32_0 : i32, i32, i32
  }
}

</mosaic_0001>

<bundles_post_ra>
// kernel: tpu_custom_call.1
= control target key start
LH: loop header
LB: loop body
LE: loop exit
PB: predicated region body
PF: predicated region fallthrough
CT: control target
= control target key end

     0   :  { %8 = vsyncpa [#allocation3], 0  ;;  %s6428_s0 = inlined_call_operand.hbm [shape: bf16[2,16,128], index: 0, kind: input, shape index: {}]   ;;  %s6429_s1 = inlined_call_operand.hbm [shape: bf16[128,1536], index: 1, kind: input, shape index: {}]   ;;  %s6430_s2 = inlined_call_operand.hbm [shape: bf16[128,128], index: 2, kind: input, shape index: {}]   ;;  %s6431_s3 = inlined_call_operand.hbm [shape: f32[2,16,128], index: 3, kind: output, shape index: {}]  }
   0x1   :  { %10 = vsyncpa [#allocation3 + $0x1], 0 }
   0x2   :  { %11 = vsyncpa [#allocation6], 0 }
   0x3   :  { %12 = vsyncpa [#allocation4], 0 }
   0x4   :  { %14 = vsyncpa [#allocation4 + $0x1], 0  ;;  %s5005_s12 = smov 0   ;;  %s5007_s13 = smov 0  }
   0x5   :  { %s5009_s14 = smov 0   ;;  %s5011_s15 = smov 0  }
   0x6 LB: > { %s5026_s16 = sadd.s32 4294967295, %s4974_s15   ;;  %s3765_s17 = sadd.s32 4294967294, %s4974_s15   ;;  %s4974_s15 = sphi %s5011_s15, %s6461_s15   ;;  %s4970_s14 = sphi %s5009_s14, %s6460_s14   ;;  %s4966_s13 = sphi %s5007_s13, %s6459_s13   ;;  %s4962_s12 = sphi %s5005_s12, %s6458_s12  }
   0x7   : > { %p40_p0 = scmp.ne.s32.totalorder %s4966_s13, %s4962_s12  ;;  %p41_p1 = scmp.eq.s32.totalorder %s5026_s16, 0 }
   0x8   : > { %p106_p2 = scmp.eq.s32.totalorder %s5026_s16, 1  ;;  %p112_p3 = scmp.eq.s32.totalorder %s3765_s17, 1 }
   0x9   : > { %p5035_p4 = por %p41_p1, %p40_p0  ;;  %p3766_p5 = scmp.ge.s32.totalorder %s4974_s15, 1 }
   0xa   : > { %p5040_p6 = por %p112_p3, %p40_p0  ;;  %p119_p7 = scmp.lt.s32.totalorder %s4974_s15, 3 }
   0xb   : > { %s130_s22 = sshll.u32 %s6429_s1, 4  ;;  %s4976_s24 = smov [#allocation5]   ;;  %s131_s22 = int_to_ptr.hbm [resolvable:$true] %s130_s22 }
   0xc   : > { %p5048_p8 = pnand %p3766_p5, %p119_p7  ;;  %s132_s25 = sshll.u32 %s4976_s24, 4  ;;  %s133_s25 = int_to_ptr.vmem [resolvable:$true] %s132_s25 }
   0xd   : > { %s144_s28 = sshll.u32 %s6430_s2, 4  ;;  %s4977_s29 = smov 768   ;;  %s145_s28 = int_to_ptr.hbm [resolvable:$true] %s144_s28 }
   0xe   : > { %p4464_p9 = pneg %p5048_p8  ;;  %s4978_s30 = smov 48  }
   0xf   : > { %s4979_s4 = smov [#allocation7]   ;;  %s4980_s6 = smov 64  }
  0x10   : > { %p4465_p10 = pnand %p4464_p9, %p41_p1  ;;  %s146_s5 = sshll.u32 %s4979_s4, 4  ;;  %s147_s5 = int_to_ptr.vmem [resolvable:$true] %s146_s5 }
  0x11   : > { %s4981_s7 = smov 4   ;;  %s5064_s8 = sadd.s32 1, %s4974_s15  }
  0x12   : > { %4467 = dma.hbm_to_vmem [thread:$0]  (!%p4465_p10), %s131_s22, 12288, %s133_s25, [#allocation6], %s4977_s29, %s4977_s29, %s4978_s30  }
  0x13   : > { %4470 = dma.hbm_to_vmem [thread:$0]  (!%p4465_p10), %s145_s28, 1024, %s147_s5, [#allocation6], %s4980_s6, %s4980_s6, %s4981_s7  }
  0x14   : > { %s24_s9 = ssub.s32 %s4974_s15, %s5064_s8  ;;  %s27_s10 = sadd.s32 1, %s4970_s14 }
  0x15   : > { %p25_p12 = scmp.eq.s32.totalorder %s24_s9, 0  ;;  %p34_p13 = scmp.ne.s32.totalorder %s4970_s14, %s4966_s13 }
  0x16   : > { %p35_p0 = scmp.eq.s32.totalorder %s4974_s15, 0  ;;  %p4481_p7 = scmp.lt.s32.totalorder %s4974_s15, 2 }
  0x17   : > { %s5073_s11 = scalar_select %p25_p12, %s4970_s14, %s27_s10  }
  0x18   : > { %p36_p3 = por %p35_p0, %p34_p13  ;;  %p5077_p5 = por %p106_p2, %p34_p13 }
  0x19   : > { %s160_s20 = sand.u32 1, %s4970_s14   ;;  %s4235_s22 = sshll.u32 %s4974_s15, 3 }
  0x1a   : > { %s3770_s21 = sshll.u32 %s160_s20, 3  ;;  %s169_s26 = scalar_lea.hbm %s6428_s0, %s4235_s22 }
  0x1b   : > { %s164_s27 = scalar_lea.vmem [#allocation2], %s3770_s21  ;;  %s170_s29 = sshll.u32 %s169_s26, 4  ;;  %s171_s29 = int_to_ptr.hbm [resolvable:$true] %s170_s29 }
  0x1c   : > { %s172_s28 = sshll.u32 %s164_s27, 4  ;;  %p5087_p9 = pnand %p4481_p7, %p36_p3  ;;  %s173_s28 = int_to_ptr.vmem [resolvable:$true] %s172_s28 }
  0x1d   : > { %s161_s4 = scalar_lea.sflag [#allocation3], %s160_s20  ;;  %s4874_s5 = sshra.s32 %s171_s29, 4  ;;  %s4875_s5 = int_to_ptr.hbm [resolvable:$true] %s4874_s5 }
  0x1e   : > { %s4876_s9 = scalar_lea.hbm %s4875_s5, 8  ;;  %p4878_p10 = pneg %p5087_p9 }
  0x1f   : > { %p4877_p2 = scmp.ne.s32.totalorder %s4875_s5, %s4876_s9  ;;  %s4881_s22 = scalar_lea.hbm %s6428_s0, 16 }
  0x20   : > { %p4882_p0 = scmp.lt.s32.totalorder %s4875_s5, %s6428_s0  ;;  %p4883_p3 = scmp.lt.s32.totalorder %s4881_s22, %s4876_s9 }
  0x21   : > { %p4879_p12 = pnand %p4878_p10, %p4877_p2 }
  0x22   : > { %p4884_p7 = por %p4883_p3, %p4882_p0 }
  0x23   : > { %p4880_p13 = pneg %p4879_p12 }
  0x25   : > { %p4885_p11 = pnand %p4884_p7, %p4880_p13 }
  0x27   : > { %4888 = shalt.err (!%p4885_p11)
}
  0x28   : > { %4474 = dma.hbm_to_vmem [thread:$0]  (!%p5087_p9), %s171_s29, 128, %s173_s28, %s161_s4, %s4980_s6, %s4980_s6, %s4981_s7  }
  0x29   : > { %184 = sbr.rel (%p5048_p8) target bundleno = 4669 (0x123d), region = 32 }
  0x2e   : > { %s5107_s20 = sand.u32 1, %s4966_s13  }
  0x2f   : > { %s3774_s26 = sshll.u32 %s5107_s20, 3  ;;  %s187_s27 = scalar_lea.sflag [#allocation3], %s5107_s20 }
  0x30   : > { %s5111_s5 = scalar_lea.vmem [#allocation2], %s3774_s26 }
  0x31   : > { %4949 = dma.done.wait (%p5035_p4), %s187_s27, 128  }
  0x32   : > { %4951 = vsyncadd (%p5035_p4), %s187_s27, 4294967168 }
  0x33   : > { %4953 = dma.done.wait (%p41_p1), [#allocation6], 13312  }
  0x34   : > { %4955 = vsyncadd (%p41_p1), [#allocation6], 4294953984  ;;  %v4120_v0 = vld [vmem:[#allocation5 + $0x2a0] sm:$0xf]  ;;  %v4327_v1 = vld [vmem:[#allocation5 + $0x2cc] sm:$0xf0] }
  0x35   : > { %v4321_v2 = vld [vmem:[#allocation5 + $0x2a4] sm:$0xf]  ;;  %v4121_v3 = vor.u32 %v4327_v1, %v4120_v0  ;;  %v4122_v4 = vld [vmem:[#allocation5 + $0x2d0] sm:$0xf0]  ;;  %v4072_v5 = vld [vmem:[#allocation5 + $0x240] sm:$0xf] }
  0x36   : > { %v4315_v6 = vld [vmem:[#allocation5 + $0x26c] sm:$0xf0]  ;;  %v4125_v7 = vor.u32 %v4321_v2, %v4122_v4  ;;  %v4309_v8 = vld [vmem:[#allocation5 + $0x244] sm:$0xf]  ;;  %v4074_v9 = vld [vmem:[#allocation5 + $0x270] sm:$0xf0] }
  0x37   : > { %809 = vmatpush.bf16.msra.mxu0 %v4121_v3  ;;  %v4073_v10 = vor.u32 %v4315_v6, %v4072_v5  ;;  %v4077_v11 = vor.u32 %v4309_v8, %v4074_v9  ;;  %v4024_v12 = vld [vmem:[#allocation5 + $0x1e0] sm:$0xf]  ;;  %v4303_v13 = vld [vmem:[#allocation5 + $0x20c] sm:$0xf0]  ;;  %v4297_v14 = vld [vmem:[#allocation5 + $0x1e4] sm:$0xf] }
  0x38   : > { %823 = vmatpush.bf16.msra.mxu1 %v4125_v7  ;;  %v4026_v15 = vld [vmem:[#allocation5 + $0x210] sm:$0xf0]  ;;  %v4025_v16 = vor.u32 %v4303_v13, %v4024_v12  ;;  %v3976_v18 = vld [vmem:[#allocation5 + $0x180] sm:$0xf]  ;;  %v4291_v19 = vld [vmem:[#allocation5 + $0x1ac] sm:$0xf0] }
  0x39   : > { %v4029_v17 = vor.u32 %v4297_v14, %v4026_v15  ;;  %v4285_v20 = vld [vmem:[#allocation5 + $0x184] sm:$0xf]  ;;  %v3978_v21 = vld [vmem:[#allocation5 + $0x1b0] sm:$0xf0]  ;;  %v3977_v22 = vor.u32 %v4291_v19, %v3976_v18  ;;  %v3928_v24 = vld [vmem:[#allocation5 + $0x120] sm:$0xf] }
  0x3a   : > { %v3981_v23 = vor.u32 %v4285_v20, %v3978_v21  ;;  %v4279_v25 = vld [vmem:[#allocation5 + $0x14c] sm:$0xf0]  ;;  %v4273_v26 = vld [vmem:[#allocation5 + $0x124] sm:$0xf]  ;;  %v3930_v27 = vld [vmem:[#allocation5 + $0x150] sm:$0xf0] }
  0x3b   : > { %810 = vmatpush.bf16.msra.mxu0 %v4073_v10  ;;  %v3929_v28 = vor.u32 %v4279_v25, %v3928_v24  ;;  %v3933_v29 = vor.u32 %v4273_v26, %v3930_v27  ;;  %v3880_v30 = vld [vmem:[#allocation5 + $0xc0] sm:$0xf]  ;;  %v4267_v31 = vld [vmem:[#allocation5 + $0xec] sm:$0xf0]  ;;  %v4261_v32 = vld [vmem:[#allocation5 + $0xc4] sm:$0xf] }
  0x3c   : > { %824 = vmatpush.bf16.msra.mxu1 %v4077_v11  ;;  %v3882_v33 = vld [vmem:[#allocation5 + $0xf0] sm:$0xf0]  ;;  %v3881_v34 = vor.u32 %v4267_v31, %v3880_v30  ;;  %v3832_v36 = vld [vmem:[#allocation5 + $0x60] sm:$0xf]  ;;  %v4255_v37 = vld [vmem:[#allocation5 + $0x8c] sm:$0xf0] }
  0x3d   : > { %v3885_v35 = vor.u32 %v4261_v32, %v3882_v33  ;;  %v4249_v38 = vld [vmem:[#allocation5 + $0x64] sm:$0xf]  ;;  %v3834_v39 = vld [vmem:[#allocation5 + $0x90] sm:$0xf0]  ;;  %v3833_v40 = vor.u32 %v4255_v37, %v3832_v36  ;;  %v3784_v42 = vld [vmem:[#allocation5] sm:$0xf] }
  0x3e   : > { %v3837_v41 = vor.u32 %v4249_v38, %v3834_v39  ;;  %v4243_v43 = vld [vmem:[#allocation5 + $0x2c] sm:$0xf0]  ;;  %v4237_v44 = vld [vmem:[#allocation5 + $0x4] sm:$0xf]  ;;  %v3786_v45 = vld [vmem:[#allocation5 + $0x30] sm:$0xf0] }
  0x3f   : > { %811 = vmatpush.bf16.msra.mxu0 %v4025_v16  ;;  %v3785_v46 = vor.u32 %v4243_v43, %v3784_v42  ;;  %v3789_v47 = vor.u32 %v4237_v44, %v3786_v45  ;;  %v4136_v48 = vld [vmem:[#allocation5 + $0x2b0] sm:$0xf]  ;;  %v4329_v49 = vld [vmem:[#allocation5 + $0x2dc] sm:$0xf0]  ;;  %v4323_v33 = vld [vmem:[#allocation5 + $0x2b4] sm:$0xf] }
  0x40   : > { %825 = vmatpush.bf16.msra.mxu1 %v4029_v17  ;;  %v5122_v50 = vld [vmem:[%s5111_s5] sm:$0xff]  ;;  %v4137_v51 = vor.u32 %v4329_v49, %v4136_v48  ;;  %v4317_v53 = vld [vmem:[#allocation5 + $0x27c] sm:$0xf0]  ;;  %v4090_v37 = vld [vmem:[#allocation5 + $0x280] sm:$0xf0]  ;;  %vm1051_vm0 = vcmask 130048  }
  0x41   : > { %v4088_v52 = vld [vmem:[#allocation5 + $0x250] sm:$0xf]  ;;  %v4305_v56 = vld [vmem:[#allocation5 + $0x21c] sm:$0xf0]  ;;  %v4299_v39 = vld [vmem:[#allocation5 + $0x1f4] sm:$0xf] }
  0x42   : > { %v4089_v54 = vor.u32 %v4317_v53, %v4088_v52  ;;  %v4040_v55 = vld [vmem:[#allocation5 + $0x1f0] sm:$0xf]  ;;  %v4293_v59 = vld [vmem:[#allocation5 + $0x1bc] sm:$0xf0]  ;;  %v4287_v42 = vld [vmem:[#allocation5 + $0x194] sm:$0xf] }
  0x43   : > { %812 = vmatpush.bf16.msra.mxu0 %v3977_v22  ;;  %v4041_v57 = vor.u32 %v4305_v56, %v4040_v55  ;;  %v3992_v58 = vld [vmem:[#allocation5 + $0x190] sm:$0xf]  ;;  %v4281_v62 = vld [vmem:[#allocation5 + $0x15c] sm:$0xf0]  ;;  %v3994_v43 = vld [vmem:[#allocation5 + $0x1c0] sm:$0xf0] }
  0x44   : > { %826 = vmatpush.bf16.msra.mxu1 %v3981_v23  ;;  %v3993_v60 = vor.u32 %v4293_v59, %v3992_v58  ;;  %v3944_v61 = vld [vmem:[#allocation5 + $0x130] sm:$0xf]  ;;  %v4269_v1 = vld [vmem:[#allocation5 + $0xfc] sm:$0xf0]  ;;  %v3997_v44 = vor.u32 %v4287_v42, %v3994_v43  ;;  %v4275_v45 = vld [vmem:[#allocation5 + $0x134] sm:$0xf] }
  0x45   : > { %v3945_v63 = vor.u32 %v4281_v62, %v3944_v61  ;;  %v3896_v0 = vld [vmem:[#allocation5 + $0xd0] sm:$0xf]  ;;  %v4257_v4 = vld [vmem:[#allocation5 + $0x9c] sm:$0xf0]  ;;  %v4263_v49 = vld [vmem:[#allocation5 + $0xd4] sm:$0xf] }
  0x46   : > { %v3897_v2 = vor.u32 %v4269_v1, %v3896_v0  ;;  %v3848_v3 = vld [vmem:[#allocation5 + $0x70] sm:$0xf]  ;;  %v4245_v7 = vld [vmem:[#allocation5 + $0x3c] sm:$0xf0]  ;;  %v3850_v55 = vld [vmem:[#allocation5 + $0xa0] sm:$0xf0] }
  0x47   : > { %813 = vmatpush.bf16.msra.mxu0 %v3929_v28  ;;  %v3849_v5 = vor.u32 %v4257_v4, %v3848_v3  ;;  %v3800_v6 = vld [vmem:[#allocation5 + $0x10] sm:$0xf]  ;;  %v4152_v9 = vld [vmem:[#allocation5 + $0x2c0] sm:$0xf]  ;;  %v4239_v59 = vld [vmem:[#allocation5 + $0x14] sm:$0xf] }
  0x48   : > { %827 = vmatpush.bf16.msra.mxu1 %v3933_v29  ;;  %v3801_v8 = vor.u32 %v4245_v7, %v3800_v6  ;;  %v4331_v10 = vld [vmem:[#allocation5 + $0x2ec] sm:$0xf0]  ;;  %v4104_v12 = vld [vmem:[#allocation5 + $0x260] sm:$0xf]  ;;  %v4154_v0 = vld [vmem:[#allocation5 + $0x2f0] sm:$0xf0] }
  0x49   : > { %v4153_v11 = vor.u32 %v4331_v10, %v4152_v9  ;;  %v4319_v13 = vld [vmem:[#allocation5 + $0x28c] sm:$0xf0]  ;;  %v4056_v15 = vld [vmem:[#allocation5 + $0x200] sm:$0xf]  ;;  %v4313_v9 = vld [vmem:[#allocation5 + $0x264] sm:$0xf] }
  0x4a   : > { %v4105_v14 = vor.u32 %v4319_v13, %v4104_v12  ;;  %v4307_v16 = vld [vmem:[#allocation5 + $0x22c] sm:$0xf0]  ;;  %v4008_v18 = vld [vmem:[#allocation5 + $0x1a0] sm:$0xf]  ;;  %v4106_v10 = vld [vmem:[#allocation5 + $0x290] sm:$0xf0] }
  0x4b   : > { %814 = vmatpush.bf16.msra.mxu0 %v3881_v34  ;;  %v4057_v17 = vor.u32 %v4307_v16, %v4056_v15  ;;  %v4295_v19 = vld [vmem:[#allocation5 + $0x1cc] sm:$0xf0]  ;;  %v3960_v21 = vld [vmem:[#allocation5 + $0x140] sm:$0xf]  ;;  %v4138_v34 = vld [vmem:[#allocation5 + $0x2e0] sm:$0xf0]  ;;  %v4109_v13 = vor.u32 %v4313_v9, %v4106_v10 }
  0x4c   : > { %828 = vmatpush.bf16.msra.mxu1 %v3885_v35  ;;  %v4009_v20 = vor.u32 %v4295_v19, %v4008_v18  ;;  %v4283_v22 = vld [vmem:[#allocation5 + $0x16c] sm:$0xf0]  ;;  %v3912_v24 = vld [vmem:[#allocation5 + $0xe0] sm:$0xf]  ;;  %v4311_v35 = vld [vmem:[#allocation5 + $0x254] sm:$0xf]  ;;  %v4141_v36 = vor.u32 %v4323_v33, %v4138_v34 }
  0x4d   : > { %v3961_v23 = vor.u32 %v4283_v22, %v3960_v21  ;;  %v4271_v25 = vld [vmem:[#allocation5 + $0x10c] sm:$0xf0]  ;;  %v3864_v27 = vld [vmem:[#allocation5 + $0x80] sm:$0xf]  ;;  %v4093_v38 = vor.u32 %v4311_v35, %v4090_v37  ;;  %v4328_v12 = vld [vmem:[#allocation5 + $0x2d4] sm:$0xf0] }
  0x4e   : > { %v3913_v26 = vor.u32 %v4271_v25, %v3912_v24  ;;  %v4259_v28 = vld [vmem:[#allocation5 + $0xac] sm:$0xf0]  ;;  %v3816_v30 = vld [vmem:[#allocation5 + $0x20] sm:$0xf]  ;;  %v4301_v15 = vld [vmem:[#allocation5 + $0x204] sm:$0xf] }
  0x4f   : > { %815 = vmatpush.bf16.msra.mxu0 %v3833_v40  ;;  %v3865_v29 = vor.u32 %v4259_v28, %v3864_v27  ;;  %v4247_v31 = vld [vmem:[#allocation5 + $0x4c] sm:$0xf0]  ;;  %v4042_v40 = vld [vmem:[#allocation5 + $0x220] sm:$0xf0]  ;;  %v4058_v16 = vld [vmem:[#allocation5 + $0x230] sm:$0xf0] }
  0x50   : > { %829 = vmatpush.bf16.msra.mxu1 %v3837_v41  ;;  %v3817_v32 = vor.u32 %v4247_v31, %v3816_v30  ;;  %v4045_v41 = vor.u32 %v4299_v39, %v4042_v40  ;;  %v4289_v18 = vld [vmem:[#allocation5 + $0x1a4] sm:$0xf]  ;;  %v4010_v19 = vld [vmem:[#allocation5 + $0x1d0] sm:$0xf0]  ;;  %v4080_v33 = vld [vmem:[#allocation5 + $0x248] sm:$0xf] }
  0x51   : > { %v4277_v21 = vld [vmem:[#allocation5 + $0x144] sm:$0xf]  ;;  %v3962_v22 = vld [vmem:[#allocation5 + $0x170] sm:$0xf0]  ;;  %v4316_v34 = vld [vmem:[#allocation5 + $0x274] sm:$0xf0] }
  0x52   : > { %v4265_v24 = vld [vmem:[#allocation5 + $0xe4] sm:$0xf]  ;;  %v3914_v25 = vld [vmem:[#allocation5 + $0x110] sm:$0xf0]  ;;  %v4081_v35 = vor.u32 %v4316_v34, %v4080_v33  ;;  %v4304_v37 = vld [vmem:[#allocation5 + $0x214] sm:$0xf0] }
  0x53   : > { %816 = vmatpush.bf16.msra.mxu0 %v3785_v46  ;;  %v3946_v46 = vld [vmem:[#allocation5 + $0x160] sm:$0xf0]  ;;  %v3866_v28 = vld [vmem:[#allocation5 + $0xb0] sm:$0xf0]  ;;  %v3984_v39 = vld [vmem:[#allocation5 + $0x188] sm:$0xf] }
  0x54   : > { %830 = vmatpush.bf16.msra.mxu1 %v3789_v47  ;;  %v3949_v47 = vor.u32 %v4275_v45, %v3946_v46  ;;  %v4253_v27 = vld [vmem:[#allocation5 + $0x84] sm:$0xf]  ;;  %v3818_v31 = vld [vmem:[#allocation5 + $0x50] sm:$0xf0]  ;;  %v4292_v40 = vld [vmem:[#allocation5 + $0x1b4] sm:$0xf0] }
  0x55   : > { %v4241_v30 = vld [vmem:[#allocation5 + $0x24] sm:$0xf]  ;;  %v3936_v42 = vld [vmem:[#allocation5 + $0x128] sm:$0xf]  ;;  %v4280_v43 = vld [vmem:[#allocation5 + $0x154] sm:$0xf0] }
  0x56   : > { %817 = vmatmul.bf16.vlgmr.msra.gmra.mxu0 %v5122_v50  ;;  %v3888_v45 = vld [vmem:[#allocation5 + $0xc8] sm:$0xf]  ;;  %v4268_v46 = vld [vmem:[#allocation5 + $0xf4] sm:$0xf0]  ;;  %vm1175_vm1 = vcmask 7168  }
  0x57   : > { %831 = vmatmul.bf16.vlgmr.msra.gmra.mxu1 %v5122_v50  ;;  %865 = vmatpush.bf16.msra.mxu0 %v4137_v51  ;;  %v3898_v51 = vld [vmem:[#allocation5 + $0x100] sm:$0xf0]  ;;  %v3904_v9 = vld [vmem:[#allocation5 + $0xd8] sm:$0xf]  ;;  %v4270_v10 = vld [vmem:[#allocation5 + $0x104] sm:$0xf0] }
  0x58   : > { %879 = vmatpush.bf16.msrb.mxu1 %v4141_v36  ;;  %v3901_v53 = vor.u32 %v4263_v49, %v3898_v51  ;;  %v4032_v36 = vld [vmem:[#allocation5 + $0x1e8] sm:$0xf]  ;;  %v4256_v49 = vld [vmem:[#allocation5 + $0x94] sm:$0xf0] }
  0x59   : > { %v4064_v34 = vld [vmem:[#allocation5 + $0x208] sm:$0xf] }
  0x5b   : > { %866 = vmatpush.bf16.msra.mxu0 %v4089_v54  ;;  %v4251_v54 = vld [vmem:[#allocation5 + $0x74] sm:$0xf] }
  0x5c   : > { %880 = vmatpush.bf16.msrb.mxu1 %v4093_v38  ;;  %v3853_v56 = vor.u32 %v4251_v54, %v3850_v55  ;;  %v4033_v38 = vor.u32 %v4304_v37, %v4032_v36  ;;  %v4144_v54 = vld [vmem:[#allocation5 + $0x2b8] sm:$0xf]  ;;  %v4330_v55 = vld [vmem:[#allocation5 + $0x2e4] sm:$0xf0] }
  0x5f   : > { %867 = vmatpush.bf16.msra.mxu0 %v4041_v57 }
  0x60   : > { %881 = vmatpush.bf16.msrb.mxu1 %v4045_v41  ;;  %v3985_v41 = vor.u32 %v4292_v40, %v3984_v39  ;;  %v4296_v39 = vld [vmem:[#allocation5 + $0x1d4] sm:$0xf0] }
  0x63   : > { %868 = vmatpush.bf16.msra.mxu0 %v3993_v60  ;;  %v3802_v60 = vld [vmem:[#allocation5 + $0x40] sm:$0xf0] }
  0x64   : > { %882 = vmatpush.bf16.msrb.mxu1 %v3997_v44  ;;  %v3805_v1 = vor.u32 %v4239_v59, %v3802_v60  ;;  %v3937_v44 = vor.u32 %v4280_v43, %v3936_v42  ;;  %v4318_v59 = vld [vmem:[#allocation5 + $0x284] sm:$0xf0] }
  0x67   : > { %869 = vmatpush.bf16.msra.mxu0 %v3945_v63  ;;  %v4325_v63 = vld [vmem:[#allocation5 + $0x2c4] sm:$0xf] }
  0x68   : > { %883 = vmatpush.bf16.msrb.mxu1 %v3949_v47  ;;  %v4157_v6 = vor.u32 %v4325_v63, %v4154_v0  ;;  %v3889_v47 = vor.u32 %v4268_v46, %v3888_v45  ;;  %v3968_v46 = vld [vmem:[#allocation5 + $0x148] sm:$0xf] }
  0x6b   : > { %870 = vmatpush.bf16.msra.mxu0 %v3897_v2 }
  0x6c   : > { %884 = vmatpush.bf16.msrb.mxu1 %v3901_v53  ;;  %v4244_v53 = vld [vmem:[#allocation5 + $0x34] sm:$0xf0] }
  0x6f   : > { %871 = vmatpush.bf16.msra.mxu0 %v3849_v5 }
  0x70   : > { %885 = vmatpush.bf16.msrb.mxu1 %v3853_v56 }
  0x73   : > { %872 = vmatpush.bf16.msra.mxu0 %v3801_v8 }
  0x74   : > { %886 = vmatpush.bf16.msrb.mxu1 %v3805_v1  ;;  %v4000_v1 = vld [vmem:[#allocation5 + $0x198] sm:$0xf] }
  0x76   : > { %873 = vmatmul.bf16.vlgmr.msra.gmra.mxu0 %v5122_v50 }
  0x77   : > { %921 = vmatpush.bf16.msra.mxu0 %v4153_v11  ;;  %v4128_v11 = vld [vmem:[#allocation5 + $0x2a8] sm:$0xf]  ;;  %887 = vmatmul.bf16.vlgmr.msrb.gmra.mxu1 %v5122_v50 }
  0x78   : > { %935 = vmatpush.bf16.msra.mxu1 %v4157_v6 }
  0x7b   : > { %922 = vmatpush.bf16.msra.mxu0 %v4105_v14  ;;  %v4129_v14 = vor.u32 %v4328_v12, %v4128_v11  ;;  %v3905_v12 = vor.u32 %v4270_v10, %v3904_v9 }
  0x7c   : > { %936 = vmatpush.bf16.msra.mxu1 %v4109_v13  ;;  %v3856_v13 = vld [vmem:[#allocation5 + $0x78] sm:$0xf] }
  0x7d   : > { %837 = vmatpush.bf16.msra.mxu2 %v4129_v14  ;;  %v4258_v14 = vld [vmem:[#allocation5 + $0xa4] sm:$0xf0] }
  0x7f   : > { %923 = vmatpush.bf16.msra.mxu0 %v4057_v17  ;;  %v4061_v17 = vor.u32 %v4301_v15, %v4058_v16 }
  0x81   : > { %937 = vmatpush.bf16.msra.mxu1 %v4061_v17  ;;  %838 = vmatpush.bf16.msra.mxu2 %v4081_v35  ;;  %v4308_v35 = vld [vmem:[#allocation5 + $0x234] sm:$0xf0] }
  0x82   : > { %v4065_v37 = vor.u32 %v4308_v35, %v4064_v34  ;;  %v3794_v34 = vld [vmem:[#allocation5 + $0x38] sm:$0xf0] }
  0x83   : > { %924 = vmatpush.bf16.msra.mxu0 %v4009_v20  ;;  %v4013_v20 = vor.u32 %v4289_v18, %v4010_v19  ;;  %v3857_v19 = vor.u32 %v4258_v14, %v3856_v13  ;;  %v4130_v13 = vld [vmem:[#allocation5 + $0x2d8] sm:$0xf0] }
  0x85   : > { %938 = vmatpush.bf16.msra.mxu1 %v4013_v20  ;;  %839 = vmatpush.bf16.msra.mxu2 %v4033_v38  ;;  %v4016_v38 = vld [vmem:[#allocation5 + $0x1a8] sm:$0xf] }
  0x87   : > { %925 = vmatpush.bf16.msra.mxu0 %v3961_v23  ;;  %v3965_v23 = vor.u32 %v4277_v21, %v3962_v22  ;;  %v3808_v21 = vld [vmem:[#allocation5 + $0x18] sm:$0xf]  ;;  %v4246_v22 = vld [vmem:[#allocation5 + $0x44] sm:$0xf0] }
  0x89   : > { %939 = vmatpush.bf16.msra.mxu1 %v3965_v23  ;;  %840 = vmatpush.bf16.msra.mxu2 %v3985_v41  ;;  %v4160_v23 = vld [vmem:[#allocation5 + $0x2c8] sm:$0xf] }
  0x8b   : > { %926 = vmatpush.bf16.msra.mxu0 %v3913_v26  ;;  %v3917_v26 = vor.u32 %v4265_v24, %v3914_v25  ;;  %v4332_v24 = vld [vmem:[#allocation5 + $0x2f4] sm:$0xf0] }
  0x8d   : > { %940 = vmatpush.bf16.msra.mxu1 %v3917_v26  ;;  %841 = vmatpush.bf16.msra.mxu2 %v3937_v44  ;;  %v3809_v26 = vor.u32 %v4246_v22, %v3808_v21  ;;  %v4017_v44 = vor.u32 %v4296_v39, %v4016_v38  ;;  %v4286_v21 = vld [vmem:[#allocation5 + $0x18c] sm:$0xf]  ;;  %v3986_v22 = vld [vmem:[#allocation5 + $0x1b8] sm:$0xf0] }
  0x8f   : > { %927 = vmatpush.bf16.msra.mxu0 %v3865_v29  ;;  %v3869_v29 = vor.u32 %v4253_v27, %v3866_v28  ;;  %v4161_v27 = vor.u32 %v4332_v24, %v4160_v23  ;;  %v4112_v28 = vld [vmem:[#allocation5 + $0x268] sm:$0xf]  ;;  %v4274_v23 = vld [vmem:[#allocation5 + $0x12c] sm:$0xf]  ;;  %v3989_v24 = vor.u32 %v4286_v21, %v3986_v22 }
  0x91   : > { %941 = vmatpush.bf16.msra.mxu1 %v3869_v29  ;;  %842 = vmatpush.bf16.msra.mxu2 %v3889_v47  ;;  %v4320_v29 = vld [vmem:[#allocation5 + $0x294] sm:$0xf0] }
  0x92   : > { %v4113_v33 = vor.u32 %v4320_v29, %v4112_v28  ;;  %v4284_v47 = vld [vmem:[#allocation5 + $0x174] sm:$0xf0]  ;;  %v3890_v28 = vld [vmem:[#allocation5 + $0xf8] sm:$0xf0] }
  0x93   : > { %928 = vmatpush.bf16.msra.mxu0 %v3817_v32  ;;  %v3821_v32 = vor.u32 %v4241_v30, %v3818_v31 }
  0x95   : > { %942 = vmatpush.bf16.msra.mxu1 %v3821_v32 }
  0x96   : > { %929 = vmatmul.bf16.vlgmr.msra.gmra.mxu0 %v5122_v50 }
  0x98   : > { %943 = vmatmul.bf16.vlgmr.msra.gmra.mxu1 %v5122_v50 }
  0xd3   : > { %v818_v48 = vpop.f32.mrf.mxu0 }
  0xd4   : > { %v832_v52 = vpop.f32.mrf.mxu1 }
  0xd5   : > { %v977_v57 = vpack.c.bf16 %v832_v52, %v818_v48  ;;  %v3840_v48 = vld [vmem:[#allocation5 + $0x68] sm:$0xf] }
  0xd6   : > { %v3841_v51 = vor.u32 %v4256_v49, %v3840_v48  ;;  %v3792_v52 = vld [vmem:[#allocation5 + $0x8] sm:$0xf]  ;;  %v3969_v49 = vor.u32 %v4284_v47, %v3968_v46  ;;  %v4098_v46 = vld [vmem:[#allocation5 + $0x288] sm:$0xf0] }
  0xd7   : > { %v1047_v2 = vunpack.c.h.b16 %v977_v57  ;;  %v1027_v4 = vunpack.c.l.b16 %v977_v57  ;;  %v3793_v56 = vor.u32 %v4244_v53, %v3792_v52  ;;  %v4145_v57 = vor.u32 %v4330_v55, %v4144_v54  ;;  %v4272_v52 = vld [vmem:[#allocation5 + $0x114] sm:$0xf0]  ;;  %v3872_v54 = vld [vmem:[#allocation5 + $0x88] sm:$0xf] }
  0xd8   : > { %843 = vmatpush.bf16.msra.mxu2 %v3841_v51  ;;  %v3920_v51 = vld [vmem:[#allocation5 + $0xe8] sm:$0xf]  ;;  %v4260_v55 = vld [vmem:[#allocation5 + $0xb4] sm:$0xf0] }
  0xd9   : > { %v3921_v53 = vor.u32 %v4272_v52, %v3920_v51  ;;  %v4050_v51 = vld [vmem:[#allocation5 + $0x228] sm:$0xf0] }
  0xdb   : > { %v820_v58 = vpop.f32.mrf.mxu0 }
  0xdc   : > { %v834_v61 = vpop.f32.mrf.mxu1  ;;  %844 = vmatpush.bf16.msra.mxu2 %v3793_v56  ;;  %v3873_v56 = vor.u32 %v4260_v55, %v3872_v54  ;;  %v4002_v54 = vld [vmem:[#allocation5 + $0x1c8] sm:$0xf0]  ;;  %v4276_v55 = vld [vmem:[#allocation5 + $0x13c] sm:$0xf] }
  0xdd   : > { %v983_v62 = vpack.c.bf16 %v834_v61, %v820_v58  ;;  %v4096_v58 = vld [vmem:[#allocation5 + $0x258] sm:$0xf] }
  0xde   : > { %v4097_v60 = vor.u32 %v4318_v59, %v4096_v58  ;;  %v4048_v61 = vld [vmem:[#allocation5 + $0x1f8] sm:$0xf]  ;;  %v3824_v59 = vld [vmem:[#allocation5 + $0x28] sm:$0xf] }
  0xdf   : > { %v1048_v3 = vunpack.c.h.b16 %v983_v62  ;;  %v1028_v5 = vunpack.c.l.b16 %v983_v62  ;;  %v4306_v62 = vld [vmem:[#allocation5 + $0x224] sm:$0xf0]  ;;  %845 = vmatmul.bf16.vlgmr.msra.gmra.mxu2 %v5122_v50 }
  0xe0   : > { %893 = vmatpush.bf16.msrb.mxu2 %v4145_v57  ;;  %v4049_v0 = vor.u32 %v4306_v62, %v4048_v61 }
  0xe1   : > { %v1049_v7 = vpack.c.b16 %v1048_v3, %v1047_v2  ;;  %v1029_v8 = vpack.c.b16 %v1028_v5, %v1027_v4  ;;  %v4294_v2 = vld [vmem:[#allocation5 + $0x1c4] sm:$0xf0]  ;;  %v3952_v4 = vld [vmem:[#allocation5 + $0x138] sm:$0xf] }
  0xe2   : > { %v4001_v3 = vor.u32 %v4294_v2, %v4000_v1  ;;  %v4282_v5 = vld [vmem:[#allocation5 + $0x164] sm:$0xf0] }
  0xe3   : > { %1083 = vmatpush.bf16.msra.mxu0 %v1049_v7  ;;  %1031 = vxpose.xlu0.c.b16.start.end [1/1] (short) %v1029_v8, 128  ;;  %v3953_v8 = vor.u32 %v4282_v5, %v3952_v4 }
  0xe4   : > { %894 = vmatpush.bf16.msrb.mxu2 %v4097_v60  ;;  %v4248_v60 = vld [vmem:[#allocation5 + $0x54] sm:$0xf0] }
  0xe5   : > { %v3825_v61 = vor.u32 %v4248_v60, %v3824_v59  ;;  %v4264_v60 = vld [vmem:[#allocation5 + $0xdc] sm:$0xf] }
  0xe8   : > { %895 = vmatpush.bf16.msrb.mxu2 %v4049_v0 }
  0xec   : > { %896 = vmatpush.bf16.msrb.mxu2 %v4001_v3 }
  0xf0   : > { %897 = vmatpush.bf16.msrb.mxu2 %v3953_v8 }
  0xf3   : > { %v874_v6 = vpop.f32.mrf.mxu0 }
  0xf4   : > { %v888_v7 = vpop.f32.mrf.mxu1  ;;  %898 = vmatpush.bf16.msrb.mxu2 %v3905_v12  ;;  %v4322_v12 = vld [vmem:[#allocation5 + $0x2ac] sm:$0xf] }
  0xf5   : > { %v5132_v11 = vpack.c.bf16 %v888_v7, %v874_v6  ;;  %v4133_v14 = vor.u32 %v4322_v12, %v4130_v13  ;;  %v4326_v12 = vld [vmem:[#allocation5 + $0x2cc] sm:$0xf] }
  0xf7   : > { %v1658_v17 = vunpack.c.l.b16 %v5132_v11  ;;  %v2193_v57 = vunpack.c.h.b16 %v5132_v11  ;;  %851 = vmatpush.bf16.msra.mxu3 %v4133_v14 }
  0xf8   : > { %899 = vmatpush.bf16.msrb.mxu2 %v3857_v19  ;;  %v4034_v19 = vld [vmem:[#allocation5 + $0x218] sm:$0xf0] }
  0xfb   : > { %v876_v15 = vpop.f32.mrf.mxu0 }
  0xfc   : > { %v890_v16 = vpop.f32.mrf.mxu1  ;;  %900 = vmatpush.bf16.msrb.mxu2 %v3809_v26 }
  0xfd   : > { %v985_v18 = vpack.c.bf16 %v890_v16, %v876_v15  ;;  %v4310_v15 = vld [vmem:[#allocation5 + $0x24c] sm:$0xf]  ;;  %v4082_v16 = vld [vmem:[#allocation5 + $0x278] sm:$0xf0] }
  0xff   : > { %v1659_v20 = vunpack.c.l.b16 %v985_v18  ;;  %901 = vmatmul.bf16.vlgmr.msrb.gmra.mxu2 %v5122_v50  ;;  %v2194_v58 = vunpack.c.h.b16 %v985_v18  ;;  %v4298_v18 = vld [vmem:[#allocation5 + $0x1ec] sm:$0xf] }
 0x100   : > { %949 = vmatpush.bf16.msra.mxu2 %v4161_v27  ;;  %v4262_v27 = vld [vmem:[#allocation5 + $0xcc] sm:$0xf] }
 0x101   : > { %v1660_v25 = vpack.c.b16 %v1659_v20, %v1658_v17  ;;  %v2195_v62 = vpack.c.b16 %v2194_v58, %v2193_v57  ;;  %v4085_v17 = vor.u32 %v4310_v15, %v4082_v16  ;;  %v4037_v20 = vor.u32 %v4298_v18, %v4034_v19  ;;  %v3954_v57 = vld [vmem:[#allocation5 + $0x168] sm:$0xf0]  ;;  %v4162_v16 = vld [vmem:[#allocation5 + $0x2f8] sm:$0xf0] }
 0x102   : > { %v3893_v29 = vor.u32 %v4262_v27, %v3890_v28  ;;  %v3957_v58 = vor.u32 %v4276_v55, %v3954_v57  ;;  %v4165_v18 = vor.u32 %v4326_v12, %v4162_v16  ;;  %v4114_v19 = vld [vmem:[#allocation5 + $0x298] sm:$0xf0]  ;;  %v4254_v57 = vld [vmem:[#allocation5 + $0x8c] sm:$0xf] }
 0x103   : > { %1693 = vmatpush.bf16.msrb.mxu1 %v1660_v25  ;;  %852 = vmatpush.bf16.msra.mxu3 %v4085_v17  ;;  %v3938_v25 = vld [vmem:[#allocation5 + $0x158] sm:$0xf0]  ;;  %v4314_v17 = vld [vmem:[#allocation5 + $0x26c] sm:$0xf] }
 0x104   : > { %950 = vmatpush.bf16.msra.mxu2 %v4113_v33  ;;  %v3941_v26 = vor.u32 %v4274_v23, %v3938_v25  ;;  %v4238_v33 = vld [vmem:[#allocation5 + $0xc] sm:$0xf]  ;;  %v4117_v23 = vor.u32 %v4314_v17, %v4114_v19 }
 0x107   : > { %853 = vmatpush.bf16.msra.mxu3 %v4037_v20 }
 0x108   : > { %951 = vmatpush.bf16.msra.mxu2 %v4065_v37  ;;  %v3797_v37 = vor.u32 %v4238_v33, %v3794_v34  ;;  %v4066_v33 = vld [vmem:[#allocation5 + $0x238] sm:$0xf0] }
 0x10b   : > { %854 = vmatpush.bf16.msra.mxu3 %v3989_v24 }
 0x10c   : > { %952 = vmatpush.bf16.msra.mxu2 %v4017_v44 }
 0x10f   : > { %855 = vmatpush.bf16.msra.mxu3 %v3941_v26 }
 0x110   : > { %953 = vmatpush.bf16.msra.mxu2 %v3969_v49  ;;  %v4300_v49 = vld [vmem:[#allocation5 + $0x1fc] sm:$0xf] }
 0x111   : > { %v4053_v52 = vor.u32 %v4300_v49, %v4050_v51  ;;  %v4266_v51 = vld [vmem:[#allocation5 + $0xec] sm:$0xf] }
 0x113   : > { %v930_v30 = vpop.f32.mrf.mxu0  ;;  %856 = vmatpush.bf16.msra.mxu3 %v3893_v29 }
 0x114   : > { %954 = vmatpush.bf16.msra.mxu2 %v3921_v53  ;;  %v4288_v53 = vld [vmem:[#allocation5 + $0x19c] sm:$0xf] }
 0x115   : > { %v944_v31 = vpop.f32.mrf.mxu1 }
 0x116   : > { %v981_v36 = vpack.c.bf16 %v944_v31, %v930_v30  ;;  %v4250_v30 = vld [vmem:[#allocation5 + $0x6c] sm:$0xf]  ;;  %v3842_v31 = vld [vmem:[#allocation5 + $0x98] sm:$0xf0] }
 0x118   : > { %v2858_v42 = vunpack.c.l.b16 %v981_v36  ;;  %955 = vmatpush.bf16.msra.mxu2 %v3873_v56  ;;  %v4005_v56 = vor.u32 %v4288_v53, %v4002_v54 }
 0x11b   : > { %v932_v40 = vpop.f32.mrf.mxu0 }
 0x11c   : > { %956 = vmatpush.bf16.msra.mxu2 %v3825_v61  ;;  %v3906_v61 = vld [vmem:[#allocation5 + $0x108] sm:$0xf0] }
 0x11d   : > { %v946_v41 = vpop.f32.mrf.mxu1 }
 0x11e   : > { %v987_v43 = vpack.c.bf16 %v946_v41, %v932_v40 }
 0x11f   : > { %957 = vmatmul.bf16.vlgmr.msra.gmra.mxu2 %v5122_v50 }
 0x120   : > { %v2859_v45 = vunpack.c.l.b16 %v987_v43  ;;  %2204 = vmatpush.bf16.xpose.msrb.mxu2 %v2195_v62  ;;  %v2928_v0 = vunpack.c.h.b16 %v987_v43  ;;  %v4146_v43 = vld [vmem:[#allocation5 + $0x2e8] sm:$0xf0]  ;;  %v4252_v62 = vld [vmem:[#allocation5 + $0x7c] sm:$0xf] }
 0x122   : > { %v2860_v48 = vpack.c.b16 %v2859_v45, %v2858_v42  ;;  %v4324_v42 = vld [vmem:[#allocation5 + $0x2bc] sm:$0xf] }
 0x123   : > { %v4149_v44 = vor.u32 %v4324_v42, %v4146_v43  ;;  %v4312_v45 = vld [vmem:[#allocation5 + $0x25c] sm:$0xf] }
 0x124   : > { %2869 = vmatpush.bf16.xpose.msra.mxu1 %v2860_v48  ;;  %v4101_v47 = vor.u32 %v4312_v45, %v4098_v46  ;;  %v4278_v46 = vld [vmem:[#allocation5 + $0x14c] sm:$0xf] }
 0x162   : > { %v846_v45 = vpop.f32.mrf.mxu2 }
 0x18f   : > { %v1039_v63 = vpop.trf.xlu0 }
 0x190   : > { %4166 = vmatmul.msk.bf16.vlgmr.msra.gmra.mxu0 %vm1051_vm0, %v1039_v63  ;;  %v2927_v63 = vunpack.c.h.b16 %v981_v36 }
 0x192   : > { %v5139_v1 = vpack.c.b16 %v2928_v0, %v2927_v63  ;;  %v3909_v63 = vor.u32 %v4264_v60, %v3906_v61  ;;  %v3858_v0 = vld [vmem:[#allocation5 + $0xa8] sm:$0xf0] }
 0x19f   : > { %v1040_v32 = vpop.trf.xlu0 }
 0x1a0   : > { %4167 = vmatmul.msk.bf16.gmra.mxu0 %vm1051_vm0, %v1040_v32  ;;  %v3845_v32 = vor.u32 %v4250_v30, %v3842_v31 }
 0x1a2   : > { %857 = vmatpush.bf16.msra.mxu3 %v3845_v32  ;;  %v4302_v32 = vld [vmem:[#allocation5 + $0x20c] sm:$0xf] }
 0x1a6   : > { %858 = vmatpush.bf16.msra.mxu3 %v3797_v37  ;;  %v4018_v37 = vld [vmem:[#allocation5 + $0x1d8] sm:$0xf0] }
 0x1a9   : > { %859 = vmatmul.bf16.vlgmr.msra.gmra.mxu3 %v5122_v50 }
 0x1aa   : > { %907 = vmatpush.bf16.msrb.mxu3 %v4149_v44 }
 0x1ae   : > { %908 = vmatpush.bf16.msrb.mxu3 %v4101_v47  ;;  %v3970_v47 = vld [vmem:[#allocation5 + $0x178] sm:$0xf0] }
 0x1af   : > { %v1041_v2 = vpop.trf.xlu0 }
 0x1b0   : > { %4168 = vmatmul.msk.bf16.gmra.mxu0 %vm1051_vm0, %v1041_v2  ;;  %v3861_v2 = vor.u32 %v4252_v62, %v3858_v0 }
 0x1b2   : > { %909 = vmatpush.bf16.msrb.mxu3 %v4053_v52  ;;  %v3922_v52 = vld [vmem:[#allocation5 + $0x118] sm:$0xf0] }
 0x1b3   : > { %v3925_v53 = vor.u32 %v4266_v51, %v3922_v52 }
 0x1b6   : > { %910 = vmatpush.bf16.msrb.mxu3 %v4005_v56  ;;  %v848_v56 = vpop.f32.mrf.mxu2 }
 0x1ba   : > { %911 = vmatpush.bf16.msrb.mxu3 %v3957_v58  ;;  %v3874_v58 = vld [vmem:[#allocation5 + $0xb8] sm:$0xf0] }
 0x1bb   : > { %v3877_v60 = vor.u32 %v4254_v57, %v3874_v58 }
 0x1be   : > { %912 = vmatpush.bf16.msrb.mxu3 %v3909_v63 }
 0x1bf   : > { %v1042_v3 = vpop.trf.xlu0 }
 0x1c0   : > { %4169 = vmatmul.msk.bf16.gmra.mxu0 %vm1051_vm0, %v1042_v3 }
 0x1c2   : > { %913 = vmatpush.bf16.msrb.mxu3 %v3861_v2 }
 0x1cf   : > { %v1043_v8 = vpop.trf.xlu0 }
 0x1d0   : > { %4170 = vmatmul.msk.bf16.gmra.mxu0 %vm1051_vm0, %v1043_v8 }
 0x1df   : > { %v1044_v9 = vpop.trf.xlu0 }
 0x1e0   : > { %4171 = vmatmul.msk.bf16.gmra.mxu0 %vm1051_vm0, %v1044_v9 }
 0x1ef   : > { %v1045_v10 = vpop.trf.xlu0 }
 0x1f0   : > { %4172 = vmatmul.msk.bf16.gmra.mxu0 %vm1051_vm0, %v1045_v10  ;;  %v4240_v10 = vld [vmem:[#allocation5 + $0x1c] sm:$0xf] }
 0x1ff   : > { %v1046_v11 = vpop.trf.xlu0 }
 0x200   : > { %4173 = vmatmul.msk.bf16.gmra.mxu0 %vm1051_vm0, %v1046_v11  ;;  %v3810_v11 = vld [vmem:[#allocation5 + $0x48] sm:$0xf0] }
 0x201   : > { %v3813_v15 = vor.u32 %v4240_v10, %v3810_v11 }
 0x203   : > { %914 = vmatpush.bf16.msrb.mxu3 %v3813_v15 }
 0x206   : > { %915 = vmatmul.bf16.vlgmr.msrb.gmra.mxu3 %v5122_v50 }
 0x207   : > { %963 = vmatpush.bf16.msra.mxu3 %v4165_v18 }
 0x20b   : > { %964 = vmatpush.bf16.msra.mxu3 %v4117_v23 }
 0x20d   : > { %v5142_v4 = vpop.f32.mrf.mxu0 }
 0x20e   : > { %1125 = vadd.xlane.f32.xlu0 %v5142_v4  ;;  %v1145_v5 = vmul.f32 %v5142_v4, %v5142_v4 }
 0x210   : > { %1155 = vadd.xlane.f32.xlu1 %v1145_v5 }
 0x215   : > { %v5148_v6 = vpop.f32.mrf.mxu0 }
 0x216   : > { %1127 = vadd.xlane.f32.xlu2 %v5148_v6  ;;  %v1146_v7 = vmul.f32 %v5148_v6, %v5148_v6 }
 0x21d   : > { %v5160_v40 = vpop.f32.mrf.mxu0 }
 0x21e   : > { %1157 = vadd.xlane.f32.xlu2 %v1146_v7  ;;  %v1147_v41 = vmul.f32 %v5160_v40, %v5160_v40 }
 0x225   : > { %v5166_v25 = vpop.f32.mrf.mxu0 }
 0x226   : > { %v1148_v0 = vmul.f32 %v5166_v25, %v5166_v25 }
 0x22c   : > { %v860_v49 = vpop.f32.mrf.mxu3 }
 0x22d   : > { %v978_v55 = vpack.c.bf16 %v860_v49, %v846_v45 }
 0x22f   : > { %v2246_v61 = vunpack.c.l.b16 %v978_v55 }
 0x281   : > { %v1126_v35 = vpop.xlane.xlu0 %1125 }
 0x282   : > { %v1176_v36 = vsel %vm1175_vm1, %v1126_v35, 0.0  ;;  %v4069_v35 = vor.u32 %v4302_v32, %v4066_v33 }
 0x283   : > { %1177 = vadd.xlane.f32.xlu1 %v1176_v36  ;;  %v1156_v38 = vpop.xlane.xlu1 %1155  ;;  %v4290_v36 = vld [vmem:[#allocation5 + $0x1ac] sm:$0xf] }
 0x284   : > { %v1186_v39 = vsel %vm1175_vm1, %v1156_v38, 0.0  ;;  %965 = vmatpush.bf16.msra.mxu3 %v4069_v35  ;;  %v4021_v43 = vor.u32 %v4290_v36, %v4018_v37 }
 0x285   : > { %1187 = vadd.xlane.f32.xlu2 %v1186_v39 }
 0x288   : > { %966 = vmatpush.bf16.msra.mxu3 %v4021_v43 }
 0x289   : > { %v1128_v48 = vpop.xlane.xlu2 %1127 }
 0x28a   : > { %v1213_v24 = vsel %vm1175_vm1, %v1128_v48, 0.0  ;;  %v3973_v48 = vor.u32 %v4278_v46, %v3970_v47 }
 0x28b   : > { %1129 = vadd.xlane.f32.xlu1 %v5160_v40 }
 0x28c   : > { %967 = vmatpush.bf16.msra.mxu3 %v3973_v48 }
 0x290   : > { %968 = vmatpush.bf16.msra.mxu3 %v3925_v53 }
 0x291   : > { %v1158_v59 = vpop.xlane.xlu2 %1157 }
 0x292   : > { %v1225_v39 = vsel %vm1175_vm1, %v1158_v59, 0.0  ;;  %v862_v59 = vpop.f32.mrf.mxu3 }
 0x293   : > { %1159 = vadd.xlane.f32.xlu1 %v1147_v41  ;;  %v5171_v41 = vpop.f32.mrf.mxu0  ;;  %v984_v62 = vpack.c.bf16 %v862_v59, %v848_v56 }
 0x294   : > { %969 = vmatpush.bf16.msra.mxu3 %v3877_v60  ;;  %v1149_v2 = vmul.f32 %v5171_v41, %v5171_v41 }
 0x295   : > { %v2247_v63 = vunpack.c.l.b16 %v984_v62  ;;  %v1637_v12 = vunpack.c.h.b16 %v984_v62 }
 0x29b   : > { %v5175_v54 = vpop.f32.mrf.mxu0 }
 0x2a3   : > { %v5186_v10 = vpop.f32.mrf.mxu0 }
 0x2ab   : > { %v5189_v11 = vpop.f32.mrf.mxu0 }
 0x2ac   : > { %v1152_v58 = vmul.f32 %v5189_v11, %v5189_v11 }
 0x2b3   : > { %v5198_v57 = vpop.f32.mrf.mxu0 }
 0x2b4   : > { %v1153_v60 = vmul.f32 %v5198_v57, %v5198_v57 }
 0x2bb   : > { %v5203_v59 = vpop.f32.mrf.mxu0 }
 0x2f6   : > { %v1178_v3 = vpop.xlane.xlu1 %1177 }
 0x2f7   : > { %v1179_v5 = vrot.slane %v1178_v3, 4 }
 0x2f8   : > { %v1188_v7 = vpop.xlane.xlu2 %1187 }
 0x2f9   : > { %v1180_v8 = vadd.f32 %v1179_v5, %v1178_v3  ;;  %v1189_v9 = vrot.slane %v1188_v7, 4  ;;  %v4242_v3 = vld [vmem:[#allocation5 + $0x2c] sm:$0xf]  ;;  %v3826_v5 = vld [vmem:[#allocation5 + $0x58] sm:$0xf0] }
 0x2fb   : > { %v1190_v13 = vadd.f32 %v1189_v9, %v1188_v7  ;;  %v1181_v14 = vrot.slane %v1180_v8, 2  ;;  %v2248_v7 = vpack.c.b16 %v2247_v63, %v2246_v61  ;;  %v1150_v9 = vmul.f32 %v5175_v54, %v5175_v54 }
 0x2fc   : > { %v1154_v61 = vmul.f32 %v5203_v59, %v5203_v59 }
 0x2fd   : > { %v1182_v20 = vadd.f32 %v1181_v14, %v1180_v8  ;;  %v1191_v21 = vrot.slane %v1190_v13, 2  ;;  %v3829_v8 = vor.u32 %v4242_v3, %v3826_v5 }
 0x2fe   : > { %v1130_v22 = vpop.xlane.xlu1 %1129 }
 0x2ff   : > { %v1214_v26 = vsel %vm1175_vm1, %v1130_v22, 0.0  ;;  %v1183_v27 = vrot.slane %v1182_v20, 1  ;;  %v1192_v28 = vadd.f32 %v1191_v21, %v1190_v13  ;;  %970 = vmatpush.bf16.msra.mxu3 %v3829_v8 }
 0x300   : > { %v1215_v29 = vadd.f32 %v1214_v26, %v1213_v24 }
 0x301   : > { %v1184_v30 = vadd.f32 %v1183_v27, %v1182_v20  ;;  %v1193_v31 = vrot.slane %v1192_v28, 1 }
 0x302   : > { %1216 = vadd.xlane.f32.xlu2 %v1215_v29  ;;  %971 = vmatmul.bf16.vlgmr.msra.gmra.mxu3 %v5122_v50  ;;  %v1636_v50 = vunpack.c.h.b16 %v978_v55 }
 0x303   : > { %4356 = vpush %v1184_v30  ;;  %v1194_v34 = vadd.f32 %v1193_v31, %v1192_v28  ;;  %2257 = vmatpush.bf16.xpose.msrb.mxu3 %v2248_v7 }
 0x304   : > { %v1638_v14 = vpack.c.b16 %v1637_v12, %v1636_v50 }
 0x305   : > { %4358 = vpush %v1194_v34 }
 0x306   : > { %v1160_v38 = vpop.xlane.xlu1 %1159 }
 0x307   : > { %v1226_v42 = vsel %vm1175_vm1, %v1160_v38, 0.0 }
 0x308   : > { %v1227_v44 = vadd.f32 %v1226_v42, %v1225_v39 }
 0x30a   : > { %1228 = vadd.xlane.f32.xlu1 %v1227_v44  ;;  %1131 = vadd.xlane.f32.xlu2 %v5166_v25 }
 0x312   : > { %1133 = vadd.xlane.f32.xlu1 %v5171_v41  ;;  %1135 = vadd.xlane.f32.xlu2 %v5175_v54 }
 0x31a   : > { %1161 = vadd.xlane.f32.xlu1 %v1148_v0  ;;  %1163 = vadd.xlane.f32.xlu2 %v1149_v2 }
 0x322   : > { %1165 = vadd.xlane.f32.xlu1 %v1150_v9 }
 0x32a   : > { %1137 = vadd.xlane.f32.xlu1 %v5186_v10 }
 0x332   : > { %1139 = vadd.xlane.f32.xlu1 %v5189_v11 }
 0x334   : > { %s4357_s18 = spop %4356 }
 0x335   : > { %s1196_s23 = smul.f32 0.0015625, %s4357_s18 }
 0x336   : > { %s4359_s6 = spop %4358 }
 0x337   : > { %s1198_s7 = smul.f32 %s1196_s23, %s1196_s23 }
 0x338   : > { %s1197_s28 = smul.f32 0.0015625, %s4359_s6 }
 0x33a   : > { %s1199_s29 = ssub.f32 %s1197_s28, %s1198_s7 }
 0x33c   : > { %s1200_s30 = sadd.f32 1e-05, %s1199_s29 }
 0x33e   : > { %v1201_v13 = vstv %s1200_s30 }
 0x33f   : > { %4526 = vrsqrt.f32 %v1201_v13  ;;  %vm1208_vm3 = vweird.f32 %v1201_v13 }
 0x343   : > { %1640 = vxpose.xlu2.c.b16.start.end [1/1] (short) %v1638_v14, 128 }
 0x345   : > { %v4527_v15 = vpop.eup %4526 }
 0x346   : > { %v1203_v16 = vmul.f32 %v4527_v15, %v1201_v13  ;;  %vm1209_vm2 = vweird.f32 %v4527_v15 }
 0x347   : > { %vm1210_vm4 = vmor %vm1208_vm3, %vm1209_vm2 }
 0x348   : > { %v1204_v17 = vmul.f32 %v4527_v15, %v1203_v16 }
 0x34a   : > { %v1205_v18 = vmul.f32 0.5, %v1204_v17 }
 0x34c   : > { %v1206_v19 = vsub.f32 1.5, %v1205_v18 }
 0x34e   : > { %v1207_v20 = vmul.f32 %v4527_v15, %v1206_v19 }
 0x350   : > { %v1211_v21 = vsel %vm1210_vm4, %v4527_v15, %v1207_v20 }
 0x351   : > { %4360 = vpush %v1211_v21 }
 0x375   : > { %v1217_v22 = vpop.xlane.xlu2 %1216 }
 0x376   : > { %v1218_v23 = vrot.slane %v1217_v22, 4 }
 0x378   : > { %v1219_v24 = vadd.f32 %v1218_v23, %v1217_v22 }
 0x37a   : > { %v1220_v26 = vrot.slane %v1219_v24, 2 }
 0x37c   : > { %v1221_v27 = vadd.f32 %v1220_v26, %v1219_v24 }
 0x37d   : > { %v1229_v28 = vpop.xlane.xlu1 %1228  ;;  %v1132_v29 = vpop.xlane.xlu2 %1131 }
 0x37e   : > { %v1230_v30 = vrot.slane %v1229_v28, 4  ;;  %v1222_v31 = vrot.slane %v1221_v27, 1  ;;  %v1254_v38 = vsel %vm1175_vm1, %v1132_v29, 0.0 }
 0x380   : > { %v1231_v32 = vadd.f32 %v1230_v30, %v1229_v28  ;;  %v1223_v33 = vadd.f32 %v1222_v31, %v1221_v27 }
 0x382   : > { %4362 = vpush %v1223_v33  ;;  %v1232_v34 = vrot.slane %v1231_v32, 2  ;;  %s5206_s4 = spop %4360 }
 0x384   : > { %v1233_v35 = vadd.f32 %v1232_v34, %v1231_v32 }
 0x385   : > { %v1134_v36 = vpop.xlane.xlu1 %1133  ;;  %v1136_v37 = vpop.xlane.xlu2 %1135 }
 0x386   : > { %v1255_v39 = vsel %vm1175_vm1, %v1134_v36, 0.0  ;;  %v1234_v42 = vrot.slane %v1233_v35, 1  ;;  %v1257_v44 = vsel %vm1175_vm1, %v1136_v37, 0.0  ;;  %v1151_v36 = vmul.f32 %v5186_v10, %v5186_v10 }
 0x387   : > { %v1256_v43 = vadd.f32 %v1255_v39, %v1254_v38 }
 0x388   : > { %v1235_v45 = vadd.f32 %v1234_v42, %v1233_v35 }
 0x389   : > { %v1258_v46 = vadd.f32 %v1257_v44, %v1256_v43 }
 0x38a   : > { %4364 = vpush %v1235_v45 }
 0x38b   : > { %1259 = vadd.xlane.f32.xlu1 %v1258_v46 }
 0x38d   : > { %v1162_v47 = vpop.xlane.xlu1 %1161  ;;  %v1164_v48 = vpop.xlane.xlu2 %1163 }
 0x38e   : > { %v1268_v49 = vsel %vm1175_vm1, %v1162_v47, 0.0  ;;  %v1269_v51 = vsel %vm1175_vm1, %v1164_v48, 0.0 }
 0x38f   : > { %v1270_v52 = vadd.f32 %v1269_v51, %v1268_v49 }
 0x395   : > { %v1166_v53 = vpop.xlane.xlu1 %1165 }
 0x396   : > { %v1271_v55 = vsel %vm1175_vm1, %v1166_v53, 0.0 }
 0x397   : > { %v1272_v56 = vadd.f32 %v1271_v55, %v1270_v52 }
 0x399   : > { %1273 = vadd.xlane.f32.xlu1 %v1272_v56 }
 0x39d   : > { %v1138_v9 = vpop.xlane.xlu1 %1137 }
 0x39e   : > { %v1299_v33 = vsel %vm1175_vm1, %v1138_v9, 0.0 }
 0x3a1   : > { %1141 = vadd.xlane.f32.xlu1 %v5198_v57 }
 0x3a5   : > { %v1140_v50 = vpop.xlane.xlu1 %1139 }
 0x3a6   : > { %v1300_v32 = vsel %vm1175_vm1, %v1140_v50, 0.0 }
 0x3a7   : > { %v1301_v35 = vadd.f32 %v1300_v32, %v1299_v33 }
 0x3a9   : > { %1169 = vadd.xlane.f32.xlu1 %v1152_v58 }
 0x3b1   : > { %1143 = vadd.xlane.f32.xlu1 %v5203_v59 }
 0x3b3   : > { %s4363_s9 = spop %4362 }
 0x3b4   : > { %s1237_s10 = smul.f32 0.00078125, %s4363_s9 }
 0x3b6   : > { %s1239_s21 = smul.f32 %s1237_s10, %s1237_s10 }
 0x3b9   : > { %1171 = vadd.xlane.f32.xlu1 %v1153_v60 }
 0x3bb   : > { %s4365_s22 = spop %4364 }
 0x3bc   : > { %s1238_s24 = smul.f32 0.00078125, %s4365_s22 }
 0x3be   : > { %s1240_s25 = ssub.f32 %s1238_s24, %s1239_s21 }
 0x3c0   : > { %s1241_s26 = sadd.f32 1e-05, %s1240_s25 }
 0x3c1   : > { %1173 = vadd.xlane.f32.xlu1 %v1154_v61 }
 0x3c2   : > { %v1242_v62 = vstv %s1241_s26 }
 0x3c3   : > { %4528 = vrsqrt.f32 %v1242_v62  ;;  %vm1249_vm6 = vweird.f32 %v1242_v62 }
 0x3c9   : > { %v4529_v63 = vpop.eup %4528 }
 0x3ca   : > { %v1244_v0 = vmul.f32 %v4529_v63, %v1242_v62  ;;  %vm1250_vm5 = vweird.f32 %v4529_v63 }
 0x3cb   : > { %vm1251_vm7 = vmor %vm1249_vm6, %vm1250_vm5 }
 0x3cc   : > { %v1245_v2 = vmul.f32 %v4529_v63, %v1244_v0 }
 0x3ce   : > { %v1246_v3 = vmul.f32 0.5, %v1245_v2 }
 0x3d0   : > { %v1247_v5 = vsub.f32 1.5, %v1246_v3 }
 0x3d2   : > { %v1248_v7 = vmul.f32 %v4529_v63, %v1247_v5 }
 0x3d4   : > { %v1252_v8 = vsel %vm1251_vm7, %v4529_v63, %v1248_v7 }
 0x3d5   : > { %4366 = vpush %v1252_v8 }
 0x3e4   : > { %v1648_v12 = vpop.trf.xlu2 }
 0x3e5   : > { %4174 = vmatmul.msk.bf16.vlgmr.msrb.gmra.mxu1 %vm1051_vm0, %v1648_v12 }
 0x3f4   : > { %v1649_v18 = vpop.trf.xlu2 }
 0x3f5   : > { %4175 = vmatmul.msk.bf16.gmra.mxu1 %vm1051_vm0, %v1649_v18 }
 0x3fe   : > { %v1260_v13 = vpop.xlane.xlu1 %1259 }
 0x3ff   : > { %v1261_v14 = vrot.slane %v1260_v13, 4 }
 0x401   : > { %v1262_v15 = vadd.f32 %v1261_v14, %v1260_v13 }
 0x403   : > { %v1263_v16 = vrot.slane %v1262_v15, 2 }
 0x404   : > { %v1650_v29 = vpop.trf.xlu2 }
 0x405   : > { %v1264_v17 = vadd.f32 %v1263_v16, %v1262_v15  ;;  %4176 = vmatmul.msk.bf16.gmra.mxu1 %vm1051_vm0, %v1650_v29 }
 0x406   : > { %s5223_s27 = spop %4366 }
 0x407   : > { %v1265_v19 = vrot.slane %v1264_v17, 1 }
 0x409   : > { %v1266_v20 = vadd.f32 %v1265_v19, %v1264_v17 }
 0x40b   : > { %4368 = vpush %v1266_v20 }
 0x40c   : > { %v1274_v21 = vpop.xlane.xlu1 %1273 }
 0x40d   : > { %v1275_v22 = vrot.slane %v1274_v21, 4 }
 0x40f   : > { %v1276_v23 = vadd.f32 %v1275_v22, %v1274_v21 }
 0x411   : > { %v1277_v24 = vrot.slane %v1276_v23, 2 }
 0x413   : > { %v1278_v26 = vadd.f32 %v1277_v24, %v1276_v23 }
 0x414   : > { %v1142_v27 = vpop.xlane.xlu1 %1141  ;;  %v1651_v39 = vpop.trf.xlu2 }
 0x415   : > { %v1279_v28 = vrot.slane %v1278_v26, 1  ;;  %v1302_v34 = vsel %vm1175_vm1, %v1142_v27, 0.0  ;;  %4177 = vmatmul.msk.bf16.gmra.mxu1 %vm1051_vm0, %v1651_v39 }
 0x416   : > { %v1303_v37 = vadd.f32 %v1302_v34, %v1301_v35 }
 0x417   : > { %v1280_v30 = vadd.f32 %v1279_v28, %v1278_v26 }
 0x419   : > { %4370 = vpush %v1280_v30 }
 0x41c   : > { %v1170_v31 = vpop.xlane.xlu1 %1169 }
 0x41d   : > { %v1316_v7 = vsel %vm1175_vm1, %v1170_v31, 0.0 }
 0x424   : > { %1167 = vadd.xlane.f32.xlu2 %v1151_v36  ;;  %v1144_v38 = vpop.xlane.xlu1 %1143  ;;  %v1652_v44 = vpop.trf.xlu2 }
 0x425   : > { %v1304_v42 = vsel %vm1175_vm1, %v1144_v38, 0.0  ;;  %4178 = vmatmul.msk.bf16.gmra.mxu1 %vm1051_vm0, %v1652_v44 }
 0x426   : > { %v1305_v43 = vadd.f32 %v1304_v42, %v1303_v37 }
 0x428   : > { %1306 = vadd.xlane.f32.xlu1 %v1305_v43 }
 0x42c   : > { %v1172_v63 = vpop.xlane.xlu1 %1171 }
 0x42d   : > { %v1318_v50 = vsel %vm1175_vm1, %v1172_v63, 0.0 }
 0x434   : > { %v1653_v45 = vpop.trf.xlu2  ;;  %v1174_v2 = vpop.xlane.xlu1 %1173 }
 0x435   : > { %4179 = vmatmul.msk.bf16.gmra.mxu1 %vm1051_vm0, %v1653_v45  ;;  %v1320_v14 = vsel %vm1175_vm1, %v1174_v2, 0.0 }
 0x43c   : > { %s4369_s5 = spop %4368 }
 0x43d   : > { %s1282_s18 = smul.f32 0.00052083336, %s4369_s5 }
 0x43f   : > { %s1284_s23 = smul.f32 %s1282_s18, %s1282_s18 }
 0x444   : > { %v1654_v47 = vpop.trf.xlu2 }
 0x445   : > { %4180 = vmatmul.msk.bf16.gmra.mxu1 %vm1051_vm0, %v1654_v47 }
 0x44a   : > { %s4371_s6 = spop %4370 }
 0x44b   : > { %s1283_s7 = smul.f32 0.00052083336, %s4371_s6 }
 0x44d   : > { %s1285_s28 = ssub.f32 %s1283_s7, %s1284_s23 }
 0x44f   : > { %s1286_s29 = sadd.f32 1e-05, %s1285_s28 }
 0x451   : > { %v1287_v46 = vstv %s1286_s29 }
 0x452   : > { %4530 = vrsqrt.f32 %v1287_v46  ;;  %vm1294_vm9 = vweird.f32 %v1287_v46 }
 0x454   : > { %v1655_v58 = vpop.trf.xlu2 }
 0x455   : > { %4181 = vmatmul.msk.bf16.gmra.mxu1 %vm1051_vm0, %v1655_v58 }
 0x458   : > { %v4531_v48 = vpop.eup %4530 }
 0x459   : > { %v1289_v49 = vmul.f32 %v4531_v48, %v1287_v46  ;;  %vm1295_vm8 = vweird.f32 %v4531_v48 }
 0x45a   : > { %vm1296_vm10 = vmor %vm1294_vm9, %vm1295_vm8 }
 0x45b   : > { %v1290_v51 = vmul.f32 %v4531_v48, %v1289_v49 }
 0x45d   : > { %v1291_v52 = vmul.f32 0.5, %v1290_v51 }
 0x45f   : > { %v1292_v53 = vsub.f32 1.5, %v1291_v52 }
 0x461   : > { %v1293_v55 = vmul.f32 %v4531_v48, %v1292_v53 }
 0x462   : > { %v5228_v60 = vpop.f32.mrf.mxu1 }
 0x463   : > { %v1297_v56 = vsel %vm1296_vm10, %v4531_v48, %v1293_v55  ;;  %v1755_v22 = vmul.f32 %v5228_v60, %v5228_v60 }
 0x464   : > { %4372 = vpush %v1297_v56 }
 0x46a   : > { %v5230_v61 = vpop.f32.mrf.mxu1 }
 0x46b   : > { %v1756_v38 = vmul.f32 %v5230_v61, %v5230_v61 }
 0x472   : > { %v5232_v62 = vpop.f32.mrf.mxu1 }
 0x473   : > { %v1757_v39 = vmul.f32 %v5232_v62, %v5232_v62 }
 0x47a   : > { %v5234_v0 = vpop.f32.mrf.mxu1 }
 0x47b   : > { %v1758_v23 = vmul.f32 %v5234_v0, %v5234_v0 }
 0x482   : > { %v5236_v3 = vpop.f32.mrf.mxu1 }
 0x483   : > { %1743 = vadd.xlane.f32.xlu0 %v5236_v3 }
 0x48a   : > { %v5248_v24 = vpop.f32.mrf.mxu1 }
 0x48b   : > { %1771 = vadd.xlane.f32.xlu0 %v1758_v23  ;;  %v1760_v26 = vmul.f32 %v5248_v24, %v5248_v24  ;;  %v1759_v23 = vmul.f32 %v5236_v3, %v5236_v3 }
 0x493   : > { %1775 = vadd.xlane.f32.xlu0 %v1760_v26 }
 0x495   : > { %s5260_s30 = spop %4372 }
 0x497   : > { %v1168_v5 = vpop.xlane.xlu2 %1167 }
 0x498   : > { %v1315_v8 = vsel %vm1175_vm1, %v1168_v5, 0.0 }
 0x499   : > { %v1317_v9 = vadd.f32 %v1316_v7, %v1315_v8 }
 0x49b   : > { %v1307_v12 = vpop.xlane.xlu1 %1306  ;;  %v1319_v13 = vadd.f32 %v1318_v50, %v1317_v9 }
 0x49c   : > { %v1308_v15 = vrot.slane %v1307_v12, 4 }
 0x49d   : > { %v1321_v16 = vadd.f32 %v1320_v14, %v1319_v13 }
 0x49e   : > { %v1309_v17 = vadd.f32 %v1308_v15, %v1307_v12 }
 0x49f   : > { %1322 = vadd.xlane.f32.xlu1 %v1321_v16 }
 0x4a0   : > { %v1310_v18 = vrot.slane %v1309_v17, 2 }
 0x4a2   : > { %v1311_v19 = vadd.f32 %v1310_v18, %v1309_v17 }
 0x4a4   : > { %v1312_v20 = vrot.slane %v1311_v19, 1 }
 0x4a6   : > { %v1313_v21 = vadd.f32 %v1312_v20, %v1311_v19 }
 0x4a7   : > { %1735 = vadd.xlane.f32.xlu1 %v5228_v60 }
 0x4a8   : > { %4374 = vpush %v1313_v21 }
 0x4af   : > { %1765 = vadd.xlane.f32.xlu1 %v1755_v22 }
 0x4d9   : > { %s4375_s9 = spop %4374 }
 0x4da   : > { %s1331_s10 = smul.f32 0.000390625, %s4375_s9 }
 0x4dc   : > { %s1333_s21 = smul.f32 %s1331_s10, %s1331_s10 }
 0x512   : > { %v1323_v27 = vpop.xlane.xlu1 %1322 }
 0x513   : > { %v1324_v28 = vrot.slane %v1323_v27, 4 }
 0x515   : > { %v1325_v29 = vadd.f32 %v1324_v28, %v1323_v27 }
 0x517   : > { %v1326_v30 = vrot.slane %v1325_v29, 2 }
 0x519   : > { %v1327_v31 = vadd.f32 %v1326_v30, %v1325_v29 }
 0x51a   : > { %v1736_v32 = vpop.xlane.xlu1 %1735 }
 0x51b   : > { %v1785_v33 = vsel %vm1175_vm1, %v1736_v32, 0.0  ;;  %v1328_v34 = vrot.slane %v1327_v31, 1 }
 0x51c   : > { %1786 = vadd.xlane.f32.xlu1 %v1785_v33 }
 0x51d   : > { %v1329_v35 = vadd.f32 %v1328_v34, %v1327_v31 }
 0x51f   : > { %4376 = vpush %v1329_v35 }
 0x522   : > { %v1766_v36 = vpop.xlane.xlu1 %1765 }
 0x523   : > { %v1795_v37 = vsel %vm1175_vm1, %v1766_v36, 0.0 }
 0x524   : > { %1796 = vadd.xlane.f32.xlu1 %v1795_v37 }
 0x52c   : > { %1737 = vadd.xlane.f32.xlu1 %v5230_v61 }
 0x534   : > { %1739 = vadd.xlane.f32.xlu1 %v5232_v62 }
 0x53c   : > { %1767 = vadd.xlane.f32.xlu1 %v1756_v38 }
 0x544   : > { %1769 = vadd.xlane.f32.xlu1 %v1757_v39 }
 0x550   : > { %s4377_s22 = spop %4376 }
 0x551   : > { %s1332_s24 = smul.f32 0.000390625, %s4377_s22 }
 0x553   : > { %s1334_s25 = ssub.f32 %s1332_s24, %s1333_s21 }
 0x555   : > { %s1335_s26 = sadd.f32 1e-05, %s1334_s25 }
 0x557   : > { %v1336_v42 = vstv %s1335_s26 }
 0x558   : > { %4532 = vrsqrt.f32 %v1336_v42  ;;  %vm1343_vm12 = vweird.f32 %v1336_v42 }
 0x55e   : > { %v4533_v43 = vpop.eup %4532 }
 0x55f   : > { %v1338_v44 = vmul.f32 %v4533_v43, %v1336_v42  ;;  %vm1344_vm11 = vweird.f32 %v4533_v43 }
 0x560   : > { %vm1345_vm13 = vmor %vm1343_vm12, %vm1344_vm11 }
 0x561   : > { %v1339_v45 = vmul.f32 %v4533_v43, %v1338_v44 }
 0x563   : > { %v1340_v46 = vmul.f32 0.5, %v1339_v45 }
 0x565   : > { %v1341_v47 = vsub.f32 1.5, %v1340_v46  ;;  %v1744_v46 = vpop.xlane.xlu0 %1743 }
 0x567   : > { %v1342_v48 = vmul.f32 %v4533_v43, %v1341_v47 }
 0x569   : > { %v1346_v49 = vsel %vm1345_vm13, %v4533_v43, %v1342_v48 }
 0x56a   : > { %4378 = vpush %v1346_v49 }
 0x58f   : > { %v1787_v51 = vpop.xlane.xlu1 %1786 }
 0x590   : > { %v1788_v52 = vrot.slane %v1787_v51, 4 }
 0x592   : > { %v1789_v53 = vadd.f32 %v1788_v52, %v1787_v51 }
 0x594   : > { %v1790_v55 = vrot.slane %v1789_v53, 2 }
 0x596   : > { %v1791_v56 = vadd.f32 %v1790_v55, %v1789_v53  ;;  %v1772_v55 = vpop.xlane.xlu0 %1771 }
 0x597   : > { %v1797_v58 = vpop.xlane.xlu1 %1796 }
 0x598   : > { %v1798_v63 = vrot.slane %v1797_v58, 4  ;;  %v1792_v2 = vrot.slane %v1791_v56, 1 }
 0x59a   : > { %v1799_v5 = vadd.f32 %v1798_v63, %v1797_v58  ;;  %v1793_v7 = vadd.f32 %v1792_v2, %v1791_v56  ;;  %v5273_v56 = vpop.f32.mrf.mxu1  ;;  %v1864_v58 = vsel %vm1175_vm1, %v1744_v46, 0.0 }
 0x59b   : > { %s5268_s5 = spop %4378 }
 0x59c   : > { %4380 = vpush %v1793_v7  ;;  %v1800_v8 = vrot.slane %v1799_v5, 2 }
 0x59e   : > { %v1801_v9 = vadd.f32 %v1800_v8, %v1799_v5  ;;  %v1776_v8 = vpop.xlane.xlu0 %1775 }
 0x59f   : > { %v1738_v50 = vpop.xlane.xlu1 %1737 }
 0x5a0   : > { %v1802_v12 = vrot.slane %v1801_v9, 1  ;;  %v1822_v15 = vsel %vm1175_vm1, %v1738_v50, 0.0 }
 0x5a2   : > { %v1803_v13 = vadd.f32 %v1802_v12, %v1801_v9  ;;  %v5277_v50 = vpop.f32.mrf.mxu1  ;;  %v1877_v12 = vsel %vm1175_vm1, %v1772_v55, 0.0 }
 0x5a4   : > { %4382 = vpush %v1803_v13 }
 0x5a7   : > { %v1740_v14 = vpop.xlane.xlu1 %1739 }
 0x5a8   : > { %v1823_v16 = vsel %vm1175_vm1, %v1740_v14, 0.0 }
 0x5a9   : > { %v1824_v17 = vadd.f32 %v1823_v16, %v1822_v15  ;;  %v1880_v15 = vsel %vm1175_vm1, %v1776_v8, 0.0 }
 0x5ab   : > { %1825 = vadd.xlane.f32.xlu1 %v1824_v17  ;;  %v5283_v17 = vpop.f32.mrf.mxu1 }
 0x5af   : > { %v1768_v18 = vpop.xlane.xlu1 %1767 }
 0x5b0   : > { %v1834_v20 = vsel %vm1175_vm1, %v1768_v18, 0.0  ;;  %v1762_v18 = vmul.f32 %v5277_v50, %v5277_v50 }
 0x5b7   : > { %v1770_v19 = vpop.xlane.xlu1 %1769 }
 0x5b8   : > { %v1835_v21 = vsel %vm1175_vm1, %v1770_v19, 0.0  ;;  %v1761_v19 = vmul.f32 %v5273_v56, %v5273_v56 }
 0x5b9   : > { %v1836_v22 = vadd.f32 %v1835_v21, %v1834_v20  ;;  %v1763_v20 = vmul.f32 %v5283_v17, %v5283_v17  ;;  %v5293_v21 = vpop.f32.mrf.mxu1 }
 0x5bb   : > { %1837 = vadd.xlane.f32.xlu1 %v1836_v22  ;;  %v1764_v22 = vmul.f32 %v5293_v21, %v5293_v21 }
 0x5c3   : > { %1741 = vadd.xlane.f32.xlu1 %v5234_v0 }
 0x5cb   : > { %1745 = vadd.xlane.f32.xlu1 %v5248_v24 }
 0x5cd   : > { %s4381_s18 = spop %4380 }
 0x5ce   : > { %s1805_s23 = smul.f32 0.0015625, %s4381_s18 }
 0x5d0   : > { %s1807_s6 = smul.f32 %s1805_s23, %s1805_s23 }
 0x5d3   : > { %1773 = vadd.xlane.f32.xlu1 %v1759_v23 }
 0x5d5   : > { %s4383_s7 = spop %4382 }
 0x5d6   : > { %s1806_s28 = smul.f32 0.0015625, %s4383_s7 }
 0x5d8   : > { %s1808_s29 = ssub.f32 %s1806_s28, %s1807_s6 }
 0x5da   : > { %s1809_s9 = sadd.f32 1e-05, %s1808_s29 }
 0x5dc   : > { %v1810_v26 = vstv %s1809_s9 }
 0x5dd   : > { %4534 = vrsqrt.f32 %v1810_v26  ;;  %vm1817_vm15 = vweird.f32 %v1810_v26 }
 0x5e3   : > { %v4535_v27 = vpop.eup %4534 }
 0x5e4   : > { %v1812_v28 = vmul.f32 %v4535_v27, %v1810_v26  ;;  %vm1818_vm14 = vweird.f32 %v4535_v27 }
 0x5e5   : > { %vm1819_vm2 = vmor %vm1817_vm15, %vm1818_vm14 }
 0x5e6   : > { %v1813_v29 = vmul.f32 %v4535_v27, %v1812_v28 }
 0x5e8   : > { %v1814_v30 = vmul.f32 0.5, %v1813_v29 }
 0x5ea   : > { %v1815_v31 = vsub.f32 1.5, %v1814_v30 }
 0x5ec   : > { %v1816_v32 = vmul.f32 %v4535_v27, %v1815_v31 }
 0x5ee   : > { %v1820_v33 = vsel %vm1819_vm2, %v4535_v27, %v1816_v32 }
 0x5ef   : > { %4384 = vpush %v1820_v33 }
 0x61e   : > { %v1826_v34 = vpop.xlane.xlu1 %1825 }
 0x61f   : > { %v1827_v35 = vrot.slane %v1826_v34, 4 }
 0x620   : > { %s5295_s10 = spop %4384 }
 0x621   : > { %v1828_v36 = vadd.f32 %v1827_v35, %v1826_v34 }
 0x623   : > { %v1829_v37 = vrot.slane %v1828_v36, 2 }
 0x625   : > { %v1830_v38 = vadd.f32 %v1829_v37, %v1828_v36 }
 0x627   : > { %v1831_v39 = vrot.slane %v1830_v38, 1 }
 0x629   : > { %v1832_v42 = vadd.f32 %v1831_v39, %v1830_v38 }
 0x62b   : > { %4386 = vpush %v1832_v42 }
 0x62e   : > { %v1838_v43 = vpop.xlane.xlu1 %1837 }
 0x62f   : > { %v1839_v44 = vrot.slane %v1838_v43, 4 }
 0x631   : > { %v1840_v45 = vadd.f32 %v1839_v44, %v1838_v43 }
 0x633   : > { %v1841_v47 = vrot.slane %v1840_v45, 2 }
 0x635   : > { %v1842_v48 = vadd.f32 %v1841_v47, %v1840_v45 }
 0x636   : > { %v1742_v49 = vpop.xlane.xlu1 %1741 }
 0x637   : > { %v1843_v51 = vrot.slane %v1842_v48, 1  ;;  %v1863_v53 = vsel %vm1175_vm1, %v1742_v49, 0.0 }
 0x638   : > { %v1865_v63 = vadd.f32 %v1864_v58, %v1863_v53 }
 0x639   : > { %v1844_v52 = vadd.f32 %v1843_v51, %v1842_v48 }
 0x63b   : > { %4388 = vpush %v1844_v52 }
 0x63e   : > { %v1746_v2 = vpop.xlane.xlu1 %1745 }
 0x63f   : > { %v1866_v5 = vsel %vm1175_vm1, %v1746_v2, 0.0 }
 0x640   : > { %v1867_v7 = vadd.f32 %v1866_v5, %v1865_v63 }
 0x642   : > { %1868 = vadd.xlane.f32.xlu1 %v1867_v7 }
 0x646   : > { %v1774_v9 = vpop.xlane.xlu1 %1773 }
 0x647   : > { %v1878_v13 = vsel %vm1175_vm1, %v1774_v9, 0.0 }
 0x648   : > { %v1879_v14 = vadd.f32 %v1878_v13, %v1877_v12 }
 0x64a   : > { %1747 = vadd.xlane.f32.xlu1 %v5273_v56  ;;  %v1881_v16 = vadd.f32 %v1880_v15, %v1879_v14 }
 0x64c   : > { %1882 = vadd.xlane.f32.xlu0 %v1881_v16 }
 0x652   : > { %1751 = vadd.xlane.f32.xlu1 %v5283_v17 }
 0x654   : > { %1749 = vadd.xlane.f32.xlu0 %v5277_v50 }
 0x65a   : > { %1779 = vadd.xlane.f32.xlu1 %v1762_v18 }
 0x65c   : > { %1777 = vadd.xlane.f32.xlu0 %v1761_v19  ;;  %s4387_s21 = spop %4386 }
 0x65d   : > { %s1846_s22 = smul.f32 0.00078125, %s4387_s21 }
 0x65f   : > { %s1848_s24 = smul.f32 %s1846_s22, %s1846_s22 }
 0x662   : > { %1781 = vadd.xlane.f32.xlu1 %v1763_v20 }
 0x664   : > { %1753 = vadd.xlane.f32.xlu0 %v5293_v21 }
 0x66c   : > { %s4389_s25 = spop %4388  ;;  %1783 = vadd.xlane.f32.xlu0 %v1764_v22  ;;  %v902_v22 = vpop.f32.mrf.mxu2 }
 0x66d   : > { %s1847_s26 = smul.f32 0.00078125, %s4389_s25 }
 0x66f   : > { %s1849_s18 = ssub.f32 %s1847_s26, %s1848_s24 }
 0x671   : > { %s1850_s23 = sadd.f32 1e-05, %s1849_s18 }
 0x673   : > { %v1851_v23 = vstv %s1850_s23 }
 0x674   : > { %4536 = vrsqrt.f32 %v1851_v23  ;;  %vm1858_vm4 = vweird.f32 %v1851_v23 }
 0x67a   : > { %v4537_v26 = vpop.eup %4536 }
 0x67b   : > { %v1853_v27 = vmul.f32 %v4537_v26, %v1851_v23  ;;  %vm1859_vm3 = vweird.f32 %v4537_v26 }
 0x67c   : > { %vm1860_vm5 = vmor %vm1858_vm4, %vm1859_vm3 }
 0x67d   : > { %v1854_v28 = vmul.f32 %v4537_v26, %v1853_v27 }
 0x67f   : > { %v1855_v29 = vmul.f32 0.5, %v1854_v28  ;;  %v1005_v28 = vlaneseq }
 0x681   : > { %v1856_v30 = vsub.f32 1.5, %v1855_v29  ;;  %v1992_v29 = vstv %s5295_s10 }
 0x683   : > { %v1857_v31 = vmul.f32 %v4537_v26, %v1856_v30  ;;  %v5309_v30 = vand.u32 127, %v1005_v28 }
 0x685   : > { %v1861_v32 = vsel %vm1860_vm5, %v4537_v26, %v1857_v31  ;;  %v916_v26 = vpop.f32.mrf.mxu3  ;;  %v2009_v31 = vmul.f32 %v1992_v29, %v5228_v60  ;;  %vm1007_vm6 = vcmp.lt.s32.totalorder %v5309_v30, 80 }
 0x686   : > { %4390 = vpush %v1861_v32  ;;  %v904_v32 = vpop.f32.mrf.mxu2 }
 0x6b5   : > { %v1869_v33 = vpop.xlane.xlu1 %1868 }
 0x6b6   : > { %v1870_v34 = vrot.slane %v1869_v33, 4 }
 0x6b7   : > { %s5312_s6 = spop %4390 }
 0x6b8   : > { %v1871_v35 = vadd.f32 %v1870_v34, %v1869_v33  ;;  %v980_v33 = vpack.c.bf16 %v916_v26, %v902_v22  ;;  %v918_v34 = vpop.f32.mrf.mxu3 }
 0x6ba   : > { %v1872_v36 = vrot.slane %v1871_v35, 2 }
 0x6bc   : > { %v1873_v37 = vadd.f32 %v1872_v36, %v1871_v35  ;;  %v986_v35 = vpack.c.bf16 %v918_v34, %v904_v32  ;;  %v5317_v36 = vsel %vm1007_vm6, %v2009_v31, -1e+30 }
 0x6bd   : > { %v1748_v38 = vpop.xlane.xlu1 %1747 }
 0x6be   : > { %v1874_v39 = vrot.slane %v1873_v37, 1  ;;  %v1908_v63 = vsel %vm1175_vm1, %v1748_v38, 0.0  ;;  %v1975_v38 = vstv %s5312_s6 }
 0x6bf   : > { %v1883_v42 = vpop.xlane.xlu0 %1882 }
 0x6c0   : > { %v1884_v43 = vrot.slane %v1883_v42, 4  ;;  %v1875_v44 = vadd.f32 %v1874_v39, %v1873_v37  ;;  %v2321_v37 = vunpack.c.h.b16 %v980_v33  ;;  %v2322_v39 = vunpack.c.h.b16 %v986_v35 }
 0x6c2   : > { %v1885_v45 = vadd.f32 %v1884_v43, %v1883_v42  ;;  %4392 = vpush %v1875_v44  ;;  %v2323_v60 = vpack.c.b16 %v2322_v39, %v2321_v37  ;;  %v2010_v42 = vmul.f32 %v1975_v38, %v5230_v61  ;;  %v2301_v61 = vunpack.c.l.b16 %v980_v33 }
 0x6c4   : > { %v1886_v46 = vrot.slane %v1885_v45, 2  ;;  %2356 = vmatpush.bf16.msra.mxu0 %v2323_v60  ;;  %v5326_v43 = vsel %vm1007_vm6, %v2010_v42, -1e+30 }
 0x6c5   : > { %v1752_v47 = vpop.xlane.xlu1 %1751 }
 0x6c6   : > { %v1887_v48 = vadd.f32 %v1886_v46, %v1885_v45  ;;  %v1911_v5 = vsel %vm1175_vm1, %v1752_v47, 0.0 }
 0x6c7   : > { %v1750_v49 = vpop.xlane.xlu0 %1749 }
 0x6c8   : > { %v1888_v51 = vrot.slane %v1887_v48, 1  ;;  %v1909_v58 = vsel %vm1175_vm1, %v1750_v49, 0.0 }
 0x6c9   : > { %v1910_v2 = vadd.f32 %v1909_v58, %v1908_v63 }
 0x6ca   : > { %v1889_v52 = vadd.f32 %v1888_v51, %v1887_v48  ;;  %v2302_v48 = vunpack.c.l.b16 %v986_v35 }
 0x6cb   : > { %v1912_v8 = vadd.f32 %v1911_v5, %v1910_v2 }
 0x6cc   : > { %4394 = vpush %v1889_v52  ;;  %v2303_v52 = vpack.c.b16 %v2302_v48, %v2301_v61 }
 0x6cd   : > { %v1780_v53 = vpop.xlane.xlu1 %1779 }
 0x6ce   : > { %v1925_v15 = vsel %vm1175_vm1, %v1780_v53, 0.0 }
 0x6cf   : > { %v1778_v55 = vpop.xlane.xlu0 %1777 }
 0x6d0   : > { %v1924_v14 = vsel %vm1175_vm1, %v1778_v55, 0.0 }
 0x6d1   : > { %v1926_v18 = vadd.f32 %v1925_v15, %v1924_v14 }
 0x6d5   : > { %v1782_v12 = vpop.xlane.xlu1 %1781 }
 0x6d6   : > { %v1927_v16 = vsel %vm1175_vm1, %v1782_v12, 0.0 }
 0x6d7   : > { %v1754_v7 = vpop.xlane.xlu0 %1753  ;;  %v1928_v19 = vadd.f32 %v1927_v16, %v1926_v18 }
 0x6d8   : > { %v1913_v9 = vsel %vm1175_vm1, %v1754_v7, 0.0 }
 0x6d9   : > { %v1914_v13 = vadd.f32 %v1913_v9, %v1912_v8 }
 0x6db   : > { %1915 = vadd.xlane.f32.xlu1 %v1914_v13 }
 0x6df   : > { %v1784_v20 = vpop.xlane.xlu0 %1783 }
 0x6e0   : > { %v1929_v23 = vsel %vm1175_vm1, %v1784_v20, 0.0 }
 0x6e1   : > { %v1930_v27 = vadd.f32 %v1929_v23, %v1928_v19 }
 0x6e3   : > { %1931 = vadd.xlane.f32.xlu0 %v1930_v27 }
 0x6eb   : > { %2041 = vmax.xlane.f32.xlu0 %v5317_v36 }
 0x6f3   : > { %2043 = vmax.xlane.f32.xlu0 %v5326_v43  ;;  %s4393_s7 = spop %4392 }
 0x6f4   : > { %s1891_s28 = smul.f32 0.00052083336, %s4393_s7 }
 0x6f6   : > { %s1893_s29 = smul.f32 %s1891_s28, %s1891_s28 }
 0x6fd   : > { %s4395_s9 = spop %4394 }
 0x6fe   : > { %s1892_s10 = smul.f32 0.00052083336, %s4395_s9 }
 0x700   : > { %s1894_s21 = ssub.f32 %s1892_s10, %s1893_s29 }
 0x702   : > { %s1895_s22 = sadd.f32 1e-05, %s1894_s21 }
 0x704   : > { %v1896_v44 = vstv %s1895_s22 }
 0x705   : > { %4538 = vrsqrt.f32 %v1896_v44  ;;  %vm1903_vm8 = vweird.f32 %v1896_v44 }
 0x70b   : > { %v4539_v45 = vpop.eup %4538 }
 0x70c   : > { %v1898_v46 = vmul.f32 %v4539_v45, %v1896_v44  ;;  %vm1904_vm7 = vweird.f32 %v4539_v45  ;;  %v5345_v44 = vpop.f32.mrf.mxu0 }
 0x70d   : > { %vm1905_vm9 = vmor %vm1903_vm8, %vm1904_vm7 }
 0x70e   : > { %v1899_v47 = vmul.f32 %v4539_v45, %v1898_v46 }
 0x710   : > { %v1900_v49 = vmul.f32 0.5, %v1899_v47 }
 0x712   : > { %v1901_v51 = vsub.f32 1.5, %v1900_v49 }
 0x714   : > { %v1902_v53 = vmul.f32 %v4539_v45, %v1901_v51 }
 0x715   : > { %2305 = vxpose.xlu1.c.b16.start.end [1/1] (short) %v2303_v52, 128 }
 0x716   : > { %v1906_v55 = vsel %vm1905_vm9, %v4539_v45, %v1902_v53  ;;  %v5347_v45 = vpop.f32.mrf.mxu0 }
 0x717   : > { %4396 = vpush %v1906_v55 }
 0x748   : > { %s5329_s24 = spop %4396 }
 0x74e   : > { %v1916_v58 = vpop.xlane.xlu1 %1915 }
 0x74f   : > { %v1917_v63 = vrot.slane %v1916_v58, 4 }
 0x751   : > { %v1918_v2 = vadd.f32 %v1917_v63, %v1916_v58  ;;  %v1958_v63 = vstv %s5329_s24 }
 0x753   : > { %v1919_v5 = vrot.slane %v1918_v2, 2 }
 0x755   : > { %v1920_v7 = vadd.f32 %v1919_v5, %v1918_v2  ;;  %v2011_v2 = vmul.f32 %v1975_v38, %v5232_v62 }
 0x756   : > { %v1932_v8 = vpop.xlane.xlu0 %1931 }
 0x757   : > { %v1933_v9 = vrot.slane %v1932_v8, 4  ;;  %v1921_v12 = vrot.slane %v1920_v7, 1 }
 0x759   : > { %v1934_v13 = vadd.f32 %v1933_v9, %v1932_v8  ;;  %v1922_v14 = vadd.f32 %v1921_v12, %v1920_v7  ;;  %v2012_v7 = vmul.f32 %v1958_v63, %v5234_v0  ;;  %v2027_v8 = vsel %vm1007_vm6, %v2011_v2, -1e+30 }
 0x75a   : > { %v2013_v0 = vmul.f32 %v1958_v63, %v5236_v3 }
 0x75b   : > { %4398 = vpush %v1922_v14  ;;  %v1935_v15 = vrot.slane %v1934_v13, 2  ;;  %v2028_v12 = vsel %vm1007_vm6, %v2012_v7, -1e+30 }
 0x75c   : > { %v5382_v38 = vsel %vm1007_vm6, %v2013_v0, -1e+30 }
 0x75d   : > { %v1936_v16 = vadd.f32 %v1935_v15, %v1934_v13  ;;  %v2014_v13 = vmul.f32 %v1958_v63, %v5248_v24 }
 0x75e   : > { %v2042_v51 = vpop.xlane.xlu0 %2041 }
 0x75f   : > { %v1937_v18 = vrot.slane %v1936_v16, 1  ;;  %v2073_v58 = vsub.f32 %v5317_v36, %v2042_v51  ;;  %v2030_v62 = vsel %vm1007_vm6, %v2014_v13, -1e+30 }
 0x761   : > { %v1938_v19 = vadd.f32 %v1937_v18, %v1936_v16  ;;  %v2089_v5 = vmul.f32 1.442695, %v2073_v58  ;;  %v1720_v18 = vpop.f32.mrf.mxu1 }
 0x763   : > { %4400 = vpush %v1938_v19 }
 0x766   : > { %v2044_v9 = vpop.xlane.xlu0 %2043 }
 0x767   : > { %v2074_v36 = vsub.f32 %v5326_v43, %v2044_v9 }
 0x769   : > { %v2091_v15 = vmul.f32 1.442695, %v2074_v36 }
 0x78c   : > { %s4399_s25 = spop %4398 }
 0x78d   : > { %s1940_s26 = smul.f32 0.000390625, %s4399_s25 }
 0x78f   : > { %s1942_s18 = smul.f32 %s1940_s26, %s1940_s26 }
 0x794   : > { %s4401_s23 = spop %4400 }
 0x795   : > { %s1941_s7 = smul.f32 0.000390625, %s4401_s23 }
 0x797   : > { %s1943_s28 = ssub.f32 %s1941_s7, %s1942_s18 }
 0x799   : > { %s1944_s29 = sadd.f32 1e-05, %s1943_s28 }
 0x79b   : > { %v1945_v20 = vstv %s1944_s29 }
 0x79c   : > { %4540 = vrsqrt.f32 %v1945_v20  ;;  %vm1952_vm11 = vweird.f32 %v1945_v20 }
 0x79d   : > { %4542 = vpow2.f32 %v2089_v5 }
 0x79e   : > { %4544 = vpow2.f32 %v2091_v15 }
 0x7a2   : > { %v4541_v22 = vpop.eup %4540 }
 0x7a3   : > { %v1947_v23 = vmul.f32 %v4541_v22, %v1945_v20  ;;  %vm1953_vm10 = vweird.f32 %v4541_v22  ;;  %v4543_v14 = vpop.eup %4542 }
 0x7a4   : > { %vm1954_vm12 = vmor %vm1952_vm11, %vm1953_vm10  ;;  %v4545_v16 = vpop.eup %4544 }
 0x7a5   : > { %v1948_v26 = vmul.f32 %v4541_v22, %v1947_v23 }
 0x7a7   : > { %v1949_v27 = vmul.f32 0.5, %v1948_v26 }
 0x7a9   : > { %v1950_v28 = vsub.f32 1.5, %v1949_v27 }
 0x7ab   : > { %v1951_v29 = vmul.f32 %v4541_v22, %v1950_v28 }
 0x7ad   : > { %v1955_v31 = vsel %vm1954_vm12, %v4541_v22, %v1951_v29  ;;  %v1722_v22 = vpop.f32.mrf.mxu1 }
 0x7ae   : > { %4402 = vpush %v1955_v31 }
 0x7b5   : > { %v1725_v26 = vpop.f32.mrf.mxu1 }
 0x7c1   : > { %v2313_v32 = vpop.trf.xlu1 }
 0x7c2   : > { %4182 = vmatmul.msk.bf16.vlgmr.msra.gmra.mxu0 %vm1051_vm0, %v2313_v32 }
 0x7d1   : > { %v2314_v33 = vpop.trf.xlu1 }
 0x7d2   : > { %4183 = vmatmul.msk.bf16.gmra.mxu0 %vm1051_vm0, %v2314_v33 }
 0x7df   : > { %s4403_s9 = spop %4402 }
 0x7e0   : > { %v5333_v34 = vstv %s4403_s9 }
 0x7e1   : > { %v2018_v35 = vmul.f32 %v5333_v34, %v5293_v21  ;;  %v2315_v37 = vpop.trf.xlu1  ;;  %v5349_v21 = vpop.f32.mrf.mxu0  ;;  %v2015_v24 = vmul.f32 %v5333_v34, %v5273_v56  ;;  %v2016_v43 = vmul.f32 %v5333_v34, %v5277_v50  ;;  %v2017_v20 = vmul.f32 %v5333_v34, %v5283_v17 }
 0x7e2   : > { %4184 = vmatmul.msk.bf16.gmra.mxu0 %vm1051_vm0, %v2315_v37  ;;  %v2020_v50 = vmul.f32 %v5333_v34, %v1722_v22  ;;  %v2021_v27 = vmul.f32 %v5333_v34, %v1725_v26 }
 0x7e3   : > { %v5340_v39 = vsel %vm1007_vm6, %v2018_v35, -1e+30  ;;  %v5391_v19 = vsel %vm1007_vm6, %v2015_v24, -1e+30  ;;  %v2032_v3 = vsel %vm1007_vm6, %v2016_v43, -1e+30 }
 0x7e4   : > { %v5400_v56 = vsel %vm1007_vm6, %v2017_v20, -1e+30  ;;  %v5406_v23 = vsel %vm1007_vm6, %v2020_v50, -1e+30  ;;  %v5412_v17 = vsel %vm1007_vm6, %v2021_v27, -1e+30 }
 0x7e5   : > { %2059 = vmax.xlane.f32.xlu1 %v5340_v39 }
 0x7e9   : > { %v5352_v47 = vpop.f32.mrf.mxu0 }
 0x7f1   : > { %v2316_v60 = vpop.trf.xlu1  ;;  %v5354_v61 = vpop.f32.mrf.mxu0 }
 0x7f2   : > { %4185 = vmatmul.msk.bf16.gmra.mxu0 %vm1051_vm0, %v2316_v60 }
 0x7f9   : > { %v5357_v49 = vpop.f32.mrf.mxu0 }
 0x801   : > { %v2317_v42 = vpop.trf.xlu1 }
 0x802   : > { %4186 = vmatmul.msk.bf16.gmra.mxu0 %vm1051_vm0, %v2317_v42 }
 0x811   : > { %v2318_v46 = vpop.trf.xlu1 }
 0x812   : > { %4187 = vmatmul.msk.bf16.gmra.mxu0 %vm1051_vm0, %v2318_v46 }
 0x821   : > { %v2319_v48 = vpop.trf.xlu1 }
 0x822   : > { %4188 = vmatmul.msk.bf16.gmra.mxu0 %vm1051_vm0, %v2319_v48  ;;  %v1727_v48 = vpop.f32.mrf.mxu1 }
 0x823   : > { %v2022_v22 = vmul.f32 %v5333_v34, %v1727_v48 }
 0x825   : > { %v5436_v26 = vsel %vm1007_vm6, %v2022_v22, -1e+30 }
 0x82a   : > { %v1730_v7 = vpop.f32.mrf.mxu1 }
 0x831   : > { %v2320_v53 = vpop.trf.xlu1 }
 0x832   : > { %4189 = vmatmul.msk.bf16.gmra.mxu0 %vm1051_vm0, %v2320_v53 }
 0x83f   : > { %v5359_v52 = vpop.f32.mrf.mxu0 }
 0x840   : > { %2398 = vadd.xlane.f32.xlu0 %v5359_v52  ;;  %v2418_v55 = vmul.f32 %v5359_v52, %v5359_v52 }
 0x842   : > { %2428 = vadd.xlane.f32.xlu2 %v2418_v55 }
 0x848   : > { %2045 = vmax.xlane.f32.xlu0 %v2027_v8 }
 0x84a   : > { %2047 = vmax.xlane.f32.xlu2 %v2028_v12 }
 0x850   : > { %2121 = vadd.xlane.f32.xlu0 %v4543_v14 }
 0x852   : > { %2051 = vmax.xlane.f32.xlu2 %v2030_v62 }
 0x858   : > { %2049 = vmax.xlane.f32.xlu0 %v5382_v38 }
 0x85a   : > { %2123 = vadd.xlane.f32.xlu2 %v4545_v16 }
 0x860   : > { %2053 = vmax.xlane.f32.xlu0 %v5391_v19 }
 0x862   : > { %2055 = vmax.xlane.f32.xlu2 %v2032_v3 }
 0x868   : > { %2057 = vmax.xlane.f32.xlu0 %v5400_v56 }
 0x870   : > { %2063 = vmax.xlane.f32.xlu0 %v5406_v23 }
 0x878   : > { %2065 = vmax.xlane.f32.xlu0 %v5412_v17 }
 0x8b3   : > { %v2399_v28 = vpop.xlane.xlu0 %2398 }
 0x8b4   : > { %v2448_v2 = vsel %vm1175_vm1, %v2399_v28, 0.0 }
 0x8b5   : > { %v2429_v29 = vpop.xlane.xlu2 %2428 }
 0x8b6   : > { %v2458_v5 = vsel %vm1175_vm1, %v2429_v29, 0.0 }
 0x8bb   : > { %v2046_v31 = vpop.xlane.xlu0 %2045 }
 0x8bc   : > { %v2075_v32 = vsub.f32 %v2027_v8, %v2046_v31 }
 0x8bd   : > { %v2048_v33 = vpop.xlane.xlu2 %2047 }
 0x8be   : > { %v2093_v35 = vmul.f32 1.442695, %v2075_v32  ;;  %v2076_v37 = vsub.f32 %v2028_v12, %v2048_v33  ;;  %v2019_v12 = vmul.f32 %v5333_v34, %v1720_v18  ;;  %v1732_v18 = vpop.f32.mrf.mxu1  ;;  %v2060_v33 = vpop.xlane.xlu1 %2059 }
 0x8c0   : > { %4546 = vpow2.f32 %v2093_v35  ;;  %v2095_v60 = vmul.f32 1.442695, %v2076_v37  ;;  %v2082_v37 = vsub.f32 %v5340_v39, %v2060_v33 }
 0x8c2   : > { %4548 = vpow2.f32 %v2095_v60 }
 0x8c3   : > { %v2122_v51 = vpop.xlane.xlu0 %2121 }
 0x8c4   : > { %4550 = vrcp.f32 %v2122_v51 }
 0x8c5   : > { %v2052_v42 = vpop.xlane.xlu2 %2051 }
 0x8c6   : > { %v5415_v46 = vpop.eup %4546  ;;  %v2078_v55 = vsub.f32 %v2030_v62, %v2052_v42  ;;  %v5426_v62 = vsel %vm1007_vm6, %v2019_v12, -1e+30 }
 0x8c7   : > { %2125 = vadd.xlane.f32.xlu2 %v5415_v46 }
 0x8c8   : > { %v5418_v53 = vpop.eup %4548  ;;  %v2099_v63 = vmul.f32 1.442695, %v2078_v55 }
 0x8c9   : > { %2127 = vadd.xlane.f32.xlu0 %v5418_v53 }
 0x8ca   : > { %v4551_v9 = vpop.eup %4550 }
 0x8cb   : > { %v2050_v8 = vpop.xlane.xlu0 %2049  ;;  %v2169_v13 = vmul.f32 %v4551_v9, %v4543_v14  ;;  %v2024_v14 = vmul.f32 %v5333_v34, %v1732_v18 }
 0x8cc   : > { %v2077_v27 = vsub.f32 %v5382_v38, %v2050_v8  ;;  %v5453_v38 = vpop.f32.mrf.mxu0 }
 0x8cd   : > { %v2124_v58 = vpop.xlane.xlu2 %2123  ;;  %v5442_v28 = vsel %vm1007_vm6, %v2024_v14, -1e+30 }
 0x8ce   : > { %4552 = vrcp.f32 %v2124_v58  ;;  %v2097_v29 = vmul.f32 1.442695, %v2077_v27 }
 0x8cf   : > { %2449 = vadd.xlane.f32.xlu2 %v2448_v2  ;;  %4554 = vpow2.f32 %v2099_v63 }
 0x8d1   : > { %2459 = vadd.xlane.f32.xlu0 %v2458_v5 }
 0x8d3   : > { %v2054_v50 = vpop.xlane.xlu0 %2053 }
 0x8d4   : > { %v4553_v36 = vpop.eup %4552  ;;  %v2079_v48 = vsub.f32 %v5391_v19, %v2054_v50  ;;  %v5461_v51 = vpop.f32.mrf.mxu0 }
 0x8d5   : > { %v2170_v15 = vmul.f32 %v4553_v36, %v4545_v16  ;;  %v2056_v0 = vpop.xlane.xlu2 %2055  ;;  %v5429_v43 = vpop.eup %4554  ;;  %v2420_v8 = vmul.f32 %v5461_v51, %v5461_v51 }
 0x8d6   : > { %v2080_v20 = vsub.f32 %v2032_v3, %v2056_v0  ;;  %v2023_v3 = vmul.f32 %v5333_v34, %v1730_v7  ;;  %v2107_v34 = vmul.f32 1.442695, %v2082_v37  ;;  %v2101_v58 = vmul.f32 1.442695, %v2079_v48 }
 0x8d7   : > { %2061 = vmax.xlane.f32.xlu2 %v5426_v62  ;;  %v2185_v24 = vpack.c.bf16 %v2170_v15, %v2169_v13  ;;  %v2419_v7 = vmul.f32 %v5453_v38, %v5453_v38 }
 0x8d8   : > { %v2103_v16 = vmul.f32 1.442695, %v2080_v20  ;;  %v5448_v32 = vsel %vm1007_vm6, %v2023_v3, -1e+30 }
 0x8d9   : > { %2131 = vadd.xlane.f32.xlu0 %v5429_v43  ;;  %2205 = vmatmul.bf16.vlgmr.msrb.gmra.mxu2 %v2185_v24 }
 0x8da   : > { %4556 = vpow2.f32 %v2103_v16 }
 0x8db   : > { %v2058_v31 = vpop.xlane.xlu0 %2057  ;;  %4558 = vpow2.f32 %v2097_v29 }
 0x8dc   : > { %4560 = vpow2.f32 %v2107_v34  ;;  %v2081_v5 = vsub.f32 %v5400_v56, %v2058_v31 }
 0x8dd   : > { %4562 = vpow2.f32 %v2101_v58 }
 0x8df   : > { %2067 = vmax.xlane.f32.xlu2 %v5436_v26 }
 0x8e0   : > { %v5451_v35 = vpop.eup %4556 }
 0x8e1   : > { %2071 = vmax.xlane.f32.xlu0 %v5442_v28  ;;  %v5457_v60 = vpop.eup %4558 }
 0x8e2   : > { %v5466_v39 = vpop.eup %4560 }
 0x8e3   : > { %v2064_v42 = vpop.xlane.xlu0 %2063  ;;  %v5469_v2 = vpop.eup %4562 }
 0x8e4   : > { %v2084_v55 = vsub.f32 %v5406_v23, %v2064_v42  ;;  %v2105_v23 = vmul.f32 1.442695, %v2081_v5 }
 0x8e6   : > { %v2111_v63 = vmul.f32 1.442695, %v2084_v55 }
 0x8e7   : > { %2069 = vmax.xlane.f32.xlu2 %v5448_v32 }
 0x8e8   : > { %4564 = vpow2.f32 %v2111_v63 }
 0x8e9   : > { %2135 = vadd.xlane.f32.xlu0 %v5451_v35  ;;  %4566 = vpow2.f32 %v2105_v23 }
 0x8eb   : > { %v2066_v12 = vpop.xlane.xlu0 %2065 }
 0x8ee   : > { %v5472_v19 = vpop.eup %4564 }
 0x8ef   : > { %2129 = vadd.xlane.f32.xlu2 %v5457_v60  ;;  %v5480_v9 = vpop.eup %4566 }
 0x8f1   : > { %2402 = vadd.xlane.f32.xlu0 %v5461_v51 }
 0x8f7   : > { %2400 = vadd.xlane.f32.xlu2 %v5453_v38 }
 0x8f9   : > { %2139 = vadd.xlane.f32.xlu0 %v5466_v39 }
 0x8ff   : > { %2133 = vadd.xlane.f32.xlu2 %v5469_v2 }
 0x901   : > { %2143 = vadd.xlane.f32.xlu0 %v5472_v19 }
 0x907   : > { %2430 = vadd.xlane.f32.xlu2 %v2419_v7 }
 0x909   : > { %2432 = vadd.xlane.f32.xlu0 %v2420_v8 }
 0x90f   : > { %2137 = vadd.xlane.f32.xlu2 %v5480_v9 }
 0x93a   : > { %v2126_v36 = vpop.xlane.xlu2 %2125 }
 0x93b   : > { %4568 = vrcp.f32 %v2126_v36 }
 0x93c   : > { %v2128_v56 = vpop.xlane.xlu0 %2127 }
 0x93d   : > { %4570 = vrcp.f32 %v2128_v56 }
 0x941   : > { %v4569_v13 = vpop.eup %4568 }
 0x942   : > { %v2450_v15 = vpop.xlane.xlu2 %2449  ;;  %v2171_v22 = vmul.f32 %v4569_v13, %v5415_v46  ;;  %v2085_v46 = vsub.f32 %v5412_v17, %v2066_v12 }
 0x943   : > { %v4571_v0 = vpop.eup %4570  ;;  %v2451_v24 = vrot.slane %v2450_v15, 4 }
 0x944   : > { %v2460_v20 = vpop.xlane.xlu0 %2459  ;;  %v2172_v18 = vmul.f32 %v4571_v0, %v5418_v53  ;;  %v2113_v5 = vmul.f32 1.442695, %v2085_v46 }
 0x945   : > { %v2452_v50 = vadd.f32 %v2451_v24, %v2450_v15  ;;  %v2461_v14 = vrot.slane %v2460_v20, 4 }
 0x946   : > { %v2186_v16 = vpack.c.bf16 %v2172_v18, %v2171_v22 }
 0x947   : > { %v2462_v27 = vadd.f32 %v2461_v14, %v2460_v20  ;;  %v2453_v3 = vrot.slane %v2452_v50, 2 }
 0x948   : > { %2210 = vmatmul.bf16.gmra.mxu2 %v2186_v16 }
 0x949   : > { %v2454_v29 = vadd.f32 %v2453_v3, %v2452_v50  ;;  %v2463_v31 = vrot.slane %v2462_v27, 2 }
 0x94a   : > { %v2062_v33 = vpop.xlane.xlu2 %2061 }
 0x94b   : > { %v2083_v37 = vsub.f32 %v5426_v62, %v2062_v33  ;;  %v2455_v34 = vrot.slane %v2454_v29, 1  ;;  %v2464_v42 = vadd.f32 %v2463_v31, %v2462_v27 }
 0x94c   : > { %v2132_v48 = vpop.xlane.xlu0 %2131 }
 0x94d   : > { %v2109_v55 = vmul.f32 1.442695, %v2083_v37  ;;  %v2456_v58 = vadd.f32 %v2455_v34, %v2454_v29  ;;  %v2465_v63 = vrot.slane %v2464_v42, 1  ;;  %v5508_v29 = vpop.f32.mrf.mxu0 }
 0x94f   : > { %4572 = vpow2.f32 %v2109_v55  ;;  %4404 = vpush %v2456_v58  ;;  %v2466_v53 = vadd.f32 %v2465_v63, %v2464_v42 }
 0x950   : > { %4574 = vpow2.f32 %v2113_v5 }
 0x951   : > { %4406 = vpush %v2466_v53 }
 0x952   : > { %v2068_v23 = vpop.xlane.xlu2 %2067 }
 0x953   : > { %v2086_v7 = vsub.f32 %v5436_v26, %v2068_v23 }
 0x954   : > { %v2072_v8 = vpop.xlane.xlu0 %2071 }
 0x955   : > { %v5488_v36 = vpop.eup %4572  ;;  %v2115_v62 = vmul.f32 1.442695, %v2086_v7  ;;  %v2088_v56 = vsub.f32 %v5442_v28, %v2072_v8 }
 0x956   : > { %2141 = vadd.xlane.f32.xlu2 %v5488_v36  ;;  %v5493_v15 = vpop.eup %4574 }
 0x957   : > { %4576 = vpow2.f32 %v2115_v62  ;;  %v2119_v13 = vmul.f32 1.442695, %v2088_v56 }
 0x959   : > { %4578 = vpow2.f32 %v2119_v13 }
 0x95a   : > { %v2070_v17 = vpop.xlane.xlu2 %2069 }
 0x95b   : > { %v2087_v12 = vsub.f32 %v5448_v32, %v2070_v17 }
 0x95c   : > { %v2136_v0 = vpop.xlane.xlu0 %2135 }
 0x95d   : > { %v5495_v24 = vpop.eup %4576  ;;  %v2117_v26 = vmul.f32 1.442695, %v2087_v12 }
 0x95e   : > { %2145 = vadd.xlane.f32.xlu2 %v5493_v15  ;;  %2147 = vadd.xlane.f32.xlu0 %v5495_v24 }
 0x95f   : > { %4580 = vpow2.f32 %v2117_v26  ;;  %v5499_v20 = vpop.eup %4578 }
 0x960   : > { %4582 = vrcp.f32 %v2132_v48  ;;  %v5511_v48 = vpop.f32.mrf.mxu0 }
 0x962   : > { %v2130_v28 = vpop.xlane.xlu2 %2129 }
 0x963   : > { %4584 = vrcp.f32 %v2130_v28  ;;  %v2421_v28 = vmul.f32 %v5508_v29, %v5508_v29 }
 0x964   : > { %v2403_v22 = vpop.xlane.xlu0 %2402  ;;  %4586 = vrcp.f32 %v2136_v0 }
 0x965   : > { %v5501_v18 = vpop.eup %4580  ;;  %v2486_v14 = vsel %vm1175_vm1, %v2403_v22, 0.0 }
 0x966   : > { %2149 = vadd.xlane.f32.xlu2 %v5501_v18  ;;  %2151 = vadd.xlane.f32.xlu0 %v5499_v20  ;;  %v4583_v32 = vpop.eup %4582 }
 0x967   : > { %v2174_v3 = vmul.f32 %v4583_v32, %v5429_v43 }
 0x968   : > { %v5516_v23 = vpop.f32.mrf.mxu0 }
 0x969   : > { %v4585_v50 = vpop.eup %4584 }
 0x96a   : > { %v2401_v16 = vpop.xlane.xlu2 %2400  ;;  %v2173_v27 = vmul.f32 %v4585_v50, %v5457_v60  ;;  %v4587_v60 = vpop.eup %4586 }
 0x96b   : > { %v2485_v31 = vsel %vm1175_vm1, %v2401_v16, 0.0  ;;  %v2176_v46 = vmul.f32 %v4587_v60, %v5451_v35  ;;  %v2422_v35 = vmul.f32 %v5511_v48, %v5511_v48 }
 0x96c   : > { %v2140_v33 = vpop.xlane.xlu0 %2139  ;;  %v2187_v37 = vpack.c.bf16 %v2174_v3, %v2173_v27  ;;  %v2487_v34 = vadd.f32 %v2486_v14, %v2485_v31  ;;  %v2423_v14 = vmul.f32 %v5516_v23, %v5516_v23 }
 0x96e   : > { %2215 = vmatmul.bf16.gmra.mxu2 %v2187_v37  ;;  %2488 = vadd.xlane.f32.xlu2 %v2487_v34 }
 0x972   : > { %v2134_v42 = vpop.xlane.xlu2 %2133 }
 0x973   : > { %4588 = vrcp.f32 %v2134_v42 }
 0x974   : > { %v2144_v55 = vpop.xlane.xlu0 %2143  ;;  %4590 = vrcp.f32 %v2140_v33 }
 0x976   : > { %2404 = vadd.xlane.f32.xlu2 %v5508_v29 }
 0x979   : > { %v4589_v58 = vpop.eup %4588 }
 0x97a   : > { %v2431_v43 = vpop.xlane.xlu2 %2430  ;;  %v2175_v63 = vmul.f32 %v4589_v58, %v5469_v2  ;;  %v4591_v56 = vpop.eup %4590 }
 0x97b   : > { %v2497_v7 = vsel %vm1175_vm1, %v2431_v43, 0.0  ;;  %v2178_v0 = vmul.f32 %v4591_v56, %v5466_v39  ;;  %v958_v43 = vpop.f32.mrf.mxu2 }
 0x97c   : > { %v2433_v53 = vpop.xlane.xlu0 %2432  ;;  %v2188_v5 = vpack.c.bf16 %v2176_v46, %v2175_v63  ;;  %v972_v63 = vpop.f32.mrf.mxu3 }
 0x97d   : > { %v2498_v8 = vsel %vm1175_vm1, %v2433_v53, 0.0 }
 0x97e   : > { %2220 = vmatmul.bf16.gmra.mxu2 %v2188_v5  ;;  %2408 = vadd.xlane.f32.xlu2 %v5516_v23  ;;  %v2499_v62 = vadd.f32 %v2498_v8, %v2497_v7 }
 0x980   : > { %s4405_s6 = spop %4404  ;;  %2500 = vadd.xlane.f32.xlu0 %v2499_v62 }
 0x981   : > { %s2468_s10 = smul.f32 0.0015625, %s4405_s6 }
 0x982   : > { %s4407_s21 = spop %4406  ;;  %v2138_v2 = vpop.xlane.xlu2 %2137 }
 0x983   : > { %s2470_s22 = smul.f32 %s2468_s10, %s2468_s10  ;;  %4592 = vrcp.f32 %v2138_v2  ;;  %v960_v5 = vpop.f32.mrf.mxu2 }
 0x984   : > { %s2469_s24 = smul.f32 0.0015625, %s4407_s21  ;;  %v974_v8 = vpop.f32.mrf.mxu3 }
 0x986   : > { %s2471_s25 = ssub.f32 %s2469_s24, %s2470_s22  ;;  %2436 = vadd.xlane.f32.xlu2 %v2422_v35 }
 0x988   : > { %s2472_s26 = sadd.f32 1e-05, %s2471_s25  ;;  %2406 = vadd.xlane.f32.xlu0 %v5511_v48 }
 0x989   : > { %v4593_v13 = vpop.eup %4592 }
 0x98a   : > { %v2473_v17 = vstv %s2472_s26  ;;  %v2177_v12 = vmul.f32 %v4593_v13, %v5480_v9 }
 0x98b   : > { %4594 = vrsqrt.f32 %v2473_v17  ;;  %vm2480_vm14 = vweird.f32 %v2473_v17 }
 0x98c   : > { %v2189_v26 = vpack.c.bf16 %v2178_v0, %v2177_v12  ;;  %4596 = vrcp.f32 %v2144_v55 }
 0x98e   : > { %2225 = vmatmul.bf16.gmra.mxu2 %v2189_v26 }
 0x990   : > { %2434 = vadd.xlane.f32.xlu0 %v2421_v28 }
 0x991   : > { %v4595_v22 = vpop.eup %4594 }
 0x992   : > { %v2475_v32 = vmul.f32 %v4595_v22, %v2473_v17  ;;  %vm2481_vm13 = vweird.f32 %v4595_v22  ;;  %v4597_v31 = vpop.eup %4596 }
 0x993   : > { %vm2482_vm15 = vmor %vm2480_vm14, %vm2481_vm13  ;;  %v2180_v42 = vmul.f32 %v4597_v31, %v5472_v19  ;;  %v988_v19 = vpack.c.bf16 %v974_v8, %v960_v5 }
 0x994   : > { %v2476_v50 = vmul.f32 %v4595_v22, %v2475_v32 }
 0x995   : > { %v2950_v56 = vunpack.c.l.b16 %v988_v19  ;;  %v3485_v13 = vunpack.c.h.b16 %v988_v19 }
 0x996   : > { %v2477_v16 = vmul.f32 0.5, %v2476_v50 }
 0x998   : > { %2438 = vadd.xlane.f32.xlu0 %v2423_v14  ;;  %v2478_v27 = vsub.f32 1.5, %v2477_v16 }
 0x99a   : > { %v2479_v9 = vmul.f32 %v4595_v22, %v2478_v27 }
 0x99c   : > { %v2483_v39 = vsel %vm2482_vm15, %v4595_v22, %v2479_v9 }
 0x99d   : > { %4408 = vpush %v2483_v39 }
 0x9af   : > { %2931 = vxpose.xlu2.c.b16.start.end [1/1] (short) %v5139_v1, 128  ;;  %v982_v1 = vpack.c.bf16 %v972_v63, %v958_v43 }
 0x9b1   : > { %v3484_v2 = vunpack.c.h.b16 %v982_v1 }
 0x9b3   : > { %v3486_v28 = vpack.c.b16 %v3485_v13, %v3484_v2 }
 0x9b5   : > { %3495 = vmatpush.bf16.xpose.msra.mxu3 %v3486_v28 }
 0x9c9   : > { %v2142_v3 = vpop.xlane.xlu2 %2141 }
 0x9ca   : > { %4598 = vrcp.f32 %v2142_v3 }
 0x9ce   : > { %s5552_s18 = spop %4408 }
 0x9d0   : > { %v4599_v33 = vpop.eup %4598 }
 0x9d1   : > { %v2146_v37 = vpop.xlane.xlu2 %2145  ;;  %v2179_v34 = vmul.f32 %v4599_v33, %v5488_v36  ;;  %v2148_v60 = vpop.xlane.xlu0 %2147  ;;  %v2949_v36 = vunpack.c.l.b16 %v982_v1 }
 0x9d2   : > { %4600 = vrcp.f32 %v2146_v37 }
 0x9d3   : > { %v2190_v58 = vpack.c.bf16 %v2180_v42, %v2179_v34  ;;  %4602 = vrcp.f32 %v2148_v60  ;;  %v2951_v26 = vpack.c.b16 %v2950_v56, %v2949_v36 }
 0x9d5   : > { %2230 = vmatmul.bf16.gmra.mxu2 %v2190_v58 }
 0x9d6   : > { %2984 = vmatpush.bf16.msra.mxu2 %v2951_v26  ;;  %v5559_v26 = vpop.f32.mrf.mxu2 }
 0x9d8   : > { %v4601_v53 = vpop.eup %4600 }
 0x9d9   : > { %v2150_v46 = vpop.xlane.xlu2 %2149  ;;  %v4603_v55 = vpop.eup %4602  ;;  %v2181_v7 = vmul.f32 %v4601_v53, %v5493_v15 }
 0x9da   : > { %v2182_v62 = vmul.f32 %v4603_v55, %v5495_v24  ;;  %v2152_v12 = vpop.xlane.xlu0 %2151  ;;  %4604 = vrcp.f32 %v2150_v46 }
 0x9db   : > { %4606 = vrcp.f32 %v2152_v12 }
 0x9dc   : > { %v2191_v0 = vpack.c.bf16 %v2182_v62, %v2181_v7 }
 0x9e0   : > { %v4605_v50 = vpop.eup %4604 }
 0x9e1   : > { %v2489_v35 = vpop.xlane.xlu2 %2488  ;;  %v4607_v14 = vpop.eup %4606  ;;  %v2183_v27 = vmul.f32 %v4605_v50, %v5501_v18 }
 0x9e2   : > { %v2490_v17 = vrot.slane %v2489_v35, 4  ;;  %v2184_v9 = vmul.f32 %v4607_v14, %v5499_v20  ;;  %v5563_v50 = vpop.f32.mrf.mxu2 }
 0x9e4   : > { %v2491_v22 = vadd.f32 %v2490_v17, %v2489_v35  ;;  %v2192_v31 = vpack.c.bf16 %v2184_v9, %v2183_v27  ;;  %v5543_v35 = vpop.f32.mrf.mxu0 }
 0x9e5   : > { %2235 = vmatmul.bf16.gmra.mxu2 %v2191_v0 }
 0x9e6   : > { %v2492_v15 = vrot.slane %v2491_v22, 2 }
 0x9e8   : > { %v2493_v32 = vadd.f32 %v2492_v15, %v2491_v22 }
 0x9e9   : > { %v2405_v39 = vpop.xlane.xlu2 %2404 }
 0x9ea   : > { %v2494_v24 = vrot.slane %v2493_v32, 1  ;;  %v2526_v43 = vsel %vm1175_vm1, %v2405_v39, 0.0  ;;  %v5567_v39 = vpop.f32.mrf.mxu2 }
 0x9ec   : > { %v2495_v16 = vadd.f32 %v2494_v24, %v2493_v32  ;;  %v5546_v56 = vpop.f32.mrf.mxu0 }
 0x9ed   : > { %v2425_v17 = vmul.f32 %v5546_v56, %v5546_v56 }
 0x9ee   : > { %4410 = vpush %v2495_v16 }
 0x9f1   : > { %v2409_v60 = vpop.xlane.xlu2 %2408 }
 0x9f2   : > { %v2529_v18 = vsel %vm1175_vm1, %v2409_v60, 0.0 }
 0x9f3   : > { %v2501_v3 = vpop.xlane.xlu0 %2500 }
 0x9f4   : > { %v2502_v33 = vrot.slane %v2501_v3, 4  ;;  %v5549_v13 = vpop.f32.mrf.mxu0 }
 0x9f5   : > { %2240 = vmatmul.bf16.gmra.mxu2 %v2192_v31  ;;  %v2426_v28 = vmul.f32 %v5549_v13, %v5549_v13  ;;  %v5570_v31 = vpop.f32.mrf.mxu2 }
 0x9f6   : > { %v2503_v37 = vadd.f32 %v2502_v33, %v2501_v3 }
 0x9f8   : > { %v2504_v34 = vrot.slane %v2503_v37, 2 }
 0x9f9   : > { %v2437_v5 = vpop.xlane.xlu2 %2436 }
 0x9fa   : > { %v2505_v42 = vadd.f32 %v2504_v34, %v2503_v37  ;;  %v2541_v8 = vsel %vm1175_vm1, %v2437_v5, 0.0 }
 0x9fb   : > { %v2407_v58 = vpop.xlane.xlu0 %2406 }
 0x9fc   : > { %v2527_v63 = vsel %vm1175_vm1, %v2407_v58, 0.0  ;;  %v2506_v46 = vrot.slane %v2505_v42, 1  ;;  %v5556_v12 = vpop.f32.mrf.mxu0 }
 0x9fd   : > { %v2528_v53 = vadd.f32 %v2527_v63, %v2526_v43  ;;  %v2427_v14 = vmul.f32 %v5556_v12, %v5556_v12  ;;  %v5572_v33 = vpop.f32.mrf.mxu2 }
 0x9fe   : > { %v2507_v1 = vadd.f32 %v2506_v46, %v2505_v42 }
 0x9ff   : > { %v2530_v20 = vadd.f32 %v2529_v18, %v2528_v53 }
 0xa00   : > { %4412 = vpush %v2507_v1 }
 0xa01   : > { %2531 = vadd.xlane.f32.xlu0 %v2530_v20 }
 0xa03   : > { %v2435_v55 = vpop.xlane.xlu0 %2434 }
 0xa04   : > { %v2540_v7 = vsel %vm1175_vm1, %v2435_v55, 0.0 }
 0xa05   : > { %v2542_v62 = vadd.f32 %v2541_v8, %v2540_v7  ;;  %v5574_v37 = vpop.f32.mrf.mxu2 }
 0xa0b   : > { %v2439_v36 = vpop.xlane.xlu0 %2438 }
 0xa0c   : > { %v2543_v2 = vsel %vm1175_vm1, %v2439_v36, 0.0 }
 0xa0d   : > { %v2544_v19 = vadd.f32 %v2543_v2, %v2542_v62  ;;  %v5576_v34 = vpop.f32.mrf.mxu2 }
 0xa0e   : > { %6437 = vst [vmem:[#allocation12_spill] sm:$0xff] %v5576_v34 }
 0xa0f   : > { %2545 = vadd.xlane.f32.xlu0 %v2544_v19 }
 0xa15   : > { %v5579_v18 = vpop.f32.mrf.mxu2 }
 0xa16   : > { %6438 = vst [vmem:[#allocation13_spill] sm:$0xff] %v5579_v18 }
 0xa17   : > { %2410 = vadd.xlane.f32.xlu0 %v5543_v35 }
 0xa1d   : > { %v5582_v62 = vpop.f32.mrf.mxu2 }
 0xa1e   : > { %6439 = vst [vmem:[#allocation14_spill] sm:$0xff] %v5582_v62 }
 0xa1f   : > { %2412 = vadd.xlane.f32.xlu0 %v5546_v56  ;;  %s4411_s23 = spop %4410 }
 0xa20   : > { %s2509_s7 = smul.f32 0.00078125, %s4411_s23 }
 0xa22   : > { %s2511_s28 = smul.f32 %s2509_s7, %s2509_s7 }
 0xa27   : > { %2414 = vadd.xlane.f32.xlu0 %v5549_v13 }
 0xa2f   : > { %2442 = vadd.xlane.f32.xlu0 %v2425_v17 }
 0xa31   : > { %s4413_s29 = spop %4412 }
 0xa32   : > { %s2510_s9 = smul.f32 0.00078125, %s4413_s29 }
 0xa34   : > { %s2512_s6 = ssub.f32 %s2510_s9, %s2511_s28 }
 0xa36   : > { %s2513_s10 = sadd.f32 1e-05, %s2512_s6 }
 0xa37   : > { %2416 = vadd.xlane.f32.xlu0 %v5556_v12 }
 0xa38   : > { %v2514_v0 = vstv %s2513_s10 }
 0xa39   : > { %4608 = vrsqrt.f32 %v2514_v0  ;;  %vm2521_vm3 = vweird.f32 %v2514_v0 }
 0xa3f   : > { %v4609_v22 = vpop.eup %4608  ;;  %2444 = vadd.xlane.f32.xlu0 %v2426_v28  ;;  %v5587_v28 = vstv %s5268_s5 }
 0xa40   : > { %v2516_v15 = vmul.f32 %v4609_v22, %v2514_v0  ;;  %vm2522_vm2 = vweird.f32 %v4609_v22  ;;  %v2424_v0 = vmul.f32 %v5543_v35, %v5543_v35 }
 0xa41   : > { %vm2523_vm4 = vmor %vm2521_vm3, %vm2522_vm2 }
 0xa42   : > { %v2517_v32 = vmul.f32 %v4609_v22, %v2516_v15 }
 0xa44   : > { %v2518_v24 = vmul.f32 0.5, %v2517_v32  ;;  %v1461_v32 = vmul.f32 %v5587_v28, %v5352_v47 }
 0xa46   : > { %v2519_v16 = vsub.f32 1.5, %v2518_v24 }
 0xa47   : > { %2446 = vadd.xlane.f32.xlu0 %v2427_v14  ;;  %v5596_v14 = vsel %vm1007_vm6, %v1461_v32, -1e+30 }
 0xa48   : > { %v2520_v27 = vmul.f32 %v4609_v22, %v2519_v16 }
 0xa4a   : > { %v2524_v9 = vsel %vm2523_vm4, %v4609_v22, %v2520_v27  ;;  %v5589_v22 = vpop.f32.mrf.mxu2 }
 0xa4b   : > { %4414 = vpush %v2524_v9  ;;  %v1462_v9 = vmul.f32 %v5587_v28, %v5354_v61 }
 0xa4c   : > { %6440 = vst [vmem:[#allocation15_spill] sm:$0xff] %v5589_v22 }
 0xa50   : > { %v2939_v3 = vpop.trf.xlu2 }
 0xa51   : > { %4190 = vmatmul.msk.bf16.vlgmr.msra.gmra.mxu2 %vm1051_vm0, %v2939_v3  ;;  %v5605_v3 = vsel %vm1007_vm6, %v1462_v9, -1e+30 }
 0xa58   : > { %v5599_v16 = vpop.f32.mrf.mxu2 }
 0xa59   : > { %6441 = vst [vmem:[#allocation16_spill] sm:$0xff] %v5599_v16 }
 0xa60   : > { %v2940_v60 = vpop.trf.xlu2 }
 0xa61   : > { %4191 = vmatmul.msk.bf16.gmra.mxu2 %vm1051_vm0, %v2940_v60 }
 0xa70   : > { %v2941_v5 = vpop.trf.xlu2 }
 0xa71   : > { %4192 = vmatmul.msk.bf16.gmra.mxu2 %vm1051_vm0, %v2941_v5 }
 0xa74   : > { %v2532_v42 = vpop.xlane.xlu0 %2531 }
 0xa75   : > { %v2533_v58 = vrot.slane %v2532_v42, 4 }
 0xa77   : > { %v2534_v43 = vadd.f32 %v2533_v58, %v2532_v42  ;;  %v5608_v42 = vpop.f32.mrf.mxu2 }
 0xa78   : > { %6442 = vst [vmem:[#allocation17_spill] sm:$0xff] %v5608_v42 }
 0xa79   : > { %v2535_v63 = vrot.slane %v2534_v43, 2 }
 0xa7b   : > { %v2536_v46 = vadd.f32 %v2535_v63, %v2534_v43 }
 0xa7c   : > { %s5620_s5 = spop %4414 }
 0xa7d   : > { %v2537_v53 = vrot.slane %v2536_v46, 1 }
 0xa7f   : > { %v2538_v1 = vadd.f32 %v2537_v53, %v2536_v46 }
 0xa80   : > { %v2942_v24 = vpop.trf.xlu2 }
 0xa81   : > { %4416 = vpush %v2538_v1  ;;  %4193 = vmatmul.msk.bf16.gmra.mxu2 %vm1051_vm0, %v2942_v24 }
 0xa82   : > { %v2546_v20 = vpop.xlane.xlu0 %2545 }
 0xa83   : > { %v2547_v55 = vrot.slane %v2546_v20, 4 }
 0xa85   : > { %v2548_v7 = vadd.f32 %v2547_v55, %v2546_v20  ;;  %v5615_v55 = vpop.f32.mrf.mxu2 }
 0xa86   : > { %6443 = vst [vmem:[#allocation18_spill] sm:$0xff] %v5615_v55 }
 0xa87   : > { %v2549_v8 = vrot.slane %v2548_v7, 2 }
 0xa89   : > { %v2550_v36 = vadd.f32 %v2549_v8, %v2548_v7 }
 0xa8a   : > { %v2411_v2 = vpop.xlane.xlu0 %2410 }
 0xa8b   : > { %v2551_v19 = vrot.slane %v2550_v36, 1  ;;  %v2571_v43 = vsel %vm1175_vm1, %v2411_v2, 0.0 }
 0xa8d   : > { %v2552_v17 = vadd.f32 %v2551_v19, %v2550_v36  ;;  %v5618_v7 = vpop.f32.mrf.mxu2 }
 0xa8e   : > { %6444 = vst [vmem:[#allocation19_spill] sm:$0xff] %v5618_v7 }
 0xa8f   : > { %4418 = vpush %v2552_v17 }
 0xa90   : > { %2440 = vadd.xlane.f32.xlu2 %v2424_v0  ;;  %v2943_v58 = vpop.trf.xlu2 }
 0xa91   : > { %4194 = vmatmul.msk.bf16.gmra.mxu2 %vm1051_vm0, %v2943_v58 }
 0xa92   : > { %v2413_v15 = vpop.xlane.xlu0 %2412 }
 0xa93   : > { %v2572_v60 = vsel %vm1175_vm1, %v2413_v15, 0.0 }
 0xa94   : > { %v2573_v46 = vadd.f32 %v2572_v60, %v2571_v43 }
 0xa95   : > { %v5622_v8 = vpop.f32.mrf.mxu2 }
 0xa96   : > { %6445 = vst [vmem:[#allocation20_spill] sm:$0xff] %v5622_v8 }
 0xa98   : > { %1508 = vmax.xlane.f32.xlu2 %v5596_v14 }
 0xa9a   : > { %v2415_v27 = vpop.xlane.xlu0 %2414 }
 0xa9b   : > { %v2574_v63 = vsel %vm1175_vm1, %v2415_v27, 0.0 }
 0xa9c   : > { %v2575_v61 = vadd.f32 %v2574_v63, %v2573_v46 }
 0xa9d   : > { %v5625_v19 = vpop.f32.mrf.mxu2 }
 0xa9e   : > { %6446 = vst [vmem:[#allocation21_spill] sm:$0xff] %v5625_v19 }
 0xaa0   : > { %1510 = vmax.xlane.f32.xlu2 %v5605_v3  ;;  %v2944_v5 = vpop.trf.xlu2 }
 0xaa1   : > { %4195 = vmatmul.msk.bf16.gmra.mxu2 %vm1051_vm0, %v2944_v5 }
 0xaa2   : > { %v2443_v47 = vpop.xlane.xlu0 %2442 }
 0xaa3   : > { %v2588_v46 = vsel %vm1175_vm1, %v2443_v47, 0.0 }
 0xaaa   : > { %v2417_v53 = vpop.xlane.xlu0 %2416 }
 0xaab   : > { %v2576_v1 = vsel %vm1175_vm1, %v2417_v53, 0.0 }
 0xaac   : > { %v2577_v20 = vadd.f32 %v2576_v1, %v2575_v61 }
 0xaae   : > { %2578 = vadd.xlane.f32.xlu1 %v2577_v20 }
 0xab0   : > { %v2945_v36 = vpop.trf.xlu2 }
 0xab1   : > { %4196 = vmatmul.msk.bf16.gmra.mxu2 %vm1051_vm0, %v2945_v36 }
 0xab2   : > { %s4417_s21 = spop %4416  ;;  %v2445_v43 = vpop.xlane.xlu0 %2444 }
 0xab3   : > { %s2554_s22 = smul.f32 0.00052083336, %s4417_s21  ;;  %v2590_v20 = vsel %vm1175_vm1, %v2445_v43, 0.0 }
 0xab5   : > { %s2556_s24 = smul.f32 %s2554_s22, %s2554_s22 }
 0xaba   : > { %v2447_v53 = vpop.xlane.xlu0 %2446 }
 0xabb   : > { %v2592_v36 = vsel %vm1175_vm1, %v2447_v53, 0.0 }
 0xac0   : > { %s4419_s25 = spop %4418  ;;  %v2946_v27 = vpop.trf.xlu2 }
 0xac1   : > { %s2555_s26 = smul.f32 0.00052083336, %s4419_s25  ;;  %4197 = vmatmul.msk.bf16.gmra.mxu2 %vm1051_vm0, %v2946_v27 }
 0xac3   : > { %s2557_s23 = ssub.f32 %s2555_s26, %s2556_s24 }
 0xac5   : > { %s2558_s7 = sadd.f32 1e-05, %s2557_s23 }
 0xac7   : > { %v2559_v2 = vstv %s2558_s7 }
 0xac8   : > { %4610 = vrsqrt.f32 %v2559_v2  ;;  %vm2566_vm7 = vweird.f32 %v2559_v2 }
 0xace   : > { %v4611_v17 = vpop.eup %4610 }
 0xacf   : > { %v2561_v0 = vmul.f32 %v4611_v17, %v2559_v2  ;;  %vm2567_vm5 = vweird.f32 %v4611_v17 }
 0xad0   : > { %vm2568_vm8 = vmor %vm2566_vm7, %vm2567_vm5 }
 0xad1   : > { %v2562_v15 = vmul.f32 %v4611_v17, %v2561_v0 }
 0xad3   : > { %v2563_v32 = vmul.f32 0.5, %v2562_v15 }
 0xad4   : > { %v5627_v24 = vpop.f32.mrf.mxu2 }
 0xad5   : > { %3026 = vadd.xlane.f32.xlu1 %v5627_v24  ;;  %v2564_v9 = vsub.f32 1.5, %v2563_v32  ;;  %v3046_v2 = vmul.f32 %v5627_v24, %v5627_v24 }
 0xad7   : > { %v2565_v60 = vmul.f32 %v4611_v17, %v2564_v9 }
 0xad9   : > { %v2569_v58 = vsel %vm2568_vm8, %v4611_v17, %v2565_v60 }
 0xada   : > { %4420 = vpush %v2569_v58 }
 0xb03   : > { %v2441_v63 = vpop.xlane.xlu2 %2440 }
 0xb04   : > { %v2587_v61 = vsel %vm1175_vm1, %v2441_v63, 0.0  ;;  %v5638_v63 = vpop.f32.mrf.mxu2 }
 0xb05   : > { %v2589_v1 = vadd.f32 %v2588_v46, %v2587_v61  ;;  %v3047_v46 = vmul.f32 %v5638_v63, %v5638_v63 }
 0xb07   : > { %v2591_v5 = vadd.f32 %v2590_v20, %v2589_v1 }
 0xb09   : > { %v2593_v0 = vadd.f32 %v2592_v36, %v2591_v5 }
 0xb0b   : > { %2594 = vadd.xlane.f32.xlu0 %v2593_v0  ;;  %s5649_s28 = spop %4420 }
 0xb13   : > { %3056 = vadd.xlane.f32.xlu0 %v3046_v2 }
 0xb21   : > { %v2579_v17 = vpop.xlane.xlu1 %2578 }
 0xb22   : > { %v2580_v15 = vrot.slane %v2579_v17, 4 }
 0xb24   : > { %v2581_v32 = vadd.f32 %v2580_v15, %v2579_v17  ;;  %v5644_v15 = vpop.f32.mrf.mxu2 }
 0xb26   : > { %v2582_v27 = vrot.slane %v2581_v32, 2 }
 0xb28   : > { %v2583_v47 = vadd.f32 %v2582_v27, %v2581_v32  ;;  %v3048_v32 = vmul.f32 %v5644_v15, %v5644_v15 }
 0xb2a   : > { %v2584_v9 = vrot.slane %v2583_v47, 1 }
 0xb2c   : > { %v2585_v60 = vadd.f32 %v2584_v9, %v2583_v47  ;;  %v5651_v8 = vpop.f32.mrf.mxu2 }
 0xb2e   : > { %4422 = vpush %v2585_v60 }
 0xb48   : > { %v3027_v58 = vpop.xlane.xlu1 %3026 }
 0xb49   : > { %v3076_v43 = vsel %vm1175_vm1, %v3027_v58, 0.0 }
 0xb4a   : > { %3077 = vadd.xlane.f32.xlu1 %v3076_v43 }
 0xb52   : > { %3028 = vadd.xlane.f32.xlu1 %v5638_v63 }
 0xb5a   : > { %3058 = vadd.xlane.f32.xlu1 %v3047_v46 }
 0xb5f   : > { %s4423_s29 = spop %4422 }
 0xb60   : > { %s2603_s9 = smul.f32 0.000390625, %s4423_s29 }
 0xb62   : > { %s2605_s6 = smul.f32 %s2603_s9, %s2603_s9 }
 0xb7e   : > { %v2595_v61 = vpop.xlane.xlu0 %2594 }
 0xb7f   : > { %v2596_v53 = vrot.slane %v2595_v61, 4 }
 0xb81   : > { %v2597_v1 = vadd.f32 %v2596_v53, %v2595_v61 }
 0xb83   : > { %v2598_v20 = vrot.slane %v2597_v1, 2 }
 0xb85   : > { %v2599_v5 = vadd.f32 %v2598_v20, %v2597_v1 }
 0xb86   : > { %v3057_v36 = vpop.xlane.xlu0 %3056 }
 0xb87   : > { %v3086_v0 = vsel %vm1175_vm1, %v3057_v36, 0.0  ;;  %v2600_v2 = vrot.slane %v2599_v5, 1 }
 0xb88   : > { %3087 = vadd.xlane.f32.xlu0 %v3086_v0 }
 0xb89   : > { %v2601_v17 = vadd.f32 %v2600_v2, %v2599_v5 }
 0xb8b   : > { %4424 = vpush %v2601_v17 }
 0xb90   : > { %3030 = vadd.xlane.f32.xlu0 %v5644_v15 }
 0xb98   : > { %3060 = vadd.xlane.f32.xlu0 %v3048_v32 }
 0xbbc   : > { %s4425_s10 = spop %4424 }
 0xbbd   : > { %s2604_s21 = smul.f32 0.000390625, %s4425_s10  ;;  %v3078_v43 = vpop.xlane.xlu1 %3077 }
 0xbbe   : > { %v3079_v46 = vrot.slane %v3078_v43, 4 }
 0xbbf   : > { %s2606_s22 = ssub.f32 %s2604_s21, %s2605_s6 }
 0xbc0   : > { %v3080_v1 = vadd.f32 %v3079_v46, %v3078_v43 }
 0xbc1   : > { %s2607_s24 = sadd.f32 1e-05, %s2606_s22 }
 0xbc2   : > { %v3081_v5 = vrot.slane %v3080_v1, 2 }
 0xbc3   : > { %v2608_v27 = vstv %s2607_s24 }
 0xbc4   : > { %4612 = vrsqrt.f32 %v2608_v27  ;;  %vm2615_vm9 = vweird.f32 %v2608_v27  ;;  %v3082_v36 = vadd.f32 %v3081_v5, %v3080_v1 }
 0xbc6   : > { %v3083_v0 = vrot.slane %v3082_v36, 1 }
 0xbc8   : > { %v3084_v2 = vadd.f32 %v3083_v0, %v3082_v36 }
 0xbca   : > { %v4613_v47 = vpop.eup %4612 }
 0xbcb   : > { %v2610_v9 = vmul.f32 %v4613_v47, %v2608_v27  ;;  %vm2616_vm0 = vweird.f32 %v4613_v47 }
 0xbcc   : > { %vm2617_vm10 = vmor %vm2615_vm9, %vm2616_vm0 }
 0xbcd   : > { %v2611_v60 = vmul.f32 %v4613_v47, %v2610_v9  ;;  %v3029_v9 = vpop.xlane.xlu1 %3028 }
 0xbce   : > { %v3113_v27 = vsel %vm1175_vm1, %v3029_v9, 0.0 }
 0xbcf   : > { %v2612_v58 = vmul.f32 0.5, %v2611_v60 }
 0xbd1   : > { %v2613_v61 = vsub.f32 1.5, %v2612_v58 }
 0xbd3   : > { %v2614_v53 = vmul.f32 %v4613_v47, %v2613_v61 }
 0xbd5   : > { %v2618_v20 = vsel %vm2617_vm10, %v4613_v47, %v2614_v53  ;;  %v3059_v53 = vpop.xlane.xlu1 %3058 }
 0xbd6   : > { %4426 = vpush %v2618_v20  ;;  %v5655_v20 = vpop.f32.mrf.mxu2  ;;  %v3125_v5 = vsel %vm1175_vm1, %v3059_v53, 0.0 }
 0xbd7   : > { %4428 = vpush %v3084_v2  ;;  %v3050_v2 = vmul.f32 %v5655_v20, %v5655_v20 }
 0xbfb   : > { %v3088_v17 = vpop.xlane.xlu0 %3087 }
 0xbfc   : > { %v3089_v32 = vrot.slane %v3088_v17, 4 }
 0xbfe   : > { %v3090_v19 = vadd.f32 %v3089_v32, %v3088_v17 }
 0xc00   : > { %v3091_v60 = vrot.slane %v3090_v19, 2 }
 0xc02   : > { %v3092_v58 = vadd.f32 %v3091_v60, %v3090_v19  ;;  %v5660_v19 = vpop.f32.mrf.mxu2 }
 0xc03   : > { %v3031_v7 = vpop.xlane.xlu0 %3030  ;;  %v3051_v17 = vmul.f32 %v5660_v19, %v5660_v19 }
 0xc04   : > { %v3114_v43 = vsel %vm1175_vm1, %v3031_v7, 0.0  ;;  %v3093_v47 = vrot.slane %v3092_v58, 1  ;;  %v3049_v7 = vmul.f32 %v5651_v8, %v5651_v8 }
 0xc05   : > { %v3115_v46 = vadd.f32 %v3114_v43, %v3113_v27 }
 0xc06   : > { %v3094_v61 = vadd.f32 %v3093_v47, %v3092_v58 }
 0xc07   : > { %3116 = vadd.xlane.f32.xlu1 %v3115_v46  ;;  %s5670_s25 = spop %4426 }
 0xc08   : > { %4430 = vpush %v3094_v61  ;;  %s4429_s26 = spop %4428 }
 0xc09   : > { %s3096_s23 = smul.f32 0.0015625, %s4429_s26 }
 0xc0b   : > { %v3061_v1 = vpop.xlane.xlu0 %3060  ;;  %s3098_s7 = smul.f32 %s3096_s23, %s3096_s23 }
 0xc0c   : > { %v3126_v36 = vsel %vm1175_vm1, %v3061_v1, 0.0 }
 0xc0d   : > { %v3127_v0 = vadd.f32 %v3126_v36, %v3125_v5 }
 0xc0f   : > { %3032 = vadd.xlane.f32.xlu1 %v5651_v8  ;;  %3128 = vadd.xlane.f32.xlu0 %v3127_v0 }
 0xc17   : > { %3036 = vadd.xlane.f32.xlu1 %v5660_v19  ;;  %3034 = vadd.xlane.f32.xlu0 %v5655_v20 }
 0xc1f   : > { %3064 = vadd.xlane.f32.xlu1 %v3050_v2  ;;  %3062 = vadd.xlane.f32.xlu0 %v3049_v7 }
 0xc27   : > { %3066 = vadd.xlane.f32.xlu0 %v3051_v17 }
 0xc39   : > { %s4431_s29 = spop %4430 }
 0xc3a   : > { %s3097_s9 = smul.f32 0.0015625, %s4431_s29 }
 0xc3c   : > { %s3099_s6 = ssub.f32 %s3097_s9, %s3098_s7 }
 0xc3e   : > { %s3100_s10 = sadd.f32 1e-05, %s3099_s6 }
 0xc40   : > { %v3101_v32 = vstv %s3100_s10 }
 0xc41   : > { %4614 = vrsqrt.f32 %v3101_v32  ;;  %vm3108_vm12 = vweird.f32 %v3101_v32 }
 0xc47   : > { %v4615_v9 = vpop.eup %4614 }
 0xc48   : > { %v3103_v60 = vmul.f32 %v4615_v9, %v3101_v32  ;;  %vm3109_vm11 = vweird.f32 %v4615_v9  ;;  %v5672_v32 = vpop.f32.mrf.mxu2 }
 0xc49   : > { %vm3110_vm13 = vmor %vm3108_vm12, %vm3109_vm11 }
 0xc4a   : > { %v3104_v58 = vmul.f32 %v4615_v9, %v3103_v60 }
 0xc4c   : > { %v3105_v27 = vmul.f32 0.5, %v3104_v58 }
 0xc4e   : > { %v3106_v43 = vsub.f32 1.5, %v3105_v27 }
 0xc50   : > { %v3107_v47 = vmul.f32 %v4615_v9, %v3106_v43 }
 0xc52   : > { %v3111_v46 = vsel %vm3110_vm13, %v4615_v9, %v3107_v47 }
 0xc53   : > { %4432 = vpush %v3111_v46 }
 0xc7a   : > { %v3117_v61 = vpop.xlane.xlu1 %3116 }
 0xc7b   : > { %v3118_v53 = vrot.slane %v3117_v61, 4 }
 0xc7d   : > { %v3119_v1 = vadd.f32 %v3118_v53, %v3117_v61 }
 0xc7f   : > { %v3120_v5 = vrot.slane %v3119_v1, 2 }
 0xc81   : > { %v3121_v36 = vadd.f32 %v3120_v5, %v3119_v1 }
 0xc82   : > { %v3033_v0 = vpop.xlane.xlu1 %3032  ;;  %v3129_v7 = vpop.xlane.xlu0 %3128 }
 0xc83   : > { %v3130_v2 = vrot.slane %v3129_v7, 4  ;;  %v3122_v17 = vrot.slane %v3121_v36, 1  ;;  %v3154_v9 = vsel %vm1175_vm1, %v3033_v0, 0.0 }
 0xc84   : > { %s5696_s21 = spop %4432 }
 0xc85   : > { %v3131_v55 = vadd.f32 %v3130_v2, %v3129_v7  ;;  %v3123_v42 = vadd.f32 %v3122_v17, %v3121_v36 }
 0xc87   : > { %v3132_v60 = vrot.slane %v3131_v55, 2  ;;  %4434 = vpush %v3123_v42  ;;  %v5677_v42 = vpop.f32.mrf.mxu2 }
 0xc89   : > { %v3133_v58 = vadd.f32 %v3132_v60, %v3131_v55 }
 0xc8a   : > { %v3037_v27 = vpop.xlane.xlu1 %3036  ;;  %v3035_v43 = vpop.xlane.xlu0 %3034 }
 0xc8b   : > { %v3155_v47 = vsel %vm1175_vm1, %v3035_v43, 0.0  ;;  %v3134_v46 = vrot.slane %v3133_v58, 1  ;;  %v3157_v53 = vsel %vm1175_vm1, %v3037_v27, 0.0  ;;  %v3053_v27 = vmul.f32 %v5677_v42, %v5677_v42 }
 0xc8c   : > { %v3156_v61 = vadd.f32 %v3155_v47, %v3154_v9  ;;  %v3052_v9 = vmul.f32 %v5672_v32, %v5672_v32 }
 0xc8d   : > { %v3135_v1 = vadd.f32 %v3134_v46, %v3133_v58 }
 0xc8e   : > { %v3158_v5 = vadd.f32 %v3157_v53, %v3156_v61 }
 0xc8f   : > { %4436 = vpush %v3135_v1  ;;  %v5683_v58 = vpop.f32.mrf.mxu2 }
 0xc90   : > { %3159 = vadd.xlane.f32.xlu1 %v3158_v5  ;;  %v3054_v47 = vmul.f32 %v5683_v58, %v5683_v58 }
 0xc92   : > { %v3063_v36 = vpop.xlane.xlu0 %3062  ;;  %v3065_v7 = vpop.xlane.xlu1 %3064 }
 0xc93   : > { %v3169_v55 = vsel %vm1175_vm1, %v3065_v7, 0.0  ;;  %v3168_v2 = vsel %vm1175_vm1, %v3063_v36, 0.0 }
 0xc94   : > { %v3170_v0 = vadd.f32 %v3169_v55, %v3168_v2 }
 0xc97   : > { %v5693_v46 = vpop.f32.mrf.mxu2 }
 0xc98   : > { %3038 = vadd.xlane.f32.xlu1 %v5672_v32  ;;  %v3055_v61 = vmul.f32 %v5693_v46, %v5693_v46 }
 0xc9a   : > { %v3067_v17 = vpop.xlane.xlu0 %3066 }
 0xc9b   : > { %v3171_v60 = vsel %vm1175_vm1, %v3067_v17, 0.0 }
 0xc9c   : > { %v3172_v43 = vadd.f32 %v3171_v60, %v3170_v0 }
 0xc9e   : > { %3173 = vadd.xlane.f32.xlu0 %v3172_v43 }
 0xca0   : > { %3042 = vadd.xlane.f32.xlu1 %v5683_v58 }
 0xca6   : > { %3040 = vadd.xlane.f32.xlu0 %v5677_v42 }
 0xca8   : > { %3070 = vadd.xlane.f32.xlu1 %v3053_v27 }
 0xcae   : > { %3068 = vadd.xlane.f32.xlu0 %v3052_v9 }
 0xcb0   : > { %3072 = vadd.xlane.f32.xlu1 %v3054_v47 }
 0xcb6   : > { %3044 = vadd.xlane.f32.xlu0 %v5693_v46 }
 0xcb8   : > { %s4435_s22 = spop %4434 }
 0xcb9   : > { %s3137_s24 = smul.f32 0.00078125, %s4435_s22 }
 0xcbb   : > { %s3139_s26 = smul.f32 %s3137_s24, %s3137_s24 }
 0xcbe   : > { %3074 = vadd.xlane.f32.xlu0 %v3055_v61 }
 0xcc0   : > { %s4437_s23 = spop %4436 }
 0xcc1   : > { %s3138_s7 = smul.f32 0.00078125, %s4437_s23 }
 0xcc3   : > { %s3140_s29 = ssub.f32 %s3138_s7, %s3139_s26 }
 0xcc5   : > { %s3141_s9 = sadd.f32 1e-05, %s3140_s29 }
 0xcc7   : > { %v3142_v53 = vstv %s3141_s9 }
 0xcc8   : > { %4616 = vrsqrt.f32 %v3142_v53  ;;  %vm3149_vm15 = vweird.f32 %v3142_v53 }
 0xcce   : > { %v4617_v1 = vpop.eup %4616 }
 0xccf   : > { %v3144_v5 = vmul.f32 %v4617_v1, %v3142_v53  ;;  %vm3150_vm14 = vweird.f32 %v4617_v1 }
 0xcd0   : > { %vm3151_vm2 = vmor %vm3149_vm15, %vm3150_vm14 }
 0xcd1   : > { %v3145_v36 = vmul.f32 %v4617_v1, %v3144_v5 }
 0xcd3   : > { %v3146_v7 = vmul.f32 0.5, %v3145_v36 }
 0xcd5   : > { %v3147_v55 = vsub.f32 1.5, %v3146_v7 }
 0xcd7   : > { %v3148_v2 = vmul.f32 %v4617_v1, %v3147_v55 }
 0xcd9   : > { %v3152_v0 = vsel %vm3151_vm2, %v4617_v1, %v3148_v2 }
 0xcda   : > { %4438 = vpush %v3152_v0 }
 0xd03   : > { %v3160_v17 = vpop.xlane.xlu1 %3159 }
 0xd04   : > { %v3161_v60 = vrot.slane %v3160_v17, 4 }
 0xd06   : > { %v3162_v43 = vadd.f32 %v3161_v60, %v3160_v17 }
 0xd08   : > { %v3163_v27 = vrot.slane %v3162_v43, 2 }
 0xd0a   : > { %v3164_v9 = vadd.f32 %v3163_v27, %v3162_v43 }
 0xd0b   : > { %v3039_v61 = vpop.xlane.xlu1 %3038 }
 0xd0c   : > { %v3165_v47 = vrot.slane %v3164_v9, 1  ;;  %v3199_v60 = vsel %vm1175_vm1, %v3039_v61, 0.0 }
 0xd0e   : > { %v3166_v16 = vadd.f32 %v3165_v47, %v3164_v9 }
 0xd10   : > { %4440 = vpush %v3166_v16 }
 0xd11   : > { %v3174_v22 = vpop.xlane.xlu0 %3173 }
 0xd12   : > { %v3175_v62 = vrot.slane %v3174_v22, 4 }
 0xd13   : > { %v3043_v7 = vpop.xlane.xlu1 %3042 }
 0xd14   : > { %v3176_v5 = vadd.f32 %v3175_v62, %v3174_v22  ;;  %v3202_v16 = vsel %vm1175_vm1, %v3043_v7, 0.0 }
 0xd16   : > { %v3177_v36 = vrot.slane %v3176_v5, 2 }
 0xd18   : > { %v3178_v18 = vadd.f32 %v3177_v36, %v3176_v5  ;;  %v1431_v36 = vstv %s5206_s4  ;;  %s5735_s4 = spop %4438 }
 0xd19   : > { %v3041_v55 = vpop.xlane.xlu0 %3040 }
 0xd1a   : > { %v3179_v53 = vrot.slane %v3178_v18, 1  ;;  %v3200_v17 = vsel %vm1175_vm1, %v3041_v55, 0.0  ;;  %v1448_v55 = vmul.f32 %v1431_v36, %v5142_v4 }
 0xd1b   : > { %v3071_v2 = vpop.xlane.xlu1 %3070  ;;  %v3201_v43 = vadd.f32 %v3200_v17, %v3199_v60 }
 0xd1c   : > { %v3180_v1 = vadd.f32 %v3179_v53, %v3178_v18  ;;  %v3216_v18 = vsel %vm1175_vm1, %v3071_v2, 0.0 }
 0xd1d   : > { %v3203_v27 = vadd.f32 %v3202_v16, %v3201_v43  ;;  %v1398_v43 = vstv %s5223_s27 }
 0xd1e   : > { %4442 = vpush %v3180_v1  ;;  %v1449_v2 = vmul.f32 %v1398_v43, %v5148_v6  ;;  %v1450_v16 = vmul.f32 %v1398_v43, %v5160_v40 }
 0xd20   : > { %v1467_v4 = vsel %vm1007_vm6, %v1449_v2, -1e+30 }
 0xd21   : > { %v3069_v0 = vpop.xlane.xlu0 %3068 }
 0xd22   : > { %v3215_v62 = vsel %vm1175_vm1, %v3069_v0, 0.0  ;;  %v1466_v0 = vsel %vm1007_vm6, %v1448_v55, -1e+30 }
 0xd23   : > { %v3073_v47 = vpop.xlane.xlu1 %3072  ;;  %v3217_v53 = vadd.f32 %v3216_v18, %v3215_v62 }
 0xd24   : > { %v3218_v61 = vsel %vm1175_vm1, %v3073_v47, 0.0 }
 0xd25   : > { %v3219_v7 = vadd.f32 %v3218_v61, %v3217_v53 }
 0xd29   : > { %v3045_v9 = vpop.xlane.xlu0 %3044 }
 0xd2a   : > { %v3204_v22 = vsel %vm1175_vm1, %v3045_v9, 0.0  ;;  %v1365_v9 = vstv %s5260_s30 }
 0xd2b   : > { %v3205_v5 = vadd.f32 %v3204_v22, %v3203_v27  ;;  %v5717_v27 = vsel %vm1007_vm6, %v1450_v16, -1e+30  ;;  %v1451_v62 = vmul.f32 %v1365_v9, %v5166_v25  ;;  %v1452_v22 = vmul.f32 %v1365_v9, %v5171_v41 }
 0xd2c   : > { %v1453_v47 = vmul.f32 %v1365_v9, %v5175_v54  ;;  %v1454_v25 = vmul.f32 %v5587_v28, %v5186_v10  ;;  %v1455_v54 = vmul.f32 %v5587_v28, %v5189_v11 }
 0xd2d   : > { %3206 = vadd.xlane.f32.xlu1 %v3205_v5  ;;  %v5727_v6 = vsel %vm1007_vm6, %v1452_v22, -1e+30  ;;  %v5731_v40 = vsel %vm1007_vm6, %v1451_v62, -1e+30 }
 0xd2e   : > { %v5742_v41 = vsel %vm1007_vm6, %v1454_v25, -1e+30  ;;  %v5746_v5 = vsel %vm1007_vm6, %v1453_v47, -1e+30  ;;  %v5754_v10 = vsel %vm1007_vm6, %v1455_v54, -1e+30 }
 0xd31   : > { %v3075_v1 = vpop.xlane.xlu0 %3074 }
 0xd32   : > { %v3220_v17 = vsel %vm1175_vm1, %v3075_v1, 0.0 }
 0xd33   : > { %v3221_v60 = vadd.f32 %v3220_v17, %v3219_v7 }
 0xd35   : > { %1482 = vmax.xlane.f32.xlu1 %v1466_v0  ;;  %3222 = vadd.xlane.f32.xlu0 %v3221_v60 }
 0xd3d   : > { %1486 = vmax.xlane.f32.xlu1 %v5717_v27  ;;  %1484 = vmax.xlane.f32.xlu0 %v1467_v4 }
 0xd41   : > { %s4441_s27 = spop %4440 }
 0xd42   : > { %s3182_s30 = smul.f32 0.00052083336, %s4441_s27 }
 0xd44   : > { %s3184_s6 = smul.f32 %s3182_s30, %s3182_s30 }
 0xd45   : > { %1490 = vmax.xlane.f32.xlu1 %v5727_v6  ;;  %1488 = vmax.xlane.f32.xlu0 %v5731_v40 }
 0xd4d   : > { %1494 = vmax.xlane.f32.xlu1 %v5742_v41  ;;  %1492 = vmax.xlane.f32.xlu0 %v5746_v5 }
 0xd4f   : > { %s4443_s10 = spop %4442 }
 0xd50   : > { %s3183_s22 = smul.f32 0.00052083336, %s4443_s10 }
 0xd52   : > { %s3185_s24 = ssub.f32 %s3183_s22, %s3184_s6 }
 0xd54   : > { %s3186_s26 = sadd.f32 1e-05, %s3185_s24 }
 0xd55   : > { %1496 = vmax.xlane.f32.xlu0 %v5754_v10 }
 0xd56   : > { %v3187_v18 = vstv %s3186_s26 }
 0xd57   : > { %4618 = vrsqrt.f32 %v3187_v18  ;;  %vm3194_vm3 = vweird.f32 %v3187_v18 }
 0xd5d   : > { %v4619_v36 = vpop.eup %4618 }
 0xd5e   : > { %v3189_v53 = vmul.f32 %v4619_v36, %v3187_v18  ;;  %vm3195_vm1 = vweird.f32 %v4619_v36 }
 0xd5f   : > { %vm3196_vm4 = vmor %vm3194_vm3, %vm3195_vm1 }
 0xd60   : > { %v3190_v61 = vmul.f32 %v4619_v36, %v3189_v53 }
 0xd62   : > { %v3191_v55 = vmul.f32 0.5, %v3190_v61 }
 0xd64   : > { %v3192_v7 = vsub.f32 1.5, %v3191_v55 }
 0xd66   : > { %v3193_v1 = vmul.f32 %v4619_v36, %v3192_v7 }
 0xd68   : > { %v3197_v11 = vsel %vm3196_vm4, %v4619_v36, %v3193_v1 }
 0xd69   : > { %4444 = vpush %v3197_v11 }
 0xd9a   : > { %s5816_s23 = spop %4444 }
 0xda0   : > { %v3207_v17 = vpop.xlane.xlu1 %3206 }
 0xda1   : > { %v3208_v60 = vrot.slane %v3207_v17, 4 }
 0xda3   : > { %v3209_v43 = vadd.f32 %v3208_v60, %v3207_v17 }
 0xda5   : > { %v3210_v2 = vrot.slane %v3209_v43, 2 }
 0xda7   : > { %v3211_v16 = vadd.f32 %v3210_v2, %v3209_v43  ;;  %v1456_v43 = vmul.f32 %v5587_v28, %v5198_v57 }
 0xda8   : > { %v1483_v9 = vpop.xlane.xlu1 %1482  ;;  %v3223_v62 = vpop.xlane.xlu0 %3222 }
 0xda9   : > { %v1514_v22 = vsub.f32 %v1466_v0, %v1483_v9  ;;  %v3224_v47 = vrot.slane %v3223_v62, 4  ;;  %v3212_v25 = vrot.slane %v3211_v16, 1 }
 0xdab   : > { %v1530_v54 = vmul.f32 1.442695, %v1514_v22  ;;  %v3225_v53 = vadd.f32 %v3224_v47, %v3223_v62  ;;  %v3213_v61 = vadd.f32 %v3212_v25, %v3211_v16  ;;  %v1457_v62 = vmul.f32 %v5587_v28, %v5203_v59 }
 0xdad   : > { %4620 = vpow2.f32 %v1530_v54  ;;  %v3226_v55 = vrot.slane %v3225_v53, 2  ;;  %4446 = vpush %v3213_v61  ;;  %v5779_v25 = vsel %vm1007_vm6, %v1457_v62, -1e+30 }
 0xdaf   : > { %v3227_v18 = vadd.f32 %v3226_v55, %v3225_v53 }
 0xdb0   : > { %v1485_v7 = vpop.xlane.xlu0 %1484  ;;  %v1487_v11 = vpop.xlane.xlu1 %1486 }
 0xdb1   : > { %v1515_v36 = vsub.f32 %v1467_v4, %v1485_v7  ;;  %v3228_v1 = vrot.slane %v3227_v18, 1  ;;  %v1516_v0 = vsub.f32 %v5717_v27, %v1487_v11  ;;  %v5765_v4 = vsel %vm1007_vm6, %v1456_v43, -1e+30 }
 0xdb3   : > { %v5757_v34 = vpop.eup %4620  ;;  %v1532_v17 = vmul.f32 1.442695, %v1515_v36  ;;  %v3229_v60 = vadd.f32 %v3228_v1, %v3227_v18  ;;  %v1534_v2 = vmul.f32 1.442695, %v1516_v0  ;;  %v1459_v18 = vmul.f32 %v5587_v28, %v5347_v45 }
 0xdb4   : > { %1562 = vadd.xlane.f32.xlu1 %v5757_v34  ;;  %v1460_v45 = vmul.f32 %v5587_v28, %v5349_v21 }
 0xdb5   : > { %4448 = vpush %v3229_v60  ;;  %4622 = vpow2.f32 %v1532_v17  ;;  %v5801_v11 = vsel %vm1007_vm6, %v1459_v18, -1e+30 }
 0xdb6   : > { %4624 = vpow2.f32 %v1534_v2  ;;  %v5810_v43 = vsel %vm1007_vm6, %v1460_v45, -1e+30 }
 0xdb8   : > { %v1489_v16 = vpop.xlane.xlu0 %1488  ;;  %v1491_v22 = vpop.xlane.xlu1 %1490 }
 0xdb9   : > { %v1517_v27 = vsub.f32 %v5731_v40, %v1489_v16  ;;  %v1518_v54 = vsub.f32 %v5727_v6, %v1491_v22  ;;  %v1458_v40 = vmul.f32 %v5587_v28, %v5345_v44 }
 0xdbb   : > { %v5767_v9 = vpop.eup %4622  ;;  %v1536_v57 = vmul.f32 1.442695, %v1517_v27  ;;  %v1538_v59 = vmul.f32 1.442695, %v1518_v54  ;;  %v5787_v61 = vsel %vm1007_vm6, %v1458_v40, -1e+30 }
 0xdbc   : > { %1498 = vmax.xlane.f32.xlu1 %v5765_v4  ;;  %1564 = vadd.xlane.f32.xlu0 %v5767_v9  ;;  %v5774_v47 = vpop.eup %4624 }
 0xdbd   : > { %4626 = vpow2.f32 %v1536_v57 }
 0xdbe   : > { %4628 = vpow2.f32 %v1538_v59 }
 0xdc0   : > { %v1493_v53 = vpop.xlane.xlu0 %1492  ;;  %v1495_v1 = vpop.xlane.xlu1 %1494 }
 0xdc1   : > { %v1519_v6 = vsub.f32 %v5746_v5, %v1493_v53  ;;  %v1520_v5 = vsub.f32 %v5742_v41, %v1495_v1 }
 0xdc3   : > { %v5789_v55 = vpop.eup %4626  ;;  %v1540_v7 = vmul.f32 1.442695, %v1519_v6  ;;  %v1542_v0 = vmul.f32 1.442695, %v1520_v5 }
 0xdc4   : > { %1566 = vadd.xlane.f32.xlu1 %v5774_v47  ;;  %1500 = vmax.xlane.f32.xlu0 %v5779_v25  ;;  %v5796_v36 = vpop.eup %4628 }
 0xdc5   : > { %4630 = vpow2.f32 %v1540_v7 }
 0xdc8   : > { %v1497_v44 = vpop.xlane.xlu0 %1496 }
 0xdc9   : > { %v1521_v17 = vsub.f32 %v5754_v10, %v1497_v44  ;;  %v1463_v10 = vmul.f32 %v5587_v28, %v5357_v49 }
 0xdcb   : > { %v1544_v60 = vmul.f32 1.442695, %v1521_v17  ;;  %v5812_v2 = vpop.eup %4630  ;;  %v5828_v16 = vsel %vm1007_vm6, %v1463_v10, -1e+30 }
 0xdcc   : > { %1502 = vmax.xlane.f32.xlu1 %v5787_v61  ;;  %1568 = vadd.xlane.f32.xlu0 %v5789_v55 }
 0xdcd   : > { %4632 = vpow2.f32 %v1544_v60 }
 0xdce   : > { %4634 = vpow2.f32 %v1542_v0 }
 0xdd3   : > { %v5818_v41 = vpop.eup %4632 }
 0xdd4   : > { %1570 = vadd.xlane.f32.xlu1 %v5796_v36  ;;  %1504 = vmax.xlane.f32.xlu0 %v5801_v11  ;;  %v5820_v21 = vpop.eup %4634 }
 0xddc   : > { %1506 = vmax.xlane.f32.xlu1 %v5810_v43  ;;  %1572 = vadd.xlane.f32.xlu0 %v5812_v2 }
 0xdde   : > { %s4447_s7 = spop %4446 }
 0xddf   : > { %s3231_s29 = smul.f32 0.000390625, %s4447_s7 }
 0xde1   : > { %s3233_s9 = smul.f32 %s3231_s29, %s3231_s29 }
 0xde4   : > { %1576 = vadd.xlane.f32.xlu1 %v5818_v41  ;;  %1574 = vadd.xlane.f32.xlu0 %v5820_v21 }
 0xde6   : > { %s4449_s27 = spop %4448 }
 0xde7   : > { %s3232_s30 = smul.f32 0.000390625, %s4449_s27  ;;  %s4924_s27 = scalar_lea.hbm %s6431_s3, 32 }
 0xde9   : > { %s3234_s6 = ssub.f32 %s3232_s30, %s3233_s9 }
 0xdeb   : > { %s3235_s10 = sadd.f32 1e-05, %s3234_s6 }
 0xdec   : > { %1512 = vmax.xlane.f32.xlu0 %v5828_v16 }
 0xded   : > { %v3236_v27 = vstv %s3235_s10 }
 0xdee   : > { %4636 = vrsqrt.f32 %v3236_v27  ;;  %vm3243_vm7 = vweird.f32 %v3236_v27 }
 0xdf4   : > { %v4637_v62 = vpop.eup %4636 }
 0xdf5   : > { %v3238_v22 = vmul.f32 %v4637_v62, %v3236_v27  ;;  %vm3244_vm5 = vweird.f32 %v4637_v62 }
 0xdf6   : > { %vm3245_vm8 = vmor %vm3243_vm7, %vm3244_vm5 }
 0xdf7   : > { %v3239_v57 = vmul.f32 %v4637_v62, %v3238_v22 }
 0xdf9   : > { %v3240_v54 = vmul.f32 0.5, %v3239_v57 }
 0xdfb   : > { %v3241_v40 = vsub.f32 1.5, %v3240_v54 }
 0xdfd   : > { %v3242_v53 = vmul.f32 %v4637_v62, %v3241_v40 }
 0xdff   : > { %v3246_v49 = vsel %vm3245_vm8, %v4637_v62, %v3242_v53  ;;  %v2655_v62 = vstv %s5552_s18  ;;  %v2638_v53 = vstv %s5620_s5  ;;  %s3777_s5 = sshll.u32 %s5107_s20, 4 }
 0xe00   : > { %4450 = vpush %v3246_v49  ;;  %v2672_v22 = vmul.f32 %v2655_v62, %v5359_v52  ;;  %v2674_v49 = vmul.f32 %v2638_v53, %v5461_v51 }
 0xe27   : > { %v1563_v28 = vpop.xlane.xlu1 %1562 }
 0xe28   : > { %4638 = vrcp.f32 %v1563_v28 }
 0xe2e   : > { %v4639_v44 = vpop.eup %4638 }
 0xe2f   : > { %v1499_v59 = vpop.xlane.xlu1 %1498  ;;  %v1565_v18 = vpop.xlane.xlu0 %1564  ;;  %v1610_v5 = vmul.f32 %v4639_v44, %v5757_v34 }
 0xe30   : > { %v1522_v6 = vsub.f32 %v5765_v4, %v1499_v59  ;;  %4640 = vrcp.f32 %v1565_v18 }
 0xe31   : > { %s4451_s18 = spop %4450 }
 0xe32   : > { %v1546_v7 = vmul.f32 1.442695, %v1522_v6 }
 0xe34   : > { %4642 = vpow2.f32 %v1546_v7 }
 0xe36   : > { %v4641_v1 = vpop.eup %4640 }
 0xe37   : > { %v1567_v17 = vpop.xlane.xlu1 %1566  ;;  %v1611_v45 = vmul.f32 %v4641_v1, %v5767_v9  ;;  %v1501_v60 = vpop.xlane.xlu0 %1500  ;;  %v5858_v1 = vsel %vm1007_vm6, %v2674_v49, -1e+30 }
 0xe38   : > { %v1523_v0 = vsub.f32 %v5779_v25, %v1501_v60  ;;  %v5843_v25 = vsel %vm1007_vm6, %v2672_v22, -1e+30 }
 0xe39   : > { %v1626_v27 = vpack.c.bf16 %v1611_v45, %v1610_v5  ;;  %v5861_v5 = vstv %s5649_s28  ;;  %v1509_v45 = vpop.xlane.xlu2 %1508  ;;  %s4341_s28 = sshll.u32 %s5026_s16, 4 }
 0xe3a   : > { %v5835_v10 = vpop.eup %4642  ;;  %v1548_v4 = vmul.f32 1.442695, %v1523_v0  ;;  %s3669_s22 = scalar_lea.hbm %s6431_s3, %s4341_s28 }
 0xe3b   : > { %1578 = vadd.xlane.f32.xlu1 %v5835_v10  ;;  %2258 = vmatmul.bf16.vlgmr.msrb.gmra.mxu3 %v1626_v27  ;;  %s3672_s26 = sshll.u32 %s3669_s22, 4  ;;  %s3673_s26 = int_to_ptr.hbm [resolvable:$true] %s3672_s26 }
 0xe3c   : > { %4644 = vpow2.f32 %v1548_v4  ;;  %s4918_s7 = sshra.s32 %s3673_s26, 4  ;;  %s4919_s7 = int_to_ptr.hbm [resolvable:$true] %s4918_s7 }
 0xe3d   : > { %4646 = vrcp.f32 %v1567_v17  ;;  %s4920_s29 = scalar_lea.hbm %s4919_s7, 16  ;;  %p4925_p11 = scmp.lt.s32.totalorder %s4919_s7, %s6431_s3 }
 0xe3e   : > { %p4921_p1 = scmp.ne.s32.totalorder %s4919_s7, %s4920_s29  ;;  %p4926_p9 = scmp.lt.s32.totalorder %s4924_s27, %s4920_s29 }
 0xe3f   : > { %v1503_v57 = vpop.xlane.xlu1 %1502  ;;  %v1569_v9 = vpop.xlane.xlu0 %1568 }
 0xe40   : > { %v1524_v34 = vsub.f32 %v5787_v61, %v1503_v57  ;;  %4648 = vrcp.f32 %v1569_v9  ;;  %p4922_p4 = pnand %p4921_p1, %p5077_p5  ;;  %p4927_p2 = por %p4926_p9, %p4925_p11 }
 0xe42   : > { %v1550_v54 = vmul.f32 1.442695, %v1524_v34  ;;  %v5845_v40 = vpop.eup %4644  ;;  %p4923_p8 = pneg %p4922_p4 }
 0xe43   : > { %2704 = vmax.xlane.f32.xlu1 %v5843_v25  ;;  %1580 = vadd.xlane.f32.xlu2 %v5845_v40  ;;  %v4647_v52 = vpop.eup %4646 }
 0xe44   : > { %4650 = vpow2.f32 %v1550_v54  ;;  %v1612_v6 = vmul.f32 %v4647_v52, %v5774_v47  ;;  %v2676_v47 = vmul.f32 %v5861_v5, %v5511_v48  ;;  %v3266_v48 = vstv %s5735_s4  ;;  %p4928_p10 = pnand %p4927_p2, %p4923_p8 }
 0xe46   : > { %v4649_v61 = vpop.eup %4648  ;;  %v5872_v22 = vsel %vm1007_vm6, %v2676_v47, -1e+30 }
 0xe47   : > { %v1571_v28 = vpop.xlane.xlu1 %1570  ;;  %v1505_v59 = vpop.xlane.xlu0 %1504  ;;  %v1613_v18 = vmul.f32 %v4649_v61, %v5789_v55  ;;  %v1527_v55 = vsub.f32 %v5596_v14, %v1509_v45 }
 0xe48   : > { %v1525_v7 = vsub.f32 %v5801_v11, %v1505_v59  ;;  %v2673_v11 = vmul.f32 %v2638_v53, %v5453_v38  ;;  %v1511_v59 = vpop.xlane.xlu2 %1510 }
 0xe49   : > { %v1627_v17 = vpack.c.bf16 %v1613_v18, %v1612_v6  ;;  %v1556_v62 = vmul.f32 1.442695, %v1527_v55  ;;  %v5896_v6 = vstv %s5670_s25  ;;  %v2675_v18 = vmul.f32 %v5861_v5, %v5508_v29  ;;  %s223_s25 = scalar_lea.vmem [#allocation8], %s3777_s5 }
 0xe4a   : > { %v5854_v44 = vpop.eup %4650  ;;  %v1552_v51 = vmul.f32 1.442695, %v1525_v7  ;;  %v5880_v38 = vsel %vm1007_vm6, %v2673_v11, -1e+30  ;;  %v5914_v11 = vstv %s5816_s23  ;;  %s3670_s24 = sshll.u32 %s223_s25, 4  ;;  %s3658_s23 = scalar_lea.sflag [#allocation4], %s5107_s20  ;;  %s3671_s24 = int_to_ptr.vmem [resolvable:$true] %s3670_s24 }
 0xe4b   : > { %2708 = vmax.xlane.f32.xlu1 %v5858_v1  ;;  %1582 = vadd.xlane.f32.xlu2 %v5854_v44  ;;  %v3303_v29 = vmul.f32 %v5914_v11, %v5651_v8 }
 0xe4c   : > { %2263 = vmatmul.bf16.gmra.mxu3 %v1627_v17  ;;  %4652 = vpow2.f32 %v1552_v51 }
 0xe4d   : > { %4654 = vrcp.f32 %v1571_v28 }
 0xe4f   : > { %v1507_v60 = vpop.xlane.xlu1 %1506  ;;  %v1573_v27 = vpop.xlane.xlu0 %1572 }
 0xe50   : > { %v1526_v0 = vsub.f32 %v5810_v43, %v1507_v60  ;;  %4656 = vrcp.f32 %v1573_v27  ;;  %v3301_v43 = vmul.f32 %v3266_v48, %v5638_v63 }
 0xe52   : > { %v1554_v4 = vmul.f32 1.442695, %v1526_v0  ;;  %v5874_v57 = vpop.eup %4652  ;;  %v5893_v61 = vsel %vm1007_vm6, %v3301_v43, -1e+30  ;;  %v5928_v0 = vsel %vm1007_vm6, %v3303_v29, -1e+30 }
 0xe53   : > { %2712 = vmax.xlane.f32.xlu1 %v5872_v22  ;;  %2706 = vmax.xlane.f32.xlu2 %v5880_v38  ;;  %v4655_v14 = vpop.eup %4654 }
 0xe54   : > { %4658 = vpow2.f32 %v1554_v4  ;;  %1584 = vadd.xlane.f32.xlu0 %v5874_v57  ;;  %v1614_v54 = vmul.f32 %v4655_v14, %v5796_v36  ;;  %v1528_v36 = vsub.f32 %v5605_v3, %v1511_v59  ;;  %v3283_v14 = vstv %s5696_s21 }
 0xe55   : > { %4660 = vpow2.f32 %v1556_v62  ;;  %v3300_v8 = vmul.f32 %v3283_v14, %v5627_v24 }
 0xe56   : > { %v4657_v34 = vpop.eup %4656  ;;  %v1558_v51 = vmul.f32 1.442695, %v1528_v36 }
 0xe57   : > { %v1575_v9 = vpop.xlane.xlu0 %1574  ;;  %v1615_v53 = vmul.f32 %v4657_v34, %v5812_v2  ;;  %v1577_v52 = vpop.xlane.xlu1 %1576  ;;  %v2678_v2 = vmul.f32 %v5896_v6, %v5543_v35  ;;  %v5919_v35 = vsel %vm1007_vm6, %v2675_v18, -1e+30  ;;  %v2679_v34 = vmul.f32 %v5896_v6, %v5546_v56 }
 0xe58   : > { %4662 = vrcp.f32 %v1577_v52 }
 0xe59   : > { %v1628_v28 = vpack.c.bf16 %v1615_v53, %v1614_v54  ;;  %4664 = vrcp.f32 %v1575_v9  ;;  %v5911_v47 = vsel %vm1007_vm6, %v2678_v2, -1e+30  ;;  %v5955_v24 = vsel %vm1007_vm6, %v2679_v34, -1e+30 }
 0xe5a   : > { %v5889_v49 = vpop.eup %4658 }
 0xe5b   : > { %3334 = vmax.xlane.f32.xlu1 %v5893_v61  ;;  %v5899_v63 = vpop.eup %4660  ;;  %1586 = vadd.xlane.f32.xlu2 %v5889_v49 }
 0xe5c   : > { %2268 = vmatmul.bf16.gmra.mxu3 %v1628_v28  ;;  %1588 = vadd.xlane.f32.xlu0 %v5899_v63 }
 0xe5e   : > { %v4663_v45 = vpop.eup %4662 }
 0xe5f   : > { %v1513_v7 = vpop.xlane.xlu0 %1512  ;;  %v4665_v55 = vpop.eup %4664  ;;  %v1617_v60 = vmul.f32 %v4663_v45, %v5818_v41  ;;  %v2677_v41 = vmul.f32 %v5861_v5, %v5516_v23 }
 0xe60   : > { %v1529_v17 = vsub.f32 %v5828_v16, %v1513_v7  ;;  %v1616_v16 = vmul.f32 %v4665_v55, %v5820_v21  ;;  %v5943_v21 = vsel %vm1007_vm6, %v3300_v8, -1e+30 }
 0xe61   : > { %v5948_v43 = vsel %vm1007_vm6, %v2677_v41, -1e+30 }
 0xe62   : > { %v1560_v3 = vmul.f32 1.442695, %v1529_v17  ;;  %v1629_v27 = vpack.c.bf16 %v1617_v60, %v1616_v16 }
 0xe63   : > { %2716 = vmax.xlane.f32.xlu1 %v5911_v47  ;;  %2710 = vmax.xlane.f32.xlu2 %v5919_v35 }
 0xe64   : > { %4666 = vpow2.f32 %v1560_v3 }
 0xe65   : > { %4668 = vpow2.f32 %v1558_v51 }
 0xe6a   : > { %v5930_v62 = vpop.eup %4666 }
 0xe6b   : > { %3338 = vmax.xlane.f32.xlu1 %v5928_v0  ;;  %v5933_v4 = vpop.eup %4668  ;;  %1592 = vadd.xlane.f32.xlu0 %v5930_v62 }
 0xe6c   : > { %2273 = vmatmul.bf16.gmra.mxu3 %v1629_v27  ;;  %1590 = vadd.xlane.f32.xlu2 %v5933_v4 }
 0xe73   : > { %3332 = vmax.xlane.f32.xlu0 %v5943_v21 }
 0xe74   : > { %2714 = vmax.xlane.f32.xlu2 %v5948_v43 }
 0xe7c   : > { %2718 = vmax.xlane.f32.xlu2 %v5955_v24 }
 0xeae   : > { %v1579_v23 = vpop.xlane.xlu1 %1578 }
 0xeaf   : > { %4670 = vrcp.f32 %v1579_v23 }
 0xeb5   : > { %v4671_v52 = vpop.eup %4670 }
 0xeb6   : > { %v2705_v5 = vpop.xlane.xlu1 %2704  ;;  %v1581_v54 = vpop.xlane.xlu2 %1580  ;;  %v1618_v36 = vmul.f32 %v4671_v52, %v5835_v10 }
 0xeb7   : > { %v2736_v9 = vsub.f32 %v5843_v25, %v2705_v5  ;;  %4672 = vrcp.f32 %v1581_v54  ;;  %v3302_v25 = vmul.f32 %v3266_v48, %v5644_v15  ;;  %v2680_v15 = vmul.f32 %v5896_v6, %v5549_v13 }
 0xeb8   : > { %v3304_v13 = vmul.f32 %v5914_v11, %v5655_v20 }
 0xeb9   : > { %v2752_v53 = vmul.f32 1.442695, %v2736_v9  ;;  %v5974_v10 = vsel %vm1007_vm6, %v3302_v25, -1e+30  ;;  %v5983_v14 = vsel %vm1007_vm6, %v2680_v15, -1e+30 }
 0xeba   : > { %v5996_v9 = vsel %vm1007_vm6, %v3304_v13, -1e+30 }
 0xebb   : > { %4674 = vpow2.f32 %v2752_v53 }
 0xebd   : > { %v4673_v28 = vpop.eup %4672 }
 0xebe   : > { %v5959_v59 = vpop.xlane.xlu1 %2708  ;;  %v1583_v56 = vpop.xlane.xlu2 %1582  ;;  %v1619_v2 = vmul.f32 %v4673_v28, %v5845_v40 }
 0xebf   : > { %4676 = vrcp.f32 %v1583_v56  ;;  %v6008_v56 = vstv %s4451_s18 }
 0xec0   : > { %v1630_v7 = vpack.c.bf16 %v1619_v2, %v1618_v36 }
 0xec1   : > { %v5963_v18 = vpop.eup %4674 }
 0xec2   : > { %2784 = vadd.xlane.f32.xlu0 %v5963_v18  ;;  %2278 = vmatmul.bf16.gmra.mxu3 %v1630_v7 }
 0xec5   : > { %v4677_v3 = vpop.eup %4676 }
 0xec6   : > { %v5969_v17 = vpop.xlane.xlu1 %2712  ;;  %v2707_v51 = vpop.xlane.xlu2 %2706  ;;  %v1620_v16 = vmul.f32 %v4677_v3, %v5854_v44  ;;  %v3305_v44 = vmul.f32 %v5914_v11, %v5660_v19 }
 0xec7   : > { %v1585_v45 = vpop.xlane.xlu0 %1584  ;;  %v2737_v55 = vsub.f32 %v5880_v38, %v2707_v51  ;;  %v6024_v3 = vpop.f32.mrf.mxu2 }
 0xec8   : > { %4678 = vrcp.f32 %v1585_v45 }
 0xec9   : > { %v2754_v40 = vmul.f32 1.442695, %v2737_v55 }
 0xeca   : > { %3336 = vmax.xlane.f32.xlu0 %v5974_v10 }
 0xecb   : > { %4680 = vpow2.f32 %v2754_v40 }
 0xece   : > { %v4679_v48 = vpop.eup %4678  ;;  %v3335_v29 = vpop.xlane.xlu1 %3334 }
 0xecf   : > { %v1621_v60 = vmul.f32 %v4679_v48, %v5874_v57  ;;  %v1589_v27 = vpop.xlane.xlu0 %1588  ;;  %v1587_v38 = vpop.xlane.xlu2 %1586  ;;  %v3365_v34 = vsub.f32 %v5893_v61, %v3335_v29  ;;  %v6001_v61 = vsel %vm1007_vm6, %v3305_v44, -1e+30 }
 0xed0   : > { %4682 = vrcp.f32 %v1589_v27 }
 0xed1   : > { %v1631_v8 = vpack.c.bf16 %v1621_v60, %v1620_v16  ;;  %v5986_v41 = vpop.eup %4680  ;;  %4684 = vrcp.f32 %v1587_v38  ;;  %v3382_v57 = vmul.f32 1.442695, %v3365_v34  ;;  %v2383_v16 = vpop.f32.mrf.mxu0 }
 0xed2   : > { %2720 = vmax.xlane.f32.xlu0 %v5983_v14  ;;  %2786 = vadd.xlane.f32.xlu1 %v5986_v41  ;;  %v3013_v60 = vpop.f32.mrf.mxu2 }
 0xed3   : > { %2283 = vmatmul.bf16.gmra.mxu3 %v1631_v8  ;;  %4686 = vpow2.f32 %v3382_v57  ;;  %v3308_v8 = vmul.f32 %v6008_v56, %v5683_v58  ;;  %v3311_v58 = vmul.f32 %v6008_v56, %v3013_v60 }
 0xed5   : > { %v6053_v13 = vsel %vm1007_vm6, %v3308_v8, -1e+30 }
 0xed6   : > { %v4683_v5 = vpop.eup %4682 }
 0xed7   : > { %v2711_v23 = vpop.xlane.xlu2 %2710  ;;  %v4685_v54 = vpop.eup %4684  ;;  %v1623_v19 = vmul.f32 %v4683_v5, %v5899_v63 }
 0xed8   : > { %v1622_v20 = vmul.f32 %v4685_v54, %v5889_v49  ;;  %v2739_v36 = vsub.f32 %v5919_v35, %v2711_v23  ;;  %v3306_v49 = vmul.f32 %v6008_v56, %v5672_v32  ;;  %v2738_v35 = vsub.f32 %v5858_v1, %v5959_v59 }
 0xed9   : > { %v6006_v53 = vpop.eup %4686  ;;  %v3309_v1 = vmul.f32 %v6008_v56, %v5693_v46  ;;  %v2385_v27 = vpop.f32.mrf.mxu0 }
 0xeda   : > { %3340 = vmax.xlane.f32.xlu0 %v5996_v9  ;;  %3342 = vmax.xlane.f32.xlu1 %v6001_v61  ;;  %v1632_v28 = vpack.c.bf16 %v1623_v19, %v1622_v20  ;;  %v2758_v2 = vmul.f32 1.442695, %v2739_v36  ;;  %v6017_v45 = vsel %vm1007_vm6, %v3306_v49, -1e+30  ;;  %v2683_v38 = vmul.f32 %v5896_v6, %v2385_v27  ;;  %v3016_v44 = vpop.f32.mrf.mxu2 }
 0xedb   : > { %v3312_v23 = vmul.f32 %v6008_v56, %v3016_v44  ;;  %v6066_v20 = vsel %vm1007_vm6, %v3311_v58, -1e+30  ;;  %v6117_v58 = vpop.f32.mrf.mxu3 }
 0xedc   : > { %v6049_v34 = vsel %vm1007_vm6, %v2683_v38, -1e+30 }
 0xedd   : > { %v6062_v54 = vsel %vm1007_vm6, %v3312_v23, -1e+30 }
 0xede   : > { %v1593_v11 = vpop.xlane.xlu0 %1592 }
 0xedf   : > { %v1591_v52 = vpop.xlane.xlu2 %1590  ;;  %4688 = vrcp.f32 %v1593_v11 }
 0xee0   : > { %4690 = vrcp.f32 %v1591_v52  ;;  %v2682_v52 = vmul.f32 %v5896_v6, %v2383_v16  ;;  %v3307_v16 = vmul.f32 %v6008_v56, %v5677_v42  ;;  %v2681_v42 = vmul.f32 %v5896_v6, %v5556_v12 }
 0xee1   : > { %4692 = vpow2.f32 %v2758_v2  ;;  %v6079_v49 = vpop.f32.mrf.mxu0  ;;  %v3310_v12 = vmul.f32 %v6008_v56, %v6024_v3 }
 0xee2   : > { %3414 = vadd.xlane.f32.xlu0 %v6006_v53  ;;  %v6077_v36 = vsel %vm1007_vm6, %v2682_v52, -1e+30 }
 0xee3   : > { %2288 = vmatmul.bf16.gmra.mxu3 %v1632_v28 }
 0xee5   : > { %v4689_v25 = vpop.eup %4688 }
 0xee6   : > { %v3333_v63 = vpop.xlane.xlu0 %3332  ;;  %v4691_v51 = vpop.eup %4690  ;;  %v1625_v40 = vmul.f32 %v4689_v25, %v5930_v62  ;;  %v6038_v62 = vsel %vm1007_vm6, %v3309_v1, -1e+30 }
 0xee7   : > { %v3364_v7 = vsub.f32 %v5943_v21, %v3333_v63  ;;  %v1624_v32 = vmul.f32 %v4691_v51, %v5933_v4  ;;  %v2756_v21 = vmul.f32 1.442695, %v2738_v35  ;;  %v6026_v15 = vpop.eup %4692  ;;  %v6034_v4 = vpop.xlane.xlu1 %2716 }
 0xee8   : > { %v2715_v19 = vpop.xlane.xlu2 %2714 }
 0xee9   : > { %v3380_v55 = vmul.f32 1.442695, %v3364_v7  ;;  %v1633_v48 = vpack.c.bf16 %v1625_v40, %v1624_v32  ;;  %v2741_v11 = vsub.f32 %v5948_v43, %v2715_v19  ;;  %v2390_v63 = vpop.f32.mrf.mxu0 }
 0xeea   : > { %3344 = vmax.xlane.f32.xlu0 %v6017_v45  ;;  %v2685_v7 = vmul.f32 %v5896_v6, %v2390_v63 }
 0xeeb   : > { %4694 = vpow2.f32 %v3380_v55  ;;  %v2762_v28 = vmul.f32 1.442695, %v2741_v11 }
 0xeec   : > { %4696 = vpow2.f32 %v2756_v21  ;;  %v6088_v43 = vsel %vm1007_vm6, %v2685_v7, -1e+30  ;;  %v6135_v7 = vpop.f32.mrf.mxu3 }
 0xeef   : > { %v3339_v46 = vpop.xlane.xlu1 %3338 }
 0xef0   : > { %v3367_v57 = vsub.f32 %v5928_v0, %v3339_v46  ;;  %v6104_v46 = vsel %vm1007_vm6, %v3307_v16, -1e+30  ;;  %v2719_v19 = vpop.xlane.xlu2 %2718 }
 0xef1   : > { %v6028_v29 = vpop.eup %4694 }
 0xef2   : > { %2790 = vadd.xlane.f32.xlu0 %v6026_v15  ;;  %3412 = vadd.xlane.f32.xlu2 %v6028_v29  ;;  %v6040_v59 = vpop.eup %4696  ;;  %v3386_v5 = vmul.f32 1.442695, %v3367_v57  ;;  %v2742_v57 = vsub.f32 %v5911_v47, %v6034_v4 }
 0xef3   : > { %2293 = vmatmul.bf16.gmra.mxu3 %v1633_v48 }
 0xef4   : > { %4698 = vpow2.f32 %v3386_v5  ;;  %v2740_v5 = vsub.f32 %v5872_v22, %v5969_v17  ;;  %v6130_v22 = vsel %vm1007_vm6, %v3310_v12, -1e+30  ;;  %v3018_v17 = vpop.f32.mrf.mxu2 }
 0xef5   : > { %4700 = vpow2.f32 %v2762_v28 }
 0xef6   : > { %v2760_v47 = vmul.f32 1.442695, %v2740_v5 }
 0xefa   : > { %3350 = vmax.xlane.f32.xlu0 %v6038_v62  ;;  %2788 = vadd.xlane.f32.xlu2 %v6040_v59  ;;  %v6070_v0 = vpop.eup %4698 }
 0xefb   : > { %v6082_v2 = vpop.eup %4700 }
 0xf02   : > { %2726 = vmax.xlane.f32.xlu0 %v6049_v34  ;;  %3348 = vmax.xlane.f32.xlu2 %v6053_v13 }
 0xf0a   : > { %3356 = vmax.xlane.f32.xlu0 %v6062_v54  ;;  %3354 = vmax.xlane.f32.xlu2 %v6066_v20 }
 0xf12   : > { %3418 = vadd.xlane.f32.xlu2 %v6070_v0 }
 0xf1a   : > { %2724 = vmax.xlane.f32.xlu2 %v6077_v36 }
 0xf22   : > { %2794 = vadd.xlane.f32.xlu2 %v6082_v2 }
 0xf2a   : > { %2730 = vmax.xlane.f32.xlu2 %v6088_v43 }
 0xf35   : > { %v2785_v25 = vpop.xlane.xlu0 %2784 }
 0xf3d   : > { %v3337_v51 = vpop.xlane.xlu0 %3336 }
 0xf3e   : > { %v3366_v55 = vsub.f32 %v5974_v10, %v3337_v51 }
 0xf40   : > { %v3384_v35 = vmul.f32 1.442695, %v3366_v55 }
 0xf42   : > { %4702 = vpow2.f32 %v3384_v35 }
 0xf43   : > { %4704 = vrcp.f32 %v2785_v25 }
 0xf45   : > { %v6092_v32 = vpop.xlane.xlu0 %2720  ;;  %v2787_v40 = vpop.xlane.xlu1 %2786 }
 0xf46   : > { %4706 = vrcp.f32 %v2787_v40 }
 0xf48   : > { %v6094_v21 = vpop.eup %4702 }
 0xf49   : > { %3416 = vadd.xlane.f32.xlu1 %v6094_v21  ;;  %v4705_v48 = vpop.eup %4704 }
 0xf4a   : > { %v2832_v10 = vmul.f32 %v4705_v48, %v5963_v18  ;;  %v2764_v18 = vmul.f32 1.442695, %v2742_v57  ;;  %v3021_v48 = vpop.f32.mrf.mxu2 }
 0xf4c   : > { %v4707_v60 = vpop.eup %4706 }
 0xf4d   : > { %v3341_v1 = vpop.xlane.xlu0 %3340  ;;  %v2833_v38 = vmul.f32 %v4707_v60, %v5986_v41  ;;  %v6115_v41 = vsel %vm1007_vm6, %v2681_v42, -1e+30  ;;  %v3343_v52 = vpop.xlane.xlu1 %3342 }
 0xf4e   : > { %v3368_v27 = vsub.f32 %v5996_v9, %v3341_v1  ;;  %v3369_v3 = vsub.f32 %v6001_v61, %v3343_v52  ;;  %v3314_v61 = vmul.f32 %v6008_v56, %v3021_v48  ;;  %v6144_v1 = vpop.f32.mrf.mxu3 }
 0xf4f   : > { %v2848_v44 = vpack.c.bf16 %v2833_v38, %v2832_v10 }
 0xf50   : > { %v3388_v8 = vmul.f32 1.442695, %v3368_v27  ;;  %v3390_v25 = vmul.f32 1.442695, %v3369_v3  ;;  %v6153_v42 = vsel %vm1007_vm6, %v3314_v61, -1e+30 }
 0xf51   : > { %3346 = vmax.xlane.f32.xlu1 %v6104_v46  ;;  %2870 = vmatmul.bf16.vlgmr.msra.gmra.mxu1 %v2848_v44 }
 0xf52   : > { %4708 = vpow2.f32 %v3388_v8 }
 0xf53   : > { %4710 = vpow2.f32 %v2764_v18 }
 0xf54   : > { %4712 = vpow2.f32 %v2760_v47 }
 0xf55   : > { %v3415_v9 = vpop.xlane.xlu0 %3414 }
 0xf56   : > { %v6164_v52 = vpop.f32.mrf.mxu3 }
 0xf58   : > { %v6111_v23 = vpop.eup %4708 }
 0xf59   : > { %2722 = vmax.xlane.f32.xlu1 %v6115_v41  ;;  %3420 = vadd.xlane.f32.xlu0 %v6111_v23  ;;  %v6126_v28 = vpop.eup %4710 }
 0xf5a   : > { %v6137_v55 = vpop.eup %4712 }
 0xf5d   : > { %v3345_v4 = vpop.xlane.xlu0 %3344 }
 0xf5e   : > { %v3370_v11 = vsub.f32 %v6017_v45, %v3345_v4  ;;  %v6184_v48 = vpop.f32.mrf.mxu3 }
 0xf60   : > { %v3392_v63 = vmul.f32 1.442695, %v3370_v11 }
 0xf61   : > { %3352 = vmax.xlane.f32.xlu1 %v6130_v22  ;;  %2796 = vadd.xlane.f32.xlu0 %v6126_v28 }
 0xf62   : > { %4714 = vpow2.f32 %v3392_v63 }
 0xf63   : > { %4716 = vrcp.f32 %v3415_v9 }
 0xf65   : > { %v2791_v45 = vpop.xlane.xlu0 %2790  ;;  %v3413_v51 = vpop.xlane.xlu2 %3412 }
 0xf66   : > { %4718 = vrcp.f32 %v3413_v51 }
 0xf67   : > { %4720 = vpow2.f32 %v3390_v25 }
 0xf68   : > { %v6139_v35 = vpop.eup %4714  ;;  %4722 = vrcp.f32 %v2791_v45 }
 0xf69   : > { %2792 = vadd.xlane.f32.xlu1 %v6137_v55  ;;  %3424 = vadd.xlane.f32.xlu2 %v6139_v35  ;;  %v4717_v40 = vpop.eup %4716 }
 0xf6a   : > { %v3461_v27 = vmul.f32 %v4717_v40, %v6006_v53  ;;  %v2744_v53 = vsub.f32 %v5983_v14, %v6092_v32 }
 0xf6c   : > { %v4719_v16 = vpop.eup %4718  ;;  %v2768_v5 = vmul.f32 1.442695, %v2744_v53 }
 0xf6d   : > { %v3351_v60 = vpop.xlane.xlu0 %3350  ;;  %v3460_v10 = vmul.f32 %v4719_v16, %v6028_v29  ;;  %v2789_v8 = vpop.xlane.xlu2 %2788 }
 0xf6e   : > { %v3373_v38 = vsub.f32 %v6038_v62, %v3351_v60  ;;  %4724 = vrcp.f32 %v2789_v8  ;;  %v6149_v44 = vpop.eup %4720  ;;  %v3313_v62 = vmul.f32 %v6008_v56, %v3018_v17  ;;  %v2743_v17 = vsub.f32 %v5955_v24, %v2719_v19 }
 0xf6f   : > { %v3476_v9 = vpack.c.bf16 %v3461_v27, %v3460_v10  ;;  %v4723_v29 = vpop.eup %4722  ;;  %v2393_v10 = vpop.f32.mrf.mxu0 }
 0xf70   : > { %v3398_v57 = vmul.f32 1.442695, %v3373_v38  ;;  %v2835_v11 = vmul.f32 %v4723_v29, %v6026_v15  ;;  %v6170_v14 = vsel %vm1007_vm6, %v3313_v62, -1e+30  ;;  %v2684_v15 = vmul.f32 %v5896_v6, %v6079_v49  ;;  %v6196_v38 = vpop.f32.mrf.mxu3 }
 0xf71   : > { %3422 = vadd.xlane.f32.xlu1 %v6149_v44  ;;  %3360 = vmax.xlane.f32.xlu2 %v6153_v42 }
 0xf72   : > { %4726 = vpow2.f32 %v3398_v57  ;;  %3496 = vmatmul.bf16.vlgmr.msra.gmra.mxu3 %v3476_v9  ;;  %v6182_v40 = vsel %vm1007_vm6, %v2684_v15, -1e+30 }
 0xf73   : > { %4728 = vpow2.f32 %v2768_v5 }
 0xf74   : > { %v4725_v18 = vpop.eup %4724 }
 0xf75   : > { %v6160_v12 = vpop.xlane.xlu0 %2726  ;;  %v3349_v47 = vpop.xlane.xlu2 %3348  ;;  %v2834_v4 = vmul.f32 %v4725_v18, %v6040_v59  ;;  %v2766_v59 = vmul.f32 1.442695, %v2743_v17 }
 0xf76   : > { %v3372_v24 = vsub.f32 %v6053_v13, %v3349_v47 }
 0xf77   : > { %v2849_v32 = vpack.c.bf16 %v2835_v11, %v2834_v4  ;;  %4730 = vpow2.f32 %v2766_v59  ;;  %v2395_v57 = vpop.f32.mrf.mxu0 }
 0xf78   : > { %v6166_v63 = vpop.eup %4726  ;;  %v2687_v9 = vmul.f32 %v5896_v6, %v2395_v57  ;;  %v6207_v53 = vpop.f32.mrf.mxu3 }
 0xf79   : > { %3358 = vmax.xlane.f32.xlu1 %v6170_v14  ;;  %3430 = vadd.xlane.f32.xlu2 %v6166_v63  ;;  %v6178_v25 = vpop.eup %4728 }
 0xf7a   : > { %2875 = vmatmul.bf16.gmra.mxu1 %v2849_v32  ;;  %v6211_v62 = vsel %vm1007_vm6, %v2687_v9, -1e+30 }
 0xf7d   : > { %v3355_v3 = vpop.xlane.xlu2 %3354  ;;  %v3357_v51 = vpop.xlane.xlu0 %3356 }
 0xf7e   : > { %v3375_v45 = vsub.f32 %v6066_v20, %v3355_v3  ;;  %v3376_v49 = vsub.f32 %v6062_v54, %v3357_v51  ;;  %v3396_v20 = vmul.f32 1.442695, %v3372_v24  ;;  %v6190_v60 = vpop.eup %4730 }
 0xf80   : > { %v3402_v61 = vmul.f32 1.442695, %v3375_v45  ;;  %v3404_v16 = vmul.f32 1.442695, %v3376_v49  ;;  %v6214_v5 = vpop.f32.mrf.mxu3 }
 0xf81   : > { %2728 = vmax.xlane.f32.xlu1 %v6182_v40  ;;  %2800 = vadd.xlane.f32.xlu2 %v6178_v25 }
 0xf82   : > { %4732 = vpow2.f32 %v3402_v61 }
 0xf83   : > { %4734 = vpow2.f32 %v3396_v20 }
 0xf84   : > { %4736 = vpow2.f32 %v3404_v16 }
 0xf85   : > { %v3419_v19 = vpop.xlane.xlu2 %3418 }
 0xf88   : > { %v6192_v27 = vpop.eup %4732  ;;  %v6217_v11 = vpop.f32.mrf.mxu3 }
 0xf89   : > { %2798 = vadd.xlane.f32.xlu1 %v6190_v60  ;;  %3434 = vadd.xlane.f32.xlu2 %v6192_v27  ;;  %v6200_v54 = vpop.eup %4734 }
 0xf8a   : > { %v6202_v8 = vpop.eup %4736 }
 0xf8d   : > { %v6198_v13 = vpop.xlane.xlu2 %2724 }
 0xf90   : > { %v6222_v17 = vpop.f32.mrf.mxu3 }
 0xf91   : > { %3428 = vadd.xlane.f32.xlu1 %v6200_v54  ;;  %3436 = vadd.xlane.f32.xlu2 %v6202_v8 }
 0xf95   : > { %v2795_v29 = vpop.xlane.xlu2 %2794 }
 0xf98   : > { %v6224_v15 = vpop.f32.mrf.mxu3 }
 0xf99   : > { %2734 = vmax.xlane.f32.xlu1 %v6211_v62 }
 0xf9d   : > { %v2731_v18 = vpop.xlane.xlu2 %2730 }
 0xf9e   : > { %v2749_v47 = vsub.f32 %v6088_v43, %v2731_v18 }
 0xfa0   : > { %v2778_v4 = vmul.f32 1.442695, %v2749_v47  ;;  %v6228_v24 = vpop.f32.mrf.mxu3 }
 0xfa2   : > { %4738 = vpow2.f32 %v2778_v4 }
 0xfa3   : > { %4740 = vrcp.f32 %v3419_v19  ;;  %v2260_v19 = vadd.f32 %v6117_v58, %v5559_v26  ;;  %v2747_v26 = vsub.f32 %v6049_v34, %v6160_v12 }
 0xfa8   : > { %v6219_v32 = vpop.eup %4738  ;;  %v6235_v18 = vpop.f32.mrf.mxu3 }
 0xfa9   : > { %2810 = vadd.xlane.f32.xlu2 %v6219_v32  ;;  %v4741_v3 = vpop.eup %4740 }
 0xfaa   : > { %v3463_v61 = vmul.f32 %v4741_v3, %v6070_v0 }
 0xfb0   : > { %v6249_v58 = vpop.f32.mrf.mxu3 }
 0xfbc   : > { %v3417_v59 = vpop.xlane.xlu1 %3416 }
 0xfbd   : > { %4742 = vrcp.f32 %v3417_v59 }
 0xfc3   : > { %v4743_v45 = vpop.eup %4742 }
 0xfc4   : > { %v3347_v51 = vpop.xlane.xlu1 %3346  ;;  %v3462_v43 = vmul.f32 %v4743_v45, %v6094_v21  ;;  %v3023_v21 = vpop.f32.mrf.mxu2 }
 0xfc5   : > { %v3371_v49 = vsub.f32 %v6104_v46, %v3347_v51  ;;  %v3315_v46 = vmul.f32 %v6008_v56, %v3023_v21  ;;  %v2686_v56 = vmul.f32 %v5896_v6, %v2393_v10  ;;  %v2746_v6 = vsub.f32 %v6077_v36, %v6198_v13  ;;  %v6263_v10 = vpop.f32.mrf.mxu3 }
 0xfc6   : > { %v3477_v20 = vpack.c.bf16 %v3463_v61, %v3462_v43  ;;  %v2774_v43 = vmul.f32 1.442695, %v2747_v26 }
 0xfc7   : > { %v3394_v16 = vmul.f32 1.442695, %v3371_v49  ;;  %v6244_v45 = vsel %vm1007_vm6, %v3315_v46, -1e+30 }
 0xfc8   : > { %3501 = vmatmul.bf16.gmra.mxu3 %v3477_v20  ;;  %v6257_v20 = vsel %vm1007_vm6, %v2686_v56, -1e+30 }
 0xfc9   : > { %4744 = vpow2.f32 %v3394_v16 }
 0xfcc   : > { %v2723_v57 = vpop.xlane.xlu1 %2722  ;;  %v3421_v34 = vpop.xlane.xlu0 %3420 }
 0xfcd   : > { %v2745_v51 = vsub.f32 %v6115_v41, %v2723_v57 }
 0xfce   : > { %v2871_v47 = vpop.f32.mrf.mxu1 }
 0xfcf   : > { %v6231_v9 = vpop.eup %4744  ;;  %v6238_v0 = vadd.f32 %v2871_v47, %v2260_v19  ;;  %v2770_v61 = vmul.f32 1.442695, %v2745_v51  ;;  %v2772_v19 = vmul.f32 1.442695, %v2746_v6  ;;  %v2265_v6 = vadd.f32 %v6144_v1, %v5567_v39 }
 0xfd0   : > { %3426 = vadd.xlane.f32.xlu0 %v6231_v9 }
 0xfd4   : > { %v3353_v4 = vpop.xlane.xlu1 %3352 }
 0xfd5   : > { %v3374_v59 = vsub.f32 %v6130_v22, %v3353_v4 }
 0xfd7   : > { %v3400_v3 = vmul.f32 1.442695, %v3374_v59  ;;  %v6277_v59 = vpop.f32.mrf.mxu3 }
 0xfd8   : > { %3362 = vmax.xlane.f32.xlu0 %v6244_v45 }
 0xfd9   : > { %4746 = vpow2.f32 %v3400_v3 }
 0xfda   : > { %4748 = vrcp.f32 %v2795_v29 }
 0xfdc   : > { %v2793_v22 = vpop.xlane.xlu1 %2792  ;;  %v6265_v29 = vpop.xlane.xlu2 %3424 }
 0xfdd   : > { %4750 = vrcp.f32 %v2793_v22 }
 0xfde   : > { %4752 = vpow2.f32 %v2774_v43  ;;  %v2873_v43 = vpop.f32.mrf.mxu1 }
 0xfdf   : > { %v6253_v49 = vpop.eup %4746  ;;  %4754 = vpow2.f32 %v2770_v61 }
 0xfe0   : > { %2732 = vmax.xlane.f32.xlu0 %v6257_v20  ;;  %3432 = vadd.xlane.f32.xlu1 %v6253_v49  ;;  %v4749_v41 = vpop.eup %4748  ;;  %4756 = vrcp.f32 %v3421_v34 }
 0xfe1   : > { %v2837_v57 = vmul.f32 %v4749_v41, %v6082_v2 }
 0xfe3   : > { %v4751_v12 = vpop.eup %4750 }
 0xfe4   : > { %v3423_v30 = vpop.xlane.xlu1 %3422  ;;  %v2836_v16 = vmul.f32 %v4751_v12, %v6137_v55  ;;  %v6269_v47 = vpop.eup %4752 }
 0xfe5   : > { %4758 = vrcp.f32 %v3423_v30  ;;  %v6271_v46 = vpop.eup %4754  ;;  %v3361_v3 = vpop.xlane.xlu2 %3360 }
 0xfe6   : > { %v2850_v21 = vpack.c.bf16 %v2837_v57, %v2836_v16  ;;  %v4757_v36 = vpop.eup %4756  ;;  %4760 = vpow2.f32 %v2772_v19  ;;  %v3378_v61 = vsub.f32 %v6153_v42, %v3361_v3  ;;  %v2797_v57 = vpop.xlane.xlu0 %2796  ;;  %v2262_v19 = vadd.f32 %v6135_v7, %v5563_v50 }
 0xfe7   : > { %v3464_v55 = vmul.f32 %v4757_v36, %v6111_v23 }
 0xfe8   : > { %2802 = vadd.xlane.f32.xlu0 %v6271_v46  ;;  %2806 = vadd.xlane.f32.xlu1 %v6269_v47  ;;  %v3408_v34 = vmul.f32 1.442695, %v3378_v61 }
 0xfe9   : > { %2880 = vmatmul.bf16.gmra.mxu1 %v2850_v21 }
 0xfeb   : > { %v4759_v13 = vpop.eup %4758 }
 0xfec   : > { %v3359_v4 = vpop.xlane.xlu1 %3358  ;;  %v3465_v2 = vmul.f32 %v4759_v13, %v6149_v44  ;;  %v6280_v56 = vpop.eup %4760 }
 0xfed   : > { %v3377_v26 = vsub.f32 %v6170_v14, %v3359_v4 }
 0xfee   : > { %v3478_v51 = vpack.c.bf16 %v3465_v2, %v3464_v55 }
 0xfef   : > { %v3406_v22 = vmul.f32 1.442695, %v3377_v26 }
 0xff0   : > { %3506 = vmatmul.bf16.gmra.mxu3 %v3478_v51  ;;  %2804 = vadd.xlane.f32.xlu0 %v6280_v56 }
 0xff1   : > { %4762 = vpow2.f32 %v3406_v22 }
 0xff2   : > { %4764 = vpow2.f32 %v3408_v34 }
 0xff4   : > { %v2729_v23 = vpop.xlane.xlu1 %2728 }
 0xff5   : > { %v2748_v44 = vsub.f32 %v6182_v40, %v2729_v23  ;;  %v3497_v41 = vpop.f32.mrf.mxu3  ;;  %v2912_v40 = vadd.f32 %v2873_v43, %v2262_v19 }
 0xff6   : > { %v3537_v14 = vadd.f32 %v3497_v41, %v6238_v0 }
 0xff7   : > { %v6288_v12 = vpop.eup %4762  ;;  %v2776_v30 = vmul.f32 1.442695, %v2748_v44  ;;  %v2876_v16 = vpop.f32.mrf.mxu1 }
 0xff8   : > { %v2913_v42 = vadd.f32 %v2876_v16, %v2265_v6  ;;  %3438 = vadd.xlane.f32.xlu0 %v6288_v12  ;;  %v6293_v1 = vpop.eup %4764  ;;  %v6297_v13 = vmul.f32 0.25, %v3537_v14 }
 0xff9   : > { %4766 = vpow2.f32 %v2776_v30 }
 0xffa   : > { %4768 = vrcp.f32 %v2797_v57 }
 0xffc   : > { %v2799_v21 = vpop.xlane.xlu1 %2798 }
 0xffd   : > { %4770 = vrcp.f32 %v2799_v21  ;;  %v3499_v39 = vpop.f32.mrf.mxu3 }
 0xffe   : > { %v3538_v0 = vadd.f32 %v3499_v39, %v2912_v40 }
 0xfff   : > { %v6295_v36 = vpop.eup %4766  ;;  %v2878_v40 = vpop.f32.mrf.mxu1 }
0x1000   : > { %v6299_v4 = vmul.f32 0.25, %v3538_v0  ;;  %2808 = vadd.xlane.f32.xlu1 %v6295_v36  ;;  %3440 = vadd.xlane.f32.xlu0 %v6293_v1  ;;  %v4769_v55 = vpop.eup %4768 }
0x1001   : > { %v2838_v3 = vmul.f32 %v4769_v55, %v6126_v28  ;;  %v3431_v28 = vpop.xlane.xlu2 %3430 }
0x1002   : > { %v3569_v50 = vpack.c.bf16 %v6299_v4, %v6297_v13 }
0x1003   : > { %v4771_v7 = vpop.eup %4770 }
0x1004   : > { %v3429_v2 = vpop.xlane.xlu1 %3428  ;;  %v2839_v26 = vmul.f32 %v4771_v7, %v6190_v60 }
0x1006   : > { %v2851_v51 = vpack.c.bf16 %v2839_v26, %v2838_v3 }
0x1008   : > { %2885 = vmatmul.bf16.gmra.mxu1 %v2851_v51 }
0x100c   : > { %v2735_v43 = vpop.xlane.xlu1 %2734 }
0x100d   : > { %v2751_v22 = vsub.f32 %v6211_v62, %v2735_v43 }
0x100f   : > { %v2782_v61 = vmul.f32 1.442695, %v2751_v22 }
0x1011   : > { %4772 = vpow2.f32 %v2782_v61 }
0x1012   : > { %4774 = vrcp.f32 %v6265_v29  ;;  %v2267_v29 = vadd.f32 %v6164_v52, %v5570_v31 }
0x1014   : > { %v2914_v21 = vadd.f32 %v2878_v40, %v2267_v29 }
0x1017   : > { %v6308_v34 = vpop.eup %4772 }
0x1018   : > { %2814 = vadd.xlane.f32.xlu0 %v6308_v34  ;;  %v4775_v44 = vpop.eup %4774 }
0x1019   : > { %v3466_v14 = vmul.f32 %v4775_v44, %v6139_v35 }
0x1043   : > { %v3427_v23 = vpop.xlane.xlu0 %3426 }
0x1044   : > { %4776 = vrcp.f32 %v3427_v23 }
0x1045   : > { %4778 = vrcp.f32 %v3429_v2 }
0x104a   : > { %v4777_v41 = vpop.eup %4776 }
0x104b   : > { %v3363_v6 = vpop.xlane.xlu0 %3362  ;;  %v3502_v60 = vpop.f32.mrf.mxu3  ;;  %v3467_v30 = vmul.f32 %v4777_v41, %v6231_v9 }
0x104c   : > { %v3379_v62 = vsub.f32 %v6244_v45, %v3363_v6  ;;  %v3539_v16 = vadd.f32 %v3502_v60, %v2913_v42  ;;  %v4779_v55 = vpop.eup %4778  ;;  %v2801_v9 = vpop.xlane.xlu2 %2800 }
0x104d   : > { %v3479_v57 = vpack.c.bf16 %v3467_v30, %v3466_v14  ;;  %v3468_v31 = vmul.f32 %v4779_v55, %v6200_v54 }
0x104e   : > { %v3410_v19 = vmul.f32 1.442695, %v3379_v62  ;;  %v6320_v3 = vmul.f32 0.25, %v3539_v16 }
0x104f   : > { %3511 = vmatmul.bf16.gmra.mxu3 %v3479_v57 }
0x1050   : > { %4780 = vpow2.f32 %v3410_v19 }
0x1051   : > { %4782 = vrcp.f32 %v3431_v28 }
0x1053   : > { %v2733_v39 = vpop.xlane.xlu0 %2732  ;;  %v3504_v35 = vpop.f32.mrf.mxu3 }
0x1054   : > { %v2750_v0 = vsub.f32 %v6257_v20, %v2733_v39  ;;  %v3540_v7 = vadd.f32 %v3504_v35, %v2914_v21  ;;  %v3433_v43 = vpop.xlane.xlu1 %3432  ;;  %v3435_v23 = vpop.xlane.xlu2 %3434 }
0x1056   : > { %v6318_v45 = vpop.eup %4780  ;;  %v2780_v42 = vmul.f32 1.442695, %v2750_v0  ;;  %v6322_v2 = vmul.f32 0.25, %v3540_v7 }
0x1057   : > { %3442 = vadd.xlane.f32.xlu1 %v6318_v45  ;;  %v4783_v26 = vpop.eup %4782 }
0x1058   : > { %4784 = vpow2.f32 %v2780_v42  ;;  %v3570_v52 = vpack.c.bf16 %v6322_v2, %v6320_v3  ;;  %v3469_v51 = vmul.f32 %v4783_v26, %v6166_v63  ;;  %v2270_v63 = vadd.f32 %v6184_v48, %v5572_v33 }
0x1059   : > { %4786 = vrcp.f32 %v2801_v9  ;;  %v2272_v26 = vadd.f32 %v6196_v38, %v5574_v37 }
0x105a   : > { %v3480_v22 = vpack.c.bf16 %v3469_v51, %v3468_v31 }
0x105b   : > { %v2803_v20 = vpop.xlane.xlu0 %2802 }
0x105c   : > { %4788 = vrcp.f32 %v2803_v20  ;;  %v2807_v62 = vpop.xlane.xlu1 %2806 }
0x105d   : > { %4790 = vrcp.f32 %v3433_v43 }
0x105e   : > { %v6329_v61 = vpop.eup %4784  ;;  %4792 = vrcp.f32 %v3435_v23 }
0x105f   : > { %2812 = vadd.xlane.f32.xlu2 %v6329_v61  ;;  %3516 = vmatmul.bf16.gmra.mxu3 %v3480_v22  ;;  %v4787_v44 = vpop.eup %4786 }
0x1060   : > { %v2840_v28 = vmul.f32 %v4787_v44, %v6178_v25 }
0x1062   : > { %v4789_v41 = vpop.eup %4788 }
0x1063   : > { %v2805_v54 = vpop.xlane.xlu0 %2804  ;;  %v2841_v6 = vmul.f32 %v4789_v41, %v6271_v46  ;;  %v4791_v14 = vpop.eup %4790 }
0x1064   : > { %v4793_v57 = vpop.eup %4792  ;;  %4794 = vrcp.f32 %v2805_v54  ;;  %v3470_v19 = vmul.f32 %v4791_v14, %v6253_v49  ;;  %v3437_v46 = vpop.xlane.xlu2 %3436  ;;  %v6447_v54 = vld [vmem:[#allocation12_spill] sm:$0xff] }
0x1065   : > { %v2852_v60 = vpack.c.bf16 %v2841_v6, %v2840_v28  ;;  %4796 = vrcp.f32 %v2807_v62  ;;  %v3471_v40 = vmul.f32 %v4793_v57, %v6192_v27  ;;  %v2275_v28 = vadd.f32 %v6207_v53, %v6447_v54 }
0x1066   : > { %v2881_v30 = vpop.f32.mrf.mxu1 }
0x1067   : > { %v2915_v16 = vadd.f32 %v2881_v30, %v2270_v63  ;;  %2890 = vmatmul.bf16.gmra.mxu1 %v2852_v60  ;;  %v3481_v25 = vpack.c.bf16 %v3471_v40, %v3470_v19 }
0x106a   : > { %v4795_v21 = vpop.eup %4794 }
0x106b   : > { %v3439_v29 = vpop.xlane.xlu0 %3438  ;;  %v4797_v39 = vpop.eup %4796  ;;  %v2842_v33 = vmul.f32 %v4795_v21, %v6280_v56  ;;  %v6448_v21 = vld [vmem:[#allocation13_spill] sm:$0xff] }
0x106c   : > { %4798 = vrcp.f32 %v3439_v29  ;;  %v2843_v0 = vmul.f32 %v4797_v39, %v6269_v47  ;;  %v2811_v7 = vpop.xlane.xlu2 %2810 }
0x106d   : > { %4800 = vrcp.f32 %v3437_v46  ;;  %v2277_v46 = vadd.f32 %v6214_v5, %v6448_v21  ;;  %v6454_v21 = vld [vmem:[#allocation19_spill] sm:$0xff] }
0x106e   : > { %v2853_v9 = vpack.c.bf16 %v2843_v0, %v2842_v33  ;;  %v2883_v42 = vpop.f32.mrf.mxu1 }
0x106f   : > { %3521 = vmatmul.bf16.gmra.mxu3 %v3481_v25  ;;  %v2916_v56 = vadd.f32 %v2883_v42, %v2272_v26  ;;  %v6449_v42 = vld [vmem:[#allocation14_spill] sm:$0xff] }
0x1070   : > { %v2280_v5 = vadd.f32 %v6217_v11, %v6449_v42  ;;  %v4336_v42 = vld [vmem:[#allocation7 + $0x18] sm:$0xff] }
0x1072   : > { %v4799_v49 = vpop.eup %4798 }
0x1073   : > { %v3507_v48 = vpop.f32.mrf.mxu3  ;;  %v2809_v55 = vpop.xlane.xlu1 %2808  ;;  %v3473_v31 = vmul.f32 %v4799_v49, %v6288_v12 }
0x1074   : > { %v3541_v35 = vadd.f32 %v3507_v48, %v2915_v16  ;;  %v4801_v27 = vpop.eup %4800  ;;  %4802 = vrcp.f32 %v2809_v55  ;;  %v3441_v60 = vpop.xlane.xlu0 %3440 }
0x1075   : > { %4804 = vrcp.f32 %v2811_v7  ;;  %v3472_v51 = vmul.f32 %v4801_v27, %v6202_v8 }
0x1076   : > { %v6344_v23 = vmul.f32 0.25, %v3541_v35  ;;  %4806 = vrcp.f32 %v3441_v60 }
0x1077   : > { %2895 = vmatmul.bf16.gmra.mxu1 %v2853_v9  ;;  %v3482_v43 = vpack.c.bf16 %v3473_v31, %v3472_v51 }
0x107a   : > { %v4803_v22 = vpop.eup %4802 }
0x107b   : > { %v3509_v20 = vpop.f32.mrf.mxu3  ;;  %v4805_v41 = vpop.eup %4804  ;;  %v2844_v38 = vmul.f32 %v4803_v22, %v6295_v36 }
0x107c   : > { %v3542_v47 = vadd.f32 %v3509_v20, %v2916_v56  ;;  %v2845_v12 = vmul.f32 %v4805_v41, %v6219_v32  ;;  %v4807_v62 = vpop.eup %4806  ;;  %v6450_v56 = vld [vmem:[#allocation15_spill] sm:$0xff] }
0x107d   : > { %v3474_v36 = vmul.f32 %v4807_v62, %v6293_v1  ;;  %v4340_v41 = vld [vmem:[#allocation7 + $0x38] sm:$0xff] }
0x107e   : > { %v6346_v44 = vmul.f32 0.25, %v3542_v47  ;;  %v2854_v6 = vpack.c.bf16 %v2845_v12, %v2844_v38  ;;  %3641 = vmatpush.bf16.msra.mxu0 %v4340_v41  ;;  %v4339_v12 = vld [vmem:[#allocation7 + $0x30] sm:$0xff] }
0x107f   : > { %3526 = vmatmul.bf16.gmra.mxu3 %v3482_v43 }
0x1080   : > { %v3571_v37 = vpack.c.bf16 %v6346_v44, %v6344_v23 }
0x1082   : > { %3642 = vmatpush.bf16.msra.mxu0 %v4339_v12  ;;  %v4334_v12 = vld [vmem:[#allocation7 + $0x8] sm:$0xff] }
0x1085   : > { %v2886_v8 = vpop.f32.mrf.mxu1 }
0x1086   : > { %v2917_v63 = vadd.f32 %v2886_v8, %v2275_v28  ;;  %v6451_v8 = vld [vmem:[#allocation16_spill] sm:$0xff] }
0x1087   : > { %2900 = vmatmul.bf16.gmra.mxu1 %v2854_v6  ;;  %v2285_v11 = vadd.f32 %v6224_v15, %v6451_v8  ;;  %v4338_v6 = vld [vmem:[#allocation7 + $0x28] sm:$0xff] }
0x1088   : > { %3643 = vmatpush.bf16.msra.mxu0 %v4338_v6 }
0x108b   : > { %v2815_v30 = vpop.xlane.xlu0 %2814 }
0x108d   : > { %v2888_v29 = vpop.f32.mrf.mxu1 }
0x108e   : > { %v2918_v33 = vadd.f32 %v2888_v29, %v2277_v46  ;;  %v6453_v29 = vld [vmem:[#allocation18_spill] sm:$0xff]  ;;  %v2292_v46 = vadd.f32 %v6249_v58, %v6454_v21 }
0x108f   : > { %v2290_v15 = vadd.f32 %v6235_v18, %v6453_v29 }
0x10ca   : > { %v3443_v14 = vpop.xlane.xlu1 %3442 }
0x10cb   : > { %4808 = vrcp.f32 %v3443_v14  ;;  %v6452_v14 = vld [vmem:[#allocation17_spill] sm:$0xff] }
0x10cc   : > { %4810 = vrcp.f32 %v2815_v30 }
0x10d1   : > { %v4809_v16 = vpop.eup %4808 }
0x10d2   : > { %v3512_v57 = vpop.f32.mrf.mxu3  ;;  %v2813_v19 = vpop.xlane.xlu2 %2812  ;;  %v3475_v32 = vmul.f32 %v4809_v16, %v6318_v45 }
0x10d3   : > { %v3543_v40 = vadd.f32 %v3512_v57, %v2917_v63  ;;  %4812 = vrcp.f32 %v2813_v19  ;;  %v4811_v25 = vpop.eup %4810 }
0x10d4   : > { %v3483_v53 = vpack.c.bf16 %v3475_v32, %v3474_v36  ;;  %v2847_v35 = vmul.f32 %v4811_v25, %v6308_v34  ;;  %v2282_v34 = vadd.f32 %v6222_v17, %v6450_v56  ;;  %v2287_v17 = vadd.f32 %v6228_v24, %v6452_v14 }
0x10d5   : > { %v6360_v9 = vmul.f32 0.25, %v3543_v40 }
0x10d6   : > { %3531 = vmatmul.bf16.gmra.mxu3 %v3483_v53 }
0x10d9   : > { %v4813_v39 = vpop.eup %4812 }
0x10da   : > { %v3514_v48 = vpop.f32.mrf.mxu3  ;;  %v2846_v0 = vmul.f32 %v4813_v39, %v6329_v61 }
0x10db   : > { %v3544_v55 = vadd.f32 %v3514_v48, %v2918_v33 }
0x10dc   : > { %v2855_v1 = vpack.c.bf16 %v2847_v35, %v2846_v0 }
0x10dd   : > { %v6362_v45 = vmul.f32 0.25, %v3544_v55 }
0x10de   : > { %2905 = vmatmul.bf16.gmra.mxu1 %v2855_v1 }
0x10df   : > { %v3572_v49 = vpack.c.bf16 %v6362_v45, %v6360_v9 }
0x10e2   : > { %v3517_v7 = vpop.f32.mrf.mxu3 }
0x10e4   : > { %v2891_v27 = vpop.f32.mrf.mxu1 }
0x10e5   : > { %v2919_v26 = vadd.f32 %v2891_v27, %v2280_v5  ;;  %v4335_v5 = vld [vmem:[#allocation7 + $0x10] sm:$0xff] }
0x10e7   : > { %v3545_v31 = vadd.f32 %v3517_v7, %v2919_v26  ;;  %v4337_v7 = vld [vmem:[#allocation7 + $0x20] sm:$0xff] }
0x10e8   : > { %3644 = vmatpush.bf16.msra.mxu0 %v4337_v7  ;;  %v6455_v26 = vld [vmem:[#allocation20_spill] sm:$0xff] }
0x10e9   : > { %v3561_v43 = vmul.f32 0.25, %v3545_v31  ;;  %v2295_v31 = vadd.f32 %v6263_v10, %v6455_v26 }
0x10ea   : > { %v3519_v61 = vpop.f32.mrf.mxu3 }
0x10ec   : > { %v2893_v20 = vpop.f32.mrf.mxu1  ;;  %3645 = vmatpush.bf16.msra.mxu0 %v4336_v42 }
0x10ed   : > { %v2920_v51 = vadd.f32 %v2893_v20, %v2282_v34 }
0x10ef   : > { %v3546_v47 = vadd.f32 %v3519_v61, %v2920_v51  ;;  %v6456_v61 = vld [vmem:[#allocation21_spill] sm:$0xff] }
0x10f0   : > { %3646 = vmatpush.bf16.msra.mxu0 %v4335_v5  ;;  %v2297_v56 = vadd.f32 %v6277_v59, %v6456_v61 }
0x10f1   : > { %v3562_v22 = vmul.f32 0.25, %v3546_v47 }
0x10f2   : > { %v3522_v38 = vpop.f32.mrf.mxu3 }
0x10f3   : > { %v3573_v54 = vpack.c.bf16 %v3562_v22, %v3561_v43 }
0x10f4   : > { %v2896_v28 = vpop.f32.mrf.mxu1 }
0x10f5   : > { %v2921_v63 = vadd.f32 %v2896_v28, %v2285_v11  ;;  %v4333_v28 = vld [vmem:[#allocation7] sm:$0xff] }
0x10f7   : > { %v3547_v62 = vadd.f32 %v3522_v38, %v2921_v63 }
0x10f9   : > { %v3563_v19 = vmul.f32 0.25, %v3547_v62 }
0x10fa   : > { %v3524_v60 = vpop.f32.mrf.mxu3 }
0x10fc   : > { %v2898_v30 = vpop.f32.mrf.mxu1 }
0x10fd   : > { %v2922_v16 = vadd.f32 %v2898_v30, %v2287_v17 }
0x10ff   : > { %v3548_v57 = vadd.f32 %v3524_v60, %v2922_v16 }
0x1101   : > { %v3564_v36 = vmul.f32 0.25, %v3548_v57 }
0x1102   : > { %v3527_v40 = vpop.f32.mrf.mxu3 }
0x1103   : > { %v3574_v32 = vpack.c.bf16 %v3564_v36, %v3563_v19 }
0x1104   : > { %v2901_v53 = vpop.f32.mrf.mxu1 }
0x1105   : > { %v2923_v25 = vadd.f32 %v2901_v53, %v2290_v15 }
0x1107   : > { %v3549_v33 = vadd.f32 %v3527_v40, %v2923_v25 }
0x1109   : > { %v3565_v35 = vmul.f32 0.25, %v3549_v33 }
0x110a   : > { %v3529_v48 = vpop.f32.mrf.mxu3 }
0x110c   : > { %v2903_v39 = vpop.f32.mrf.mxu1 }
0x110d   : > { %v2924_v24 = vadd.f32 %v2903_v39, %v2292_v46 }
0x110f   : > { %v3550_v0 = vadd.f32 %v3529_v48, %v2924_v24 }
0x1111   : > { %v3566_v55 = vmul.f32 0.25, %v3550_v0 }
0x1113   : > { %v3575_v1 = vpack.c.bf16 %v3566_v55, %v3565_v35 }
0x1159   : > { %v3532_v27 = vpop.f32.mrf.mxu3 }
0x115b   : > { %v2906_v18 = vpop.f32.mrf.mxu1 }
0x115c   : > { %v2925_v58 = vadd.f32 %v2906_v18, %v2295_v31 }
0x115e   : > { %v3551_v51 = vadd.f32 %v3532_v27, %v2925_v58 }
0x1160   : > { %v3567_v22 = vmul.f32 0.25, %v3551_v51 }
0x1161   : > { %v3534_v47 = vpop.f32.mrf.mxu3 }
0x1163   : > { %v2908_v34 = vpop.f32.mrf.mxu1 }
0x1164   : > { %v2926_v20 = vadd.f32 %v2908_v34, %v2297_v56 }
0x1166   : > { %v3552_v43 = vadd.f32 %v3534_v47, %v2926_v20 }
0x1168   : > { %v3568_v41 = vmul.f32 0.25, %v3552_v43 }
0x116a   : > { %v3576_v38 = vpack.c.bf16 %v3568_v41, %v3567_v22 }
0x116c   : > { %4345 = vmatpush.lsf.bf16.msrb.mxu0 %v3576_v38 }
0x1170   : > { %3647 = vmatpush.bf16.msra.mxu0 %v4334_v12 }
0x1174   : > { %4346 = vmatpush.lsf.bf16.msrb.mxu0 %v3575_v1 }
0x1178   : > { %3648 = vmatpush.bf16.msra.mxu0 %v4333_v28 }
0x117c   : > { %4347 = vmatpush.lsf.bf16.msrb.mxu0 %v3574_v32 }
0x1180   : > { %4348 = vmatpush.lsf.bf16.msrb.mxu0 %v3573_v54 }
0x1184   : > { %4349 = vmatpush.lsf.bf16.msrb.mxu0 %v3572_v49 }
0x1188   : > { %4350 = vmatpush.lsf.bf16.msrb.mxu0 %v3571_v37 }
0x118c   : > { %4351 = vmatpush.lsf.bf16.msrb.mxu0 %v3570_v52 }
0x1190   : > { %4352 = vmatpush.lsf.bf16.msrb.mxu0 %v3569_v50 }
0x1192   : > { %4353 = vllmr.2.mxu0 }
0x11b3   : > { %4354 = vmatmul.lmr.bf16.vlgmr.msra.gmra.2.mxu0 }
0x11bb   : > { %4355 = vmatmul.lmr.bf16.gmra.2.mxu0 }
0x1230   : > { %v3650_v10 = vpop.f32.mrf.mxu0 }
0x1231   : > { %3655 = vst [vmem:[%s223_s25] sm:$0xff] %v3650_v10 }
0x1238   : > { %v3652_v59 = vpop.f32.mrf.mxu0 }
0x1239   : > { %3656 = vst [vmem:[%s223_s25 + $0x8] sm:$0xff] %v3652_v59 }
0x123a   : > { %4931 = shalt.err (!%p4928_p10)
}
0x123b   : > { %s4982_s20 = smov 128   ;;  %s4983_s10 = smov 8  }
0x123c   : > { %4462 = dma.vmem_to_hbm [thread:$0]  (%p5077_p5), %s3671_s24, 256, %s3673_s26, %s3658_s23, %s4982_s20, %s4982_s20, %s4983_s10  }
0x123d PF: > { %s3687_s18 = sand.u32 1, %s4962_s12   ;;  %p6457_p12 = scmp.ge.s32.totalorder %s4974_s15, 2 }
0x123e   : > { %s3688_s5 = scalar_lea.sflag [#allocation4], %s3687_s18 }
0x123f   : > { %p4476_p13 = pnand %p6457_p12, %p5040_p6 }
0x1241   : > { %p4477_p0 = pneg %p4476_p13 }
0x1243   : > { %4957 = dma.done.wait (%p4477_p0), %s3688_s5, 256  }
0x1244   : > { %4959 = vsyncadd (%p4477_p0), %s3688_s5, 4294967040  ;;  %p17_p3 = scmp.ge.s32.totalorder %s5064_s8, 4   ;;  %s6458_s12 = smov %s4966_s13 }
0x1245   : > { %s6459_s13 = smov %s4970_s14  ;;  %s6460_s14 = smov %s5073_s11 }
0x1246   : > { %s6461_s15 = smov %s5064_s8  ;;  %19 = sbr.rel (!%p17_p3) target bundleno = 6 (0x6), region = 85 }
0x124b   :  { %3694 = vsyncpa [#allocation3], 1 }
0x124c   :  { %3696 = vsyncpa [#allocation3 + $0x1], 1 }
0x124d   :  { %3697 = vsyncpa [#allocation6], 1 }
0x124e   :  { %3698 = vsyncpa [#allocation4], 1 }
0x124f   :  { %3700 = vsyncpa [#allocation4 + $0x1], 1 }

</bundles_post_ra>
